<compile_context>
chip_gen: v5e
topology: v5e:2x2
jax: 0.10.0
libtpu: 0.0.40
codegen_flags: <defaults>
</compile_context>

<pallas_src>
import jax
import jax.numpy as jnp
from jax.experimental import pallas as pl
from jax.experimental.pallas import tpu as pltpu


_LANE_CANDIDATES = (1024, 512, 256, 128)   # widest lane-dense slab that divides n
_TARGET_TILE_ELEMS = 1 << 20               # ~4 MiB f32 input per grid step
_MIN_PALLAS_ELEMS = 1 << 20                # below this, plain XLA compare wins


def _round_up(a: int, b: int) -> int:
    return ((a + b - 1) // b) * b


def _cdiv(a: int, b: int) -> int:
    return (a + b - 1) // b


def _predicate_kernel(x_ref, o_ref):
    # Elementwise selection predicate: x > 0 -> bool mask (store-lean: write
    # the 1-byte bool directly, no intermediate f32/i32 materialization).
    o_ref[...] = x_ref[...] > 0


def selection_model(x):
    """Pallas implementation of SelectionModel(predicate=lambda t: t > 0).forward(x).

    Args:
      x: float32 array (any shape; the demo uses NCHW (B, C, H, W)).
    Returns:
      bool array of the same shape with mask = (x > 0).
    """
    # TODO(synk): the PyTorch module takes an arbitrary Python `predicate`
    # callable; it is instantiated here concretely as (x > 0).
    orig_shape = x.shape
    n = x.size

    # Fast path: tiny/mid inputs or shapes that would require padding are not
    # worth a custom call; XLA's fused compare is already bandwidth-bound and a
    # pad + slice would add two full extra HBM passes (~3x) on top of it.
    if n < _MIN_PALLAS_ELEMS or n % 128 != 0:
        return x > 0

    # Widest lane-dense slab width (multiple of 128) that divides n exactly,
    # so the reshape below is a free (copy-less) metadata operation.
    lanes = next(w for w in _LANE_CANDIDATES if n % w == 0)
    rows = n // lanes
    slab = x.reshape(rows, lanes)

    # Row tile: ~4 MiB of input per step, multiple of 32 so both the f32 input
    # (8,128) tiling and the bool output (32,128) tiling are aligned (unmasked
    # stores on all full blocks). Capped at ~half the rows so the grid has at
    # least 2 steps -> v7x can shard the "parallel" axis across its 2 TCs.
    tile_r = max(32, (_TARGET_TILE_ELEMS // lanes) // 32 * 32)
    half_rows = max(32, _round_up(_cdiv(rows, 2), 32))
    tile_r = min(tile_r, half_rows)

    # Ragged tail handled by Pallas masking the last (partial) block; no pad.
    grid = (_cdiv(rows, tile_r),)

    mask_slab = pl.pallas_call(
        _predicate_kernel,
        out_shape=jax.ShapeDtypeStruct((rows, lanes), jnp.bool_),
        grid_spec=pltpu.PrefetchScalarGridSpec(
            num_scalar_prefetch=0,
            grid=grid,
            in_specs=[pl.BlockSpec((tile_r, lanes), lambda i: (i, 0))],
            out_specs=pl.BlockSpec((tile_r, lanes), lambda i: (i, 0)),
        ),
        compiler_params=pltpu.CompilerParams(
            # Independent iterations, no accumulator: "parallel" lets v7x shard
            # the grid across both TensorCores; no-op on single-TC chips.
            dimension_semantics=("parallel",),
            # ~10 MiB double-buffered residency at max tile; explicit limit
            # gives headroom on v5e's 16 MiB scoped default without exceeding
            # v7x's 64 MiB physical VMEM.
            vmem_limit_bytes=32 << 20,
        ),
        cost_estimate=pl.CostEstimate(
            flops=n, transcendentals=0, bytes_accessed=5 * n),
    )(slab)

    # No padding was introduced, so this reshape is copy-free.
    return mask_slab.reshape(orig_shape)


if __name__ == "__main__":
    key = jax.random.PRNGKey(0)

    # 1) Small NCHW input consistent with the module's forward (fast path).
    x_small = jax.random.normal(key, (2, 4, 16, 16), dtype=jnp.float32)
    mask_small = jax.block_until_ready(selection_model(x_small))
    assert mask_small.shape == x_small.shape
    assert mask_small.dtype == jnp.bool_
    assert bool(jnp.all(mask_small == (x_small > 0)))

    # 2) Larger input that exercises the tiled Pallas path (grid >= 2).
    x_big = jax.random.normal(jax.random.PRNGKey(1), (4, 16, 128, 128),
                              dtype=jnp.float32)
    mask_big = jax.block_until_ready(selection_model(x_big))
    assert mask_big.shape == x_big.shape
    assert mask_big.dtype == jnp.bool_
    assert bool(jnp.all(mask_big == (x_big > 0)))

    print("KERNEL_OK")
</pallas_src>

<mosaic_0001>
module attributes {stable_mosaic.version = 11 : i64} {
  func.func @_predicate_kernel(%arg0: i32, %arg1: memref<512x1024xf32, #tpu.memory_space<vmem>>, %arg2: memref<512x1024xi32, #tpu.memory_space<vmem>>) attributes {dimension_semantics = [#tpu.dimension_semantics<parallel>], iteration_bounds = array<i64: 2>, scalar_prefetch = 0 : i64, scratch_operands = 0 : i64, tpu.core_type = #tpu.core_type<tc>, window_params = [{transform_indices = @transform_0, window_bounds = array<i64: 512, 1024>}, {transform_indices = @transform_1, window_bounds = array<i64: 512, 1024>}]} {
    %c0 = arith.constant 0 : index
    %c0_0 = arith.constant 0 : index
    %0 = vector.load %arg1[%c0, %c0_0] : memref<512x1024xf32, #tpu.memory_space<vmem>>, vector<512x1024xf32>
    %cst = arith.constant 0.000000e+00 : f32
    %1 = vector.broadcast %cst : f32 to vector<512x1024xf32>
    %2 = arith.cmpf ogt, %0, %1 : vector<512x1024xf32>
    %c0_1 = arith.constant 0 : index
    %c0_2 = arith.constant 0 : index
    %3 = vector.load %arg2[%c0_1, %c0_2] : memref<512x1024xi32, #tpu.memory_space<vmem>>, vector<512x1024xi32>
    %4 = arith.extui %2 : vector<512x1024xi1> to vector<512x1024xi32>
    %cst_3 = arith.constant dense<0> : vector<512x1024xi32>
    %5 = arith.cmpi ne, %3, %cst_3 : vector<512x1024xi32>
    tpu.vector_store %arg2[%c0_1, %c0_2], %4 {strides = array<i32>} : memref<512x1024xi32, #tpu.memory_space<vmem>>, vector<512x1024xi32>,
    return
  }
  func.func @transform_0(%arg0: i32) -> (i32, i32) {
    %c0_i32 = arith.constant 0 : i32
    %c0_i32_0 = arith.constant 0 : i32
    return %arg0, %c0_i32 : i32, i32
  }
  func.func @transform_1(%arg0: i32) -> (i32, i32) {
    %c0_i32 = arith.constant 0 : i32
    %c0_i32_0 = arith.constant 0 : i32
    return %arg0, %c0_i32 : i32, i32
  }
}

</mosaic_0001>

<bundles_post_ra>
// kernel: tpu_custom_call.1
= control target key start
LH: loop header
LB: loop body
LE: loop exit
PB: predicated region body
PF: predicated region fallthrough
CT: control target
= control target key end

     0   :  { %6 = vsyncpa [#allocation3], 0  ;;  %s4031_s0 = inlined_call_operand.hbm [shape: f32[1024,1024], index: 0, kind: input, shape index: {}]   ;;  %s4032_s1 = inlined_call_operand.vmem [shape: s32[1024,1024], index: 1, kind: output, shape index: {}]  }
   0x1   :  { %8 = vsyncpa [#allocation3 + $0x1], 0  ;;  %s2400_s6 = smov 0   ;;  %s2402_s7 = smov 0  }
   0x2   :  { %s2404_s8 = smov 0   ;;  %s2406_s9 = smov 0  }
   0x3 LB: > { %s2261_s10 = sadd.s32 4294967295, %s2385_s9   ;;  %s2420_s11 = sadd.s32 1, %s2385_s9   ;;  %s2385_s9 = sphi %s2406_s9, %s4039_s9   ;;  %s2381_s8 = sphi %s2404_s8, %s4038_s8   ;;  %s2377_s7 = sphi %s2402_s7, %s4037_s7   ;;  %s2373_s6 = sphi %s2400_s6, %s4036_s6  }
   0x4   : > { %s18_s12 = ssub.s32 %s2385_s9, %s2420_s11  ;;  %s21_s13 = sadd.s32 1, %s2381_s8 }
   0x5   : > { %p19_p0 = scmp.eq.s32.totalorder %s18_s12, 0  ;;  %p28_p1 = scmp.ne.s32.totalorder %s2381_s8, %s2377_s7 }
   0x6   : > { %p29_p2 = scmp.eq.s32.totalorder %s2385_s9, 0  ;;  %p34_p3 = scmp.ne.s32.totalorder %s2377_s7, %s2373_s6 }
   0x7   : > { %s2430_s14 = scalar_select %p19_p0, %s2381_s8, %s21_s13  }
   0x8   : > { %p2432_p4 = por %p29_p2, %p28_p1  ;;  %p35_p5 = scmp.eq.s32.totalorder %s2261_s10, 0 }
   0x9   : > { %p2285_p6 = scmp.lt.s32.totalorder %s2385_s9, 2  ;;  %s84_s17 = sand.u32 1, %s2381_s8  }
   0xa   : > { %p2439_p7 = por %p35_p5, %p34_p3  ;;  %s2265_s18 = sshll.u32 %s84_s17, 12 }
   0xb   : > { %s2277_s19 = sshll.u32 %s2385_s9, 12  ;;  %s88_s23 = scalar_lea.vmem [#allocation2], %s2265_s18 }
   0xc   : > { %s94_s22 = scalar_lea.hbm %s4031_s0, %s2277_s19  ;;  %s97_s24 = sshll.u32 %s88_s23, 4  ;;  %s98_s24 = int_to_ptr.vmem [resolvable:$true] %s97_s24 }
   0xd   : > { %s95_s25 = sshll.u32 %s94_s22, 4  ;;  %p2450_p8 = pnand %p2285_p6, %p2432_p4  ;;  %s96_s25 = int_to_ptr.hbm [resolvable:$true] %s95_s25 }
   0xe   : > { %p2269_p9 = scmp.ge.s32.totalorder %s2385_s9, 1  ;;  %s85_s27 = scalar_lea.sflag [#allocation3], %s84_s17 }
   0xf   : > { %s2321_s28 = sshra.s32 %s96_s25, 4  ;;  %p2325_p11 = pneg %p2450_p8  ;;  %s2322_s28 = int_to_ptr.hbm [resolvable:$true] %s2321_s28 }
  0x10   : > { %s2323_s29 = scalar_lea.hbm %s2322_s28, 4096  ;;  %s2328_s3 = scalar_lea.hbm %s4031_s0, 8192 }
  0x11   : > { %p2324_p10 = scmp.ne.s32.totalorder %s2322_s28, %s2323_s29  ;;  %p2329_p0 = scmp.lt.s32.totalorder %s2322_s28, %s4031_s0 }
  0x12   : > { %p2330_p1 = scmp.lt.s32.totalorder %s2328_s3, %s2323_s29 }
  0x13   : > { %p2326_p12 = pnand %p2325_p11, %p2324_p10 }
  0x14   : > { %p2331_p2 = por %p2330_p1, %p2329_p0 }
  0x15   : > { %p2327_p13 = pneg %p2326_p12 }
  0x17   : > { %p2332_p3 = pnand %p2331_p2, %p2327_p13 }
  0x19   : > { %2335 = shalt.err (!%p2332_p3)
}
  0x1a   : > { %s2387_s6 = smov 1024   ;;  %s2388_s12 = smov 64  }
  0x1b   : > { %2284 = dma.hbm_to_vmem [thread:$0]  (!%p2450_p8), %s96_s25, 65536, %s98_s24, %s85_s27, %s2387_s6, %s2387_s6, %s2388_s12  }
  0x1c   : > { %p105_p4 = scmp.lt.s32.totalorder %s2385_s9, 3 }
  0x1e   : > { %p106_p5 = pnand %p2269_p9, %p105_p4 }
  0x1f   : > { %s111_s13 = sand.u32 (!%p106_p5), 1, %s2377_s7  }
  0x20   : > { %109 = sbr.rel (%p106_p5) target bundleno = 556 (0x22c), region = 24  ;;  %s2270_s15 = sshll.u32 (!%p106_p5), %s111_s13, 12 }
  0x21   : > { %s112_s17 = scalar_lea.sflag (!%p106_p5), [#allocation3], %s111_s13  ;;  %s2469_s18 = scalar_lea.vmem (!%p106_p5), [#allocation2], %s2270_s15 }
  0x25   : > { %2368 = dma.done.wait (%p2439_p7), %s112_s17, 65536  }
  0x26   : > { %2370 = vsyncadd (%p2439_p7), %s112_s17, 4294901760  ;;  %s2271_s19 = sshll.u32 %s2261_s10, 6  ;;  %v144_v0 = vld [vmem:[%s2469_s18] sm:$0xff]  ;;  %v145_v1 = vld [vmem:[%s2469_s18 + $0x8] sm:$0xff]  ;;  %v2389_v6 = vmov 0  }
  0x27   : > { %p138_p6 = scmp.lt.s32.totalorder %s2271_s19, 127  ;;  %v146_v2 = vld [vmem:[%s2469_s18 + $0x10] sm:$0xff]  ;;  %vm656_vm0 = vcmp.gt.f32.partialorder %v144_v0, 0.0  ;;  %vm657_vm1 = vcmp.gt.f32.partialorder %v145_v1, 0.0  ;;  %v147_v3 = vld [vmem:[%s2469_s18 + $0x18] sm:$0xff]  ;;  %v148_v4 = vld [vmem:[%s2469_s18 + $0x20] sm:$0xff] }
  0x28   : > { %vm658_vm2 = vcmp.gt.f32.partialorder %v146_v2, 0.0  ;;  %v149_v5 = vld [vmem:[%s2469_s18 + $0x28] sm:$0xff]  ;;  %v1168_v7 = vsel %vm656_vm0, 1, %v2389_v6  ;;  %v1169_v8 = vsel %vm657_vm1, 1, %v2389_v6  ;;  %vm659_vm3 = vcmp.gt.f32.partialorder %v147_v3, 0.0  ;;  %v150_v10 = vld [vmem:[%s2469_s18 + $0x30] sm:$0xff] }
  0x29   : > { %s4041_s19 = smov (!%p138_p6, %s2271_s19), 127  ;;  %v1170_v9 = vsel %vm658_vm2, 1, %v2389_v6  ;;  %v151_v11 = vld [vmem:[%s2469_s18 + $0x38] sm:$0xff]  ;;  %v1171_v12 = vsel %vm659_vm3, 1, %v2389_v6  ;;  %vm660_vm4 = vcmp.gt.f32.partialorder %v148_v4, 0.0  ;;  %vm661_vm5 = vcmp.gt.f32.partialorder %v149_v5, 0.0 }
  0x2a   : > { %s2278_s20 = sshll.u32 %s4041_s19, 6  ;;  %vm662_vm6 = vcmp.gt.f32.partialorder %v150_v10, 0.0  ;;  %v152_v13 = vld [vmem:[%s2469_s18 + $0x40] sm:$0xff]  ;;  %v153_v14 = vld [vmem:[%s2469_s18 + $0x48] sm:$0xff]  ;;  %v1172_v15 = vsel %vm660_vm4, 1, %v2389_v6  ;;  %vm663_vm7 = vcmp.gt.f32.partialorder %v151_v11, 0.0 }
  0x2b   : > { %s2480_s23 = scalar_lea.vmem %s4032_s1, %s2278_s20  ;;  %v154_v16 = vld [vmem:[%s2469_s18 + $0x50] sm:$0xff]  ;;  %v1173_v17 = vsel %vm661_vm5, 1, %v2389_v6  ;;  %vm664_vm8 = vcmp.gt.f32.partialorder %v152_v13, 0.0  ;;  %v155_v18 = vld [vmem:[%s2469_s18 + $0x58] sm:$0xff]  ;;  %v1174_v19 = vsel %vm662_vm6, 1, %v2389_v6  ;;  %vm665_vm9 = vcmp.gt.f32.partialorder %v153_v14, 0.0 }
  0x2c   : > { %1680 = vst [vmem:[%s2480_s23] sm:$0xff] %v1168_v7  ;;  %v156_v20 = vld [vmem:[%s2469_s18 + $0x60] sm:$0xff]  ;;  %v1175_v21 = vsel %vm663_vm7, 1, %v2389_v6  ;;  %vm666_vm10 = vcmp.gt.f32.partialorder %v154_v16, 0.0  ;;  %v157_v22 = vld [vmem:[%s2469_s18 + $0x68] sm:$0xff]  ;;  %v1176_v23 = vsel %vm664_vm8, 1, %v2389_v6  ;;  %vm667_vm11 = vcmp.gt.f32.partialorder %v155_v18, 0.0 }
  0x2d   : > { %1681 = vst [vmem:[%s2480_s23 + $0x8] sm:$0xff] %v1169_v8  ;;  %v158_v24 = vld [vmem:[%s2469_s18 + $0x70] sm:$0xff]  ;;  %v1177_v25 = vsel %vm665_vm9, 1, %v2389_v6  ;;  %vm668_vm12 = vcmp.gt.f32.partialorder %v156_v20, 0.0  ;;  %v159_v26 = vld [vmem:[%s2469_s18 + $0x78] sm:$0xff]  ;;  %v1178_v27 = vsel %vm666_vm10, 1, %v2389_v6 }
  0x2e   : > { %1682 = vst [vmem:[%s2480_s23 + $0x10] sm:$0xff] %v1170_v9  ;;  %vm669_vm13 = vcmp.gt.f32.partialorder %v157_v22, 0.0  ;;  %v160_v28 = vld [vmem:[%s2469_s18 + $0x80] sm:$0xff]  ;;  %v1179_v29 = vsel %vm667_vm11, 1, %v2389_v6  ;;  %vm670_vm14 = vcmp.gt.f32.partialorder %v158_v24, 0.0  ;;  %v161_v30 = vld [vmem:[%s2469_s18 + $0x88] sm:$0xff] }
  0x2f   : > { %1683 = vst [vmem:[%s2480_s23 + $0x18] sm:$0xff] %v1171_v12  ;;  %v1180_v31 = vsel %vm668_vm12, 1, %v2389_v6  ;;  %vm671_vm15 = vcmp.gt.f32.partialorder %v159_v26, 0.0  ;;  %v162_v32 = vld [vmem:[%s2469_s18 + $0x90] sm:$0xff]  ;;  %v1181_v33 = vsel %vm669_vm13, 1, %v2389_v6  ;;  %vm672_vm0 = vcmp.gt.f32.partialorder %v160_v28, 0.0 }
  0x30   : > { %1684 = vst [vmem:[%s2480_s23 + $0x20] sm:$0xff] %v1172_v15  ;;  %v163_v34 = vld [vmem:[%s2469_s18 + $0x98] sm:$0xff]  ;;  %v1182_v35 = vsel %vm670_vm14, 1, %v2389_v6  ;;  %vm673_vm1 = vcmp.gt.f32.partialorder %v161_v30, 0.0  ;;  %v164_v36 = vld [vmem:[%s2469_s18 + $0xa0] sm:$0xff]  ;;  %v1183_v37 = vsel %vm671_vm15, 1, %v2389_v6 }
  0x31   : > { %1685 = vst [vmem:[%s2480_s23 + $0x28] sm:$0xff] %v1173_v17  ;;  %vm674_vm2 = vcmp.gt.f32.partialorder %v162_v32, 0.0  ;;  %v165_v38 = vld [vmem:[%s2469_s18 + $0xa8] sm:$0xff]  ;;  %v1184_v39 = vsel %vm672_vm0, 1, %v2389_v6  ;;  %vm675_vm3 = vcmp.gt.f32.partialorder %v163_v34, 0.0  ;;  %v166_v40 = vld [vmem:[%s2469_s18 + $0xb0] sm:$0xff] }
  0x32   : > { %1686 = vst [vmem:[%s2480_s23 + $0x30] sm:$0xff] %v1174_v19  ;;  %v1185_v41 = vsel %vm673_vm1, 1, %v2389_v6  ;;  %vm676_vm4 = vcmp.gt.f32.partialorder %v164_v36, 0.0  ;;  %v167_v42 = vld [vmem:[%s2469_s18 + $0xb8] sm:$0xff]  ;;  %v1186_v43 = vsel %vm674_vm2, 1, %v2389_v6  ;;  %vm677_vm5 = vcmp.gt.f32.partialorder %v165_v38, 0.0 }
  0x33   : > { %1687 = vst [vmem:[%s2480_s23 + $0x38] sm:$0xff] %v1175_v21  ;;  %v168_v44 = vld [vmem:[%s2469_s18 + $0xc0] sm:$0xff]  ;;  %v1187_v45 = vsel %vm675_vm3, 1, %v2389_v6  ;;  %vm678_vm6 = vcmp.gt.f32.partialorder %v166_v40, 0.0  ;;  %v169_v46 = vld [vmem:[%s2469_s18 + $0xc8] sm:$0xff]  ;;  %v1188_v47 = vsel %vm676_vm4, 1, %v2389_v6 }
  0x34   : > { %1688 = vst [vmem:[%s2480_s23 + $0x40] sm:$0xff] %v1176_v23  ;;  %vm679_vm7 = vcmp.gt.f32.partialorder %v167_v42, 0.0  ;;  %v170_v48 = vld [vmem:[%s2469_s18 + $0xd0] sm:$0xff]  ;;  %v1189_v49 = vsel %vm677_vm5, 1, %v2389_v6  ;;  %vm680_vm8 = vcmp.gt.f32.partialorder %v168_v44, 0.0  ;;  %v171_v50 = vld [vmem:[%s2469_s18 + $0xd8] sm:$0xff] }
  0x35   : > { %1689 = vst [vmem:[%s2480_s23 + $0x48] sm:$0xff] %v1177_v25  ;;  %v1190_v51 = vsel %vm678_vm6, 1, %v2389_v6  ;;  %vm681_vm9 = vcmp.gt.f32.partialorder %v169_v46, 0.0  ;;  %v172_v52 = vld [vmem:[%s2469_s18 + $0xe0] sm:$0xff]  ;;  %v1191_v53 = vsel %vm679_vm7, 1, %v2389_v6  ;;  %vm682_vm10 = vcmp.gt.f32.partialorder %v170_v48, 0.0 }
  0x36   : > { %1690 = vst [vmem:[%s2480_s23 + $0x50] sm:$0xff] %v1178_v27  ;;  %v173_v54 = vld [vmem:[%s2469_s18 + $0xe8] sm:$0xff]  ;;  %v1192_v55 = vsel %vm680_vm8, 1, %v2389_v6  ;;  %vm683_vm11 = vcmp.gt.f32.partialorder %v171_v50, 0.0  ;;  %v174_v56 = vld [vmem:[%s2469_s18 + $0xf0] sm:$0xff]  ;;  %v1193_v57 = vsel %vm681_vm9, 1, %v2389_v6 }
  0x37   : > { %1691 = vst [vmem:[%s2480_s23 + $0x58] sm:$0xff] %v1179_v29  ;;  %vm684_vm12 = vcmp.gt.f32.partialorder %v172_v52, 0.0  ;;  %v175_v58 = vld [vmem:[%s2469_s18 + $0xf8] sm:$0xff]  ;;  %v1194_v59 = vsel %vm682_vm10, 1, %v2389_v6  ;;  %vm685_vm13 = vcmp.gt.f32.partialorder %v173_v54, 0.0  ;;  %v176_v60 = vld [vmem:[%s2469_s18 + $0x100] sm:$0xff] }
  0x38   : > { %1692 = vst [vmem:[%s2480_s23 + $0x60] sm:$0xff] %v1180_v31  ;;  %v1195_v61 = vsel %vm683_vm11, 1, %v2389_v6  ;;  %vm686_vm14 = vcmp.gt.f32.partialorder %v174_v56, 0.0  ;;  %v177_v62 = vld [vmem:[%s2469_s18 + $0x108] sm:$0xff]  ;;  %v1196_v63 = vsel %vm684_vm12, 1, %v2389_v6  ;;  %vm687_vm15 = vcmp.gt.f32.partialorder %v175_v58, 0.0 }
  0x39   : > { %1693 = vst [vmem:[%s2480_s23 + $0x68] sm:$0xff] %v1181_v33  ;;  %v178_v0 = vld [vmem:[%s2469_s18 + $0x110] sm:$0xff]  ;;  %v1197_v1 = vsel %vm685_vm13, 1, %v2389_v6  ;;  %vm688_vm0 = vcmp.gt.f32.partialorder %v176_v60, 0.0  ;;  %v179_v2 = vld [vmem:[%s2469_s18 + $0x118] sm:$0xff]  ;;  %v1198_v3 = vsel %vm686_vm14, 1, %v2389_v6 }
  0x3a   : > { %1694 = vst [vmem:[%s2480_s23 + $0x70] sm:$0xff] %v1182_v35  ;;  %vm689_vm1 = vcmp.gt.f32.partialorder %v177_v62, 0.0  ;;  %v180_v4 = vld [vmem:[%s2469_s18 + $0x120] sm:$0xff]  ;;  %v1199_v5 = vsel %vm687_vm15, 1, %v2389_v6  ;;  %vm690_vm2 = vcmp.gt.f32.partialorder %v178_v0, 0.0  ;;  %v181_v7 = vld [vmem:[%s2469_s18 + $0x128] sm:$0xff] }
  0x3b   : > { %1695 = vst [vmem:[%s2480_s23 + $0x78] sm:$0xff] %v1183_v37  ;;  %v1200_v8 = vsel %vm688_vm0, 1, %v2389_v6  ;;  %vm691_vm3 = vcmp.gt.f32.partialorder %v179_v2, 0.0  ;;  %v182_v9 = vld [vmem:[%s2469_s18 + $0x130] sm:$0xff]  ;;  %v1201_v10 = vsel %vm689_vm1, 1, %v2389_v6  ;;  %vm692_vm4 = vcmp.gt.f32.partialorder %v180_v4, 0.0 }
  0x3c   : > { %1696 = vst [vmem:[%s2480_s23 + $0x80] sm:$0xff] %v1184_v39  ;;  %v183_v11 = vld [vmem:[%s2469_s18 + $0x138] sm:$0xff]  ;;  %v1202_v12 = vsel %vm690_vm2, 1, %v2389_v6  ;;  %vm693_vm5 = vcmp.gt.f32.partialorder %v181_v7, 0.0  ;;  %v184_v13 = vld [vmem:[%s2469_s18 + $0x140] sm:$0xff]  ;;  %v1203_v14 = vsel %vm691_vm3, 1, %v2389_v6 }
  0x3d   : > { %1697 = vst [vmem:[%s2480_s23 + $0x88] sm:$0xff] %v1185_v41  ;;  %vm694_vm6 = vcmp.gt.f32.partialorder %v182_v9, 0.0  ;;  %v185_v15 = vld [vmem:[%s2469_s18 + $0x148] sm:$0xff]  ;;  %v1204_v16 = vsel %vm692_vm4, 1, %v2389_v6  ;;  %vm695_vm7 = vcmp.gt.f32.partialorder %v183_v11, 0.0  ;;  %v186_v17 = vld [vmem:[%s2469_s18 + $0x150] sm:$0xff] }
  0x3e   : > { %1698 = vst [vmem:[%s2480_s23 + $0x90] sm:$0xff] %v1186_v43  ;;  %v1205_v18 = vsel %vm693_vm5, 1, %v2389_v6  ;;  %vm696_vm8 = vcmp.gt.f32.partialorder %v184_v13, 0.0  ;;  %v187_v19 = vld [vmem:[%s2469_s18 + $0x158] sm:$0xff]  ;;  %v1206_v20 = vsel %vm694_vm6, 1, %v2389_v6  ;;  %vm697_vm9 = vcmp.gt.f32.partialorder %v185_v15, 0.0 }
  0x3f   : > { %1699 = vst [vmem:[%s2480_s23 + $0x98] sm:$0xff] %v1187_v45  ;;  %v188_v21 = vld [vmem:[%s2469_s18 + $0x160] sm:$0xff]  ;;  %v1207_v22 = vsel %vm695_vm7, 1, %v2389_v6  ;;  %vm698_vm10 = vcmp.gt.f32.partialorder %v186_v17, 0.0  ;;  %v189_v23 = vld [vmem:[%s2469_s18 + $0x168] sm:$0xff]  ;;  %v1208_v24 = vsel %vm696_vm8, 1, %v2389_v6 }
  0x40   : > { %1700 = vst [vmem:[%s2480_s23 + $0xa0] sm:$0xff] %v1188_v47  ;;  %vm699_vm11 = vcmp.gt.f32.partialorder %v187_v19, 0.0  ;;  %v190_v25 = vld [vmem:[%s2469_s18 + $0x170] sm:$0xff]  ;;  %v1209_v26 = vsel %vm697_vm9, 1, %v2389_v6  ;;  %vm700_vm12 = vcmp.gt.f32.partialorder %v188_v21, 0.0  ;;  %v191_v27 = vld [vmem:[%s2469_s18 + $0x178] sm:$0xff] }
  0x41   : > { %1701 = vst [vmem:[%s2480_s23 + $0xa8] sm:$0xff] %v1189_v49  ;;  %v1210_v28 = vsel %vm698_vm10, 1, %v2389_v6  ;;  %vm701_vm13 = vcmp.gt.f32.partialorder %v189_v23, 0.0  ;;  %v192_v29 = vld [vmem:[%s2469_s18 + $0x180] sm:$0xff]  ;;  %v1211_v30 = vsel %vm699_vm11, 1, %v2389_v6  ;;  %vm702_vm14 = vcmp.gt.f32.partialorder %v190_v25, 0.0 }
  0x42   : > { %1702 = vst [vmem:[%s2480_s23 + $0xb0] sm:$0xff] %v1190_v51  ;;  %v193_v31 = vld [vmem:[%s2469_s18 + $0x188] sm:$0xff]  ;;  %v1212_v32 = vsel %vm700_vm12, 1, %v2389_v6  ;;  %vm703_vm15 = vcmp.gt.f32.partialorder %v191_v27, 0.0  ;;  %v194_v33 = vld [vmem:[%s2469_s18 + $0x190] sm:$0xff]  ;;  %v1213_v34 = vsel %vm701_vm13, 1, %v2389_v6 }
  0x43   : > { %1703 = vst [vmem:[%s2480_s23 + $0xb8] sm:$0xff] %v1191_v53  ;;  %vm704_vm0 = vcmp.gt.f32.partialorder %v192_v29, 0.0  ;;  %v195_v35 = vld [vmem:[%s2469_s18 + $0x198] sm:$0xff]  ;;  %v1214_v36 = vsel %vm702_vm14, 1, %v2389_v6  ;;  %vm705_vm1 = vcmp.gt.f32.partialorder %v193_v31, 0.0  ;;  %v196_v37 = vld [vmem:[%s2469_s18 + $0x1a0] sm:$0xff] }
  0x44   : > { %1704 = vst [vmem:[%s2480_s23 + $0xc0] sm:$0xff] %v1192_v55  ;;  %v1215_v38 = vsel %vm703_vm15, 1, %v2389_v6  ;;  %vm706_vm2 = vcmp.gt.f32.partialorder %v194_v33, 0.0  ;;  %v197_v39 = vld [vmem:[%s2469_s18 + $0x1a8] sm:$0xff]  ;;  %v1216_v40 = vsel %vm704_vm0, 1, %v2389_v6  ;;  %vm707_vm3 = vcmp.gt.f32.partialorder %v195_v35, 0.0 }
  0x45   : > { %1705 = vst [vmem:[%s2480_s23 + $0xc8] sm:$0xff] %v1193_v57  ;;  %v198_v41 = vld [vmem:[%s2469_s18 + $0x1b0] sm:$0xff]  ;;  %v1217_v42 = vsel %vm705_vm1, 1, %v2389_v6  ;;  %vm708_vm4 = vcmp.gt.f32.partialorder %v196_v37, 0.0  ;;  %v199_v43 = vld [vmem:[%s2469_s18 + $0x1b8] sm:$0xff]  ;;  %v1218_v44 = vsel %vm706_vm2, 1, %v2389_v6 }
  0x46   : > { %1706 = vst [vmem:[%s2480_s23 + $0xd0] sm:$0xff] %v1194_v59  ;;  %vm709_vm5 = vcmp.gt.f32.partialorder %v197_v39, 0.0  ;;  %v200_v45 = vld [vmem:[%s2469_s18 + $0x1c0] sm:$0xff]  ;;  %v1219_v46 = vsel %vm707_vm3, 1, %v2389_v6  ;;  %vm710_vm6 = vcmp.gt.f32.partialorder %v198_v41, 0.0  ;;  %v201_v47 = vld [vmem:[%s2469_s18 + $0x1c8] sm:$0xff] }
  0x47   : > { %1707 = vst [vmem:[%s2480_s23 + $0xd8] sm:$0xff] %v1195_v61  ;;  %v1220_v48 = vsel %vm708_vm4, 1, %v2389_v6  ;;  %vm711_vm7 = vcmp.gt.f32.partialorder %v199_v43, 0.0  ;;  %v202_v49 = vld [vmem:[%s2469_s18 + $0x1d0] sm:$0xff]  ;;  %v1221_v50 = vsel %vm709_vm5, 1, %v2389_v6  ;;  %vm712_vm8 = vcmp.gt.f32.partialorder %v200_v45, 0.0 }
  0x48   : > { %1708 = vst [vmem:[%s2480_s23 + $0xe0] sm:$0xff] %v1196_v63  ;;  %v203_v51 = vld [vmem:[%s2469_s18 + $0x1d8] sm:$0xff]  ;;  %v1222_v52 = vsel %vm710_vm6, 1, %v2389_v6  ;;  %vm713_vm9 = vcmp.gt.f32.partialorder %v201_v47, 0.0  ;;  %v204_v53 = vld [vmem:[%s2469_s18 + $0x1e0] sm:$0xff]  ;;  %v1223_v54 = vsel %vm711_vm7, 1, %v2389_v6 }
  0x49   : > { %1709 = vst [vmem:[%s2480_s23 + $0xe8] sm:$0xff] %v1197_v1  ;;  %vm714_vm10 = vcmp.gt.f32.partialorder %v202_v49, 0.0  ;;  %v205_v55 = vld [vmem:[%s2469_s18 + $0x1e8] sm:$0xff]  ;;  %v1224_v56 = vsel %vm712_vm8, 1, %v2389_v6  ;;  %vm715_vm11 = vcmp.gt.f32.partialorder %v203_v51, 0.0  ;;  %v206_v57 = vld [vmem:[%s2469_s18 + $0x1f0] sm:$0xff] }
  0x4a   : > { %1710 = vst [vmem:[%s2480_s23 + $0xf0] sm:$0xff] %v1198_v3  ;;  %v1225_v58 = vsel %vm713_vm9, 1, %v2389_v6  ;;  %vm716_vm12 = vcmp.gt.f32.partialorder %v204_v53, 0.0  ;;  %v207_v59 = vld [vmem:[%s2469_s18 + $0x1f8] sm:$0xff]  ;;  %v1226_v60 = vsel %vm714_vm10, 1, %v2389_v6  ;;  %vm717_vm13 = vcmp.gt.f32.partialorder %v205_v55, 0.0 }
  0x4b   : > { %1711 = vst [vmem:[%s2480_s23 + $0xf8] sm:$0xff] %v1199_v5  ;;  %v208_v61 = vld [vmem:[%s2469_s18 + $0x200] sm:$0xff]  ;;  %v1227_v62 = vsel %vm715_vm11, 1, %v2389_v6  ;;  %vm718_vm14 = vcmp.gt.f32.partialorder %v206_v57, 0.0  ;;  %v209_v63 = vld [vmem:[%s2469_s18 + $0x208] sm:$0xff]  ;;  %v1228_v0 = vsel %vm716_vm12, 1, %v2389_v6 }
  0x4c   : > { %1712 = vst [vmem:[%s2480_s23 + $0x100] sm:$0xff] %v1200_v8  ;;  %vm719_vm15 = vcmp.gt.f32.partialorder %v207_v59, 0.0  ;;  %v210_v1 = vld [vmem:[%s2469_s18 + $0x210] sm:$0xff]  ;;  %v1229_v2 = vsel %vm717_vm13, 1, %v2389_v6  ;;  %vm720_vm0 = vcmp.gt.f32.partialorder %v208_v61, 0.0  ;;  %v211_v3 = vld [vmem:[%s2469_s18 + $0x218] sm:$0xff] }
  0x4d   : > { %1713 = vst [vmem:[%s2480_s23 + $0x108] sm:$0xff] %v1201_v10  ;;  %v1230_v4 = vsel %vm718_vm14, 1, %v2389_v6  ;;  %vm721_vm1 = vcmp.gt.f32.partialorder %v209_v63, 0.0  ;;  %v212_v5 = vld [vmem:[%s2469_s18 + $0x220] sm:$0xff]  ;;  %v1231_v7 = vsel %vm719_vm15, 1, %v2389_v6  ;;  %vm722_vm2 = vcmp.gt.f32.partialorder %v210_v1, 0.0 }
  0x4e   : > { %1714 = vst [vmem:[%s2480_s23 + $0x110] sm:$0xff] %v1202_v12  ;;  %v213_v8 = vld [vmem:[%s2469_s18 + $0x228] sm:$0xff]  ;;  %v1232_v9 = vsel %vm720_vm0, 1, %v2389_v6  ;;  %vm723_vm3 = vcmp.gt.f32.partialorder %v211_v3, 0.0  ;;  %v214_v10 = vld [vmem:[%s2469_s18 + $0x230] sm:$0xff]  ;;  %v1233_v11 = vsel %vm721_vm1, 1, %v2389_v6 }
  0x4f   : > { %1715 = vst [vmem:[%s2480_s23 + $0x118] sm:$0xff] %v1203_v14  ;;  %vm724_vm4 = vcmp.gt.f32.partialorder %v212_v5, 0.0  ;;  %v215_v12 = vld [vmem:[%s2469_s18 + $0x238] sm:$0xff]  ;;  %v1234_v13 = vsel %vm722_vm2, 1, %v2389_v6  ;;  %vm725_vm5 = vcmp.gt.f32.partialorder %v213_v8, 0.0  ;;  %v216_v14 = vld [vmem:[%s2469_s18 + $0x240] sm:$0xff] }
  0x50   : > { %1716 = vst [vmem:[%s2480_s23 + $0x120] sm:$0xff] %v1204_v16  ;;  %v1235_v15 = vsel %vm723_vm3, 1, %v2389_v6  ;;  %vm726_vm6 = vcmp.gt.f32.partialorder %v214_v10, 0.0  ;;  %v217_v16 = vld [vmem:[%s2469_s18 + $0x248] sm:$0xff]  ;;  %v1236_v17 = vsel %vm724_vm4, 1, %v2389_v6  ;;  %vm727_vm7 = vcmp.gt.f32.partialorder %v215_v12, 0.0 }
  0x51   : > { %1717 = vst [vmem:[%s2480_s23 + $0x128] sm:$0xff] %v1205_v18  ;;  %v218_v18 = vld [vmem:[%s2469_s18 + $0x250] sm:$0xff]  ;;  %v1237_v19 = vsel %vm725_vm5, 1, %v2389_v6  ;;  %vm728_vm8 = vcmp.gt.f32.partialorder %v216_v14, 0.0  ;;  %v1238_v21 = vsel %vm726_vm6, 1, %v2389_v6  ;;  %vm729_vm9 = vcmp.gt.f32.partialorder %v217_v16, 0.0 }
  0x52   : > { %1718 = vst [vmem:[%s2480_s23 + $0x130] sm:$0xff] %v1206_v20  ;;  %v219_v20 = vld [vmem:[%s2469_s18 + $0x258] sm:$0xff]  ;;  %v1239_v23 = vsel %vm727_vm7, 1, %v2389_v6  ;;  %vm730_vm10 = vcmp.gt.f32.partialorder %v218_v18, 0.0  ;;  %v1240_v25 = vsel %vm728_vm8, 1, %v2389_v6  ;;  %v1241_v27 = vsel %vm729_vm9, 1, %v2389_v6 }
  0x53   : > { %1719 = vst [vmem:[%s2480_s23 + $0x138] sm:$0xff] %v1207_v22  ;;  %v220_v22 = vld [vmem:[%s2469_s18 + $0x260] sm:$0xff]  ;;  %vm731_vm11 = vcmp.gt.f32.partialorder %v219_v20, 0.0  ;;  %v1242_v29 = vsel %vm730_vm10, 1, %v2389_v6 }
  0x54   : > { %1720 = vst [vmem:[%s2480_s23 + $0x140] sm:$0xff] %v1208_v24  ;;  %v221_v24 = vld [vmem:[%s2469_s18 + $0x268] sm:$0xff]  ;;  %vm732_vm12 = vcmp.gt.f32.partialorder %v220_v22, 0.0  ;;  %v1243_v31 = vsel %vm731_vm11, 1, %v2389_v6 }
  0x55   : > { %1721 = vst [vmem:[%s2480_s23 + $0x148] sm:$0xff] %v1209_v26  ;;  %v222_v26 = vld [vmem:[%s2469_s18 + $0x270] sm:$0xff]  ;;  %vm733_vm13 = vcmp.gt.f32.partialorder %v221_v24, 0.0  ;;  %v1244_v33 = vsel %vm732_vm12, 1, %v2389_v6 }
  0x56   : > { %1722 = vst [vmem:[%s2480_s23 + $0x150] sm:$0xff] %v1210_v28  ;;  %v223_v28 = vld [vmem:[%s2469_s18 + $0x278] sm:$0xff]  ;;  %vm734_vm14 = vcmp.gt.f32.partialorder %v222_v26, 0.0  ;;  %v1245_v35 = vsel %vm733_vm13, 1, %v2389_v6 }
  0x57   : > { %1723 = vst [vmem:[%s2480_s23 + $0x158] sm:$0xff] %v1211_v30  ;;  %v224_v30 = vld [vmem:[%s2469_s18 + $0x280] sm:$0xff]  ;;  %vm735_vm15 = vcmp.gt.f32.partialorder %v223_v28, 0.0  ;;  %v1246_v37 = vsel %vm734_vm14, 1, %v2389_v6 }
  0x58   : > { %1724 = vst [vmem:[%s2480_s23 + $0x160] sm:$0xff] %v1212_v32  ;;  %v225_v32 = vld [vmem:[%s2469_s18 + $0x288] sm:$0xff]  ;;  %vm736_vm0 = vcmp.gt.f32.partialorder %v224_v30, 0.0  ;;  %v1247_v39 = vsel %vm735_vm15, 1, %v2389_v6 }
  0x59   : > { %1725 = vst [vmem:[%s2480_s23 + $0x168] sm:$0xff] %v1213_v34  ;;  %v226_v34 = vld [vmem:[%s2469_s18 + $0x290] sm:$0xff]  ;;  %vm737_vm1 = vcmp.gt.f32.partialorder %v225_v32, 0.0  ;;  %v1248_v41 = vsel %vm736_vm0, 1, %v2389_v6 }
  0x5a   : > { %1726 = vst [vmem:[%s2480_s23 + $0x170] sm:$0xff] %v1214_v36  ;;  %v227_v36 = vld [vmem:[%s2469_s18 + $0x298] sm:$0xff]  ;;  %vm738_vm2 = vcmp.gt.f32.partialorder %v226_v34, 0.0  ;;  %v1249_v43 = vsel %vm737_vm1, 1, %v2389_v6 }
  0x5b   : > { %1727 = vst [vmem:[%s2480_s23 + $0x178] sm:$0xff] %v1215_v38  ;;  %v228_v38 = vld [vmem:[%s2469_s18 + $0x2a0] sm:$0xff]  ;;  %vm739_vm3 = vcmp.gt.f32.partialorder %v227_v36, 0.0  ;;  %v1250_v45 = vsel %vm738_vm2, 1, %v2389_v6 }
  0x5c   : > { %1728 = vst [vmem:[%s2480_s23 + $0x180] sm:$0xff] %v1216_v40  ;;  %v229_v40 = vld [vmem:[%s2469_s18 + $0x2a8] sm:$0xff]  ;;  %vm740_vm4 = vcmp.gt.f32.partialorder %v228_v38, 0.0  ;;  %v1251_v47 = vsel %vm739_vm3, 1, %v2389_v6 }
  0x5d   : > { %1729 = vst [vmem:[%s2480_s23 + $0x188] sm:$0xff] %v1217_v42  ;;  %v230_v42 = vld [vmem:[%s2469_s18 + $0x2b0] sm:$0xff]  ;;  %vm741_vm5 = vcmp.gt.f32.partialorder %v229_v40, 0.0  ;;  %v1252_v49 = vsel %vm740_vm4, 1, %v2389_v6 }
  0x5e   : > { %1730 = vst [vmem:[%s2480_s23 + $0x190] sm:$0xff] %v1218_v44  ;;  %v231_v44 = vld [vmem:[%s2469_s18 + $0x2b8] sm:$0xff]  ;;  %vm742_vm6 = vcmp.gt.f32.partialorder %v230_v42, 0.0  ;;  %v1253_v51 = vsel %vm741_vm5, 1, %v2389_v6 }
  0x5f   : > { %1731 = vst [vmem:[%s2480_s23 + $0x198] sm:$0xff] %v1219_v46  ;;  %v232_v46 = vld [vmem:[%s2469_s18 + $0x2c0] sm:$0xff]  ;;  %vm743_vm7 = vcmp.gt.f32.partialorder %v231_v44, 0.0  ;;  %v1254_v53 = vsel %vm742_vm6, 1, %v2389_v6 }
  0x60   : > { %1732 = vst [vmem:[%s2480_s23 + $0x1a0] sm:$0xff] %v1220_v48  ;;  %v233_v48 = vld [vmem:[%s2469_s18 + $0x2c8] sm:$0xff]  ;;  %vm744_vm8 = vcmp.gt.f32.partialorder %v232_v46, 0.0  ;;  %v1255_v55 = vsel %vm743_vm7, 1, %v2389_v6 }
  0x61   : > { %1733 = vst [vmem:[%s2480_s23 + $0x1a8] sm:$0xff] %v1221_v50  ;;  %v234_v50 = vld [vmem:[%s2469_s18 + $0x2d0] sm:$0xff]  ;;  %vm745_vm9 = vcmp.gt.f32.partialorder %v233_v48, 0.0  ;;  %v1256_v57 = vsel %vm744_vm8, 1, %v2389_v6 }
  0x62   : > { %1734 = vst [vmem:[%s2480_s23 + $0x1b0] sm:$0xff] %v1222_v52  ;;  %v235_v52 = vld [vmem:[%s2469_s18 + $0x2d8] sm:$0xff]  ;;  %vm746_vm10 = vcmp.gt.f32.partialorder %v234_v50, 0.0  ;;  %v1257_v59 = vsel %vm745_vm9, 1, %v2389_v6 }
  0x63   : > { %1735 = vst [vmem:[%s2480_s23 + $0x1b8] sm:$0xff] %v1223_v54  ;;  %v236_v54 = vld [vmem:[%s2469_s18 + $0x2e0] sm:$0xff]  ;;  %vm747_vm11 = vcmp.gt.f32.partialorder %v235_v52, 0.0  ;;  %v1258_v61 = vsel %vm746_vm10, 1, %v2389_v6 }
  0x64   : > { %1736 = vst [vmem:[%s2480_s23 + $0x1c0] sm:$0xff] %v1224_v56  ;;  %v237_v56 = vld [vmem:[%s2469_s18 + $0x2e8] sm:$0xff]  ;;  %vm748_vm12 = vcmp.gt.f32.partialorder %v236_v54, 0.0  ;;  %v1259_v63 = vsel %vm747_vm11, 1, %v2389_v6 }
  0x65   : > { %1737 = vst [vmem:[%s2480_s23 + $0x1c8] sm:$0xff] %v1225_v58  ;;  %v238_v58 = vld [vmem:[%s2469_s18 + $0x2f0] sm:$0xff]  ;;  %vm749_vm13 = vcmp.gt.f32.partialorder %v237_v56, 0.0  ;;  %v1260_v1 = vsel %vm748_vm12, 1, %v2389_v6 }
  0x66   : > { %1738 = vst [vmem:[%s2480_s23 + $0x1d0] sm:$0xff] %v1226_v60  ;;  %v239_v60 = vld [vmem:[%s2469_s18 + $0x2f8] sm:$0xff]  ;;  %vm750_vm14 = vcmp.gt.f32.partialorder %v238_v58, 0.0  ;;  %v1261_v3 = vsel %vm749_vm13, 1, %v2389_v6 }
  0x67   : > { %1739 = vst [vmem:[%s2480_s23 + $0x1d8] sm:$0xff] %v1227_v62  ;;  %v240_v62 = vld [vmem:[%s2469_s18 + $0x300] sm:$0xff]  ;;  %vm751_vm15 = vcmp.gt.f32.partialorder %v239_v60, 0.0  ;;  %v1262_v5 = vsel %vm750_vm14, 1, %v2389_v6 }
  0x68   : > { %1740 = vst [vmem:[%s2480_s23 + $0x1e0] sm:$0xff] %v1228_v0  ;;  %v241_v0 = vld [vmem:[%s2469_s18 + $0x308] sm:$0xff]  ;;  %vm752_vm0 = vcmp.gt.f32.partialorder %v240_v62, 0.0  ;;  %v1263_v8 = vsel %vm751_vm15, 1, %v2389_v6 }
  0x69   : > { %1741 = vst [vmem:[%s2480_s23 + $0x1e8] sm:$0xff] %v1229_v2  ;;  %v242_v2 = vld [vmem:[%s2469_s18 + $0x310] sm:$0xff]  ;;  %vm753_vm1 = vcmp.gt.f32.partialorder %v241_v0, 0.0  ;;  %v1264_v10 = vsel %vm752_vm0, 1, %v2389_v6 }
  0x6a   : > { %1742 = vst [vmem:[%s2480_s23 + $0x1f0] sm:$0xff] %v1230_v4  ;;  %v243_v4 = vld [vmem:[%s2469_s18 + $0x318] sm:$0xff]  ;;  %vm754_vm2 = vcmp.gt.f32.partialorder %v242_v2, 0.0  ;;  %v1265_v12 = vsel %vm753_vm1, 1, %v2389_v6 }
  0x6b   : > { %1743 = vst [vmem:[%s2480_s23 + $0x1f8] sm:$0xff] %v1231_v7  ;;  %v244_v7 = vld [vmem:[%s2469_s18 + $0x320] sm:$0xff]  ;;  %vm755_vm3 = vcmp.gt.f32.partialorder %v243_v4, 0.0  ;;  %v1266_v14 = vsel %vm754_vm2, 1, %v2389_v6 }
  0x6c   : > { %1744 = vst [vmem:[%s2480_s23 + $0x200] sm:$0xff] %v1232_v9  ;;  %v245_v9 = vld [vmem:[%s2469_s18 + $0x328] sm:$0xff]  ;;  %vm756_vm4 = vcmp.gt.f32.partialorder %v244_v7, 0.0  ;;  %v1267_v16 = vsel %vm755_vm3, 1, %v2389_v6 }
  0x6d   : > { %1745 = vst [vmem:[%s2480_s23 + $0x208] sm:$0xff] %v1233_v11  ;;  %v246_v11 = vld [vmem:[%s2469_s18 + $0x330] sm:$0xff]  ;;  %vm757_vm5 = vcmp.gt.f32.partialorder %v245_v9, 0.0  ;;  %v1268_v18 = vsel %vm756_vm4, 1, %v2389_v6 }
  0x6e   : > { %1746 = vst [vmem:[%s2480_s23 + $0x210] sm:$0xff] %v1234_v13  ;;  %v247_v13 = vld [vmem:[%s2469_s18 + $0x338] sm:$0xff]  ;;  %vm758_vm6 = vcmp.gt.f32.partialorder %v246_v11, 0.0  ;;  %v1269_v20 = vsel %vm757_vm5, 1, %v2389_v6 }
  0x6f   : > { %1747 = vst [vmem:[%s2480_s23 + $0x218] sm:$0xff] %v1235_v15  ;;  %v248_v15 = vld [vmem:[%s2469_s18 + $0x340] sm:$0xff]  ;;  %vm759_vm7 = vcmp.gt.f32.partialorder %v247_v13, 0.0  ;;  %v1270_v22 = vsel %vm758_vm6, 1, %v2389_v6 }
  0x70   : > { %1748 = vst [vmem:[%s2480_s23 + $0x220] sm:$0xff] %v1236_v17  ;;  %v249_v17 = vld [vmem:[%s2469_s18 + $0x348] sm:$0xff]  ;;  %vm760_vm8 = vcmp.gt.f32.partialorder %v248_v15, 0.0  ;;  %v1271_v24 = vsel %vm759_vm7, 1, %v2389_v6 }
  0x71   : > { %1749 = vst [vmem:[%s2480_s23 + $0x228] sm:$0xff] %v1237_v19  ;;  %v250_v19 = vld [vmem:[%s2469_s18 + $0x350] sm:$0xff]  ;;  %vm761_vm9 = vcmp.gt.f32.partialorder %v249_v17, 0.0  ;;  %v1272_v26 = vsel %vm760_vm8, 1, %v2389_v6 }
  0x72   : > { %1750 = vst [vmem:[%s2480_s23 + $0x230] sm:$0xff] %v1238_v21  ;;  %v251_v21 = vld [vmem:[%s2469_s18 + $0x358] sm:$0xff]  ;;  %vm762_vm10 = vcmp.gt.f32.partialorder %v250_v19, 0.0  ;;  %v1273_v28 = vsel %vm761_vm9, 1, %v2389_v6 }
  0x73   : > { %1751 = vst [vmem:[%s2480_s23 + $0x238] sm:$0xff] %v1239_v23  ;;  %v252_v23 = vld [vmem:[%s2469_s18 + $0x360] sm:$0xff]  ;;  %vm763_vm11 = vcmp.gt.f32.partialorder %v251_v21, 0.0  ;;  %v1274_v30 = vsel %vm762_vm10, 1, %v2389_v6 }
  0x74   : > { %1752 = vst [vmem:[%s2480_s23 + $0x240] sm:$0xff] %v1240_v25  ;;  %v253_v25 = vld [vmem:[%s2469_s18 + $0x368] sm:$0xff]  ;;  %vm764_vm12 = vcmp.gt.f32.partialorder %v252_v23, 0.0  ;;  %v1275_v32 = vsel %vm763_vm11, 1, %v2389_v6 }
  0x75   : > { %1753 = vst [vmem:[%s2480_s23 + $0x248] sm:$0xff] %v1241_v27  ;;  %v254_v27 = vld [vmem:[%s2469_s18 + $0x370] sm:$0xff]  ;;  %vm765_vm13 = vcmp.gt.f32.partialorder %v253_v25, 0.0  ;;  %v1276_v34 = vsel %vm764_vm12, 1, %v2389_v6 }
  0x76   : > { %1754 = vst [vmem:[%s2480_s23 + $0x250] sm:$0xff] %v1242_v29  ;;  %v255_v29 = vld [vmem:[%s2469_s18 + $0x378] sm:$0xff]  ;;  %vm766_vm14 = vcmp.gt.f32.partialorder %v254_v27, 0.0  ;;  %v1277_v36 = vsel %vm765_vm13, 1, %v2389_v6 }
  0x77   : > { %1755 = vst [vmem:[%s2480_s23 + $0x258] sm:$0xff] %v1243_v31  ;;  %v256_v31 = vld [vmem:[%s2469_s18 + $0x380] sm:$0xff]  ;;  %vm767_vm15 = vcmp.gt.f32.partialorder %v255_v29, 0.0  ;;  %v1278_v38 = vsel %vm766_vm14, 1, %v2389_v6 }
  0x78   : > { %1756 = vst [vmem:[%s2480_s23 + $0x260] sm:$0xff] %v1244_v33  ;;  %v257_v33 = vld [vmem:[%s2469_s18 + $0x388] sm:$0xff]  ;;  %vm768_vm0 = vcmp.gt.f32.partialorder %v256_v31, 0.0  ;;  %v1279_v40 = vsel %vm767_vm15, 1, %v2389_v6 }
  0x79   : > { %1757 = vst [vmem:[%s2480_s23 + $0x268] sm:$0xff] %v1245_v35  ;;  %v258_v35 = vld [vmem:[%s2469_s18 + $0x390] sm:$0xff]  ;;  %vm769_vm1 = vcmp.gt.f32.partialorder %v257_v33, 0.0  ;;  %v1280_v42 = vsel %vm768_vm0, 1, %v2389_v6 }
  0x7a   : > { %1758 = vst [vmem:[%s2480_s23 + $0x270] sm:$0xff] %v1246_v37  ;;  %v259_v37 = vld [vmem:[%s2469_s18 + $0x398] sm:$0xff]  ;;  %vm770_vm2 = vcmp.gt.f32.partialorder %v258_v35, 0.0  ;;  %v1281_v44 = vsel %vm769_vm1, 1, %v2389_v6 }
  0x7b   : > { %1759 = vst [vmem:[%s2480_s23 + $0x278] sm:$0xff] %v1247_v39  ;;  %v260_v39 = vld [vmem:[%s2469_s18 + $0x3a0] sm:$0xff]  ;;  %vm771_vm3 = vcmp.gt.f32.partialorder %v259_v37, 0.0  ;;  %v1282_v46 = vsel %vm770_vm2, 1, %v2389_v6 }
  0x7c   : > { %1760 = vst [vmem:[%s2480_s23 + $0x280] sm:$0xff] %v1248_v41  ;;  %v261_v41 = vld [vmem:[%s2469_s18 + $0x3a8] sm:$0xff]  ;;  %vm772_vm4 = vcmp.gt.f32.partialorder %v260_v39, 0.0  ;;  %v1283_v48 = vsel %vm771_vm3, 1, %v2389_v6 }
  0x7d   : > { %1761 = vst [vmem:[%s2480_s23 + $0x288] sm:$0xff] %v1249_v43  ;;  %v262_v43 = vld [vmem:[%s2469_s18 + $0x3b0] sm:$0xff]  ;;  %vm773_vm5 = vcmp.gt.f32.partialorder %v261_v41, 0.0  ;;  %v1284_v50 = vsel %vm772_vm4, 1, %v2389_v6 }
  0x7e   : > { %1762 = vst [vmem:[%s2480_s23 + $0x290] sm:$0xff] %v1250_v45  ;;  %v263_v45 = vld [vmem:[%s2469_s18 + $0x3b8] sm:$0xff]  ;;  %vm774_vm6 = vcmp.gt.f32.partialorder %v262_v43, 0.0  ;;  %v1285_v52 = vsel %vm773_vm5, 1, %v2389_v6 }
  0x7f   : > { %1763 = vst [vmem:[%s2480_s23 + $0x298] sm:$0xff] %v1251_v47  ;;  %v264_v47 = vld [vmem:[%s2469_s18 + $0x3c0] sm:$0xff]  ;;  %vm775_vm7 = vcmp.gt.f32.partialorder %v263_v45, 0.0  ;;  %v1286_v54 = vsel %vm774_vm6, 1, %v2389_v6 }
  0x80   : > { %1764 = vst [vmem:[%s2480_s23 + $0x2a0] sm:$0xff] %v1252_v49  ;;  %v265_v49 = vld [vmem:[%s2469_s18 + $0x3c8] sm:$0xff]  ;;  %vm776_vm8 = vcmp.gt.f32.partialorder %v264_v47, 0.0  ;;  %v1287_v56 = vsel %vm775_vm7, 1, %v2389_v6 }
  0x81   : > { %1765 = vst [vmem:[%s2480_s23 + $0x2a8] sm:$0xff] %v1253_v51  ;;  %v266_v51 = vld [vmem:[%s2469_s18 + $0x3d0] sm:$0xff]  ;;  %vm777_vm9 = vcmp.gt.f32.partialorder %v265_v49, 0.0  ;;  %v1288_v58 = vsel %vm776_vm8, 1, %v2389_v6 }
  0x82   : > { %1766 = vst [vmem:[%s2480_s23 + $0x2b0] sm:$0xff] %v1254_v53  ;;  %v267_v53 = vld [vmem:[%s2469_s18 + $0x3d8] sm:$0xff]  ;;  %vm778_vm10 = vcmp.gt.f32.partialorder %v266_v51, 0.0  ;;  %v1289_v60 = vsel %vm777_vm9, 1, %v2389_v6 }
  0x83   : > { %1767 = vst [vmem:[%s2480_s23 + $0x2b8] sm:$0xff] %v1255_v55  ;;  %v268_v55 = vld [vmem:[%s2469_s18 + $0x3e0] sm:$0xff]  ;;  %vm779_vm11 = vcmp.gt.f32.partialorder %v267_v53, 0.0  ;;  %v1290_v62 = vsel %vm778_vm10, 1, %v2389_v6 }
  0x84   : > { %1768 = vst [vmem:[%s2480_s23 + $0x2c0] sm:$0xff] %v1256_v57  ;;  %v269_v57 = vld [vmem:[%s2469_s18 + $0x3e8] sm:$0xff]  ;;  %vm780_vm12 = vcmp.gt.f32.partialorder %v268_v55, 0.0  ;;  %v1291_v0 = vsel %vm779_vm11, 1, %v2389_v6 }
  0x85   : > { %1769 = vst [vmem:[%s2480_s23 + $0x2c8] sm:$0xff] %v1257_v59  ;;  %v270_v59 = vld [vmem:[%s2469_s18 + $0x3f0] sm:$0xff]  ;;  %vm781_vm13 = vcmp.gt.f32.partialorder %v269_v57, 0.0  ;;  %v1292_v2 = vsel %vm780_vm12, 1, %v2389_v6 }
  0x86   : > { %1770 = vst [vmem:[%s2480_s23 + $0x2d0] sm:$0xff] %v1258_v61  ;;  %v271_v61 = vld [vmem:[%s2469_s18 + $0x3f8] sm:$0xff]  ;;  %vm782_vm14 = vcmp.gt.f32.partialorder %v270_v59, 0.0  ;;  %v1293_v4 = vsel %vm781_vm13, 1, %v2389_v6 }
  0x87   : > { %1771 = vst [vmem:[%s2480_s23 + $0x2d8] sm:$0xff] %v1259_v63  ;;  %v272_v63 = vld [vmem:[%s2469_s18 + $0x400] sm:$0xff]  ;;  %vm783_vm15 = vcmp.gt.f32.partialorder %v271_v61, 0.0  ;;  %v1294_v7 = vsel %vm782_vm14, 1, %v2389_v6 }
  0x88   : > { %1772 = vst [vmem:[%s2480_s23 + $0x2e0] sm:$0xff] %v1260_v1  ;;  %v273_v1 = vld [vmem:[%s2469_s18 + $0x408] sm:$0xff]  ;;  %vm784_vm0 = vcmp.gt.f32.partialorder %v272_v63, 0.0  ;;  %v1295_v9 = vsel %vm783_vm15, 1, %v2389_v6 }
  0x89   : > { %1773 = vst [vmem:[%s2480_s23 + $0x2e8] sm:$0xff] %v1261_v3  ;;  %v274_v3 = vld [vmem:[%s2469_s18 + $0x410] sm:$0xff]  ;;  %vm785_vm1 = vcmp.gt.f32.partialorder %v273_v1, 0.0  ;;  %v1296_v11 = vsel %vm784_vm0, 1, %v2389_v6 }
  0x8a   : > { %1774 = vst [vmem:[%s2480_s23 + $0x2f0] sm:$0xff] %v1262_v5  ;;  %v275_v5 = vld [vmem:[%s2469_s18 + $0x418] sm:$0xff]  ;;  %vm786_vm2 = vcmp.gt.f32.partialorder %v274_v3, 0.0  ;;  %v1297_v13 = vsel %vm785_vm1, 1, %v2389_v6 }
  0x8b   : > { %1775 = vst [vmem:[%s2480_s23 + $0x2f8] sm:$0xff] %v1263_v8  ;;  %v276_v8 = vld [vmem:[%s2469_s18 + $0x420] sm:$0xff]  ;;  %vm787_vm3 = vcmp.gt.f32.partialorder %v275_v5, 0.0  ;;  %v1298_v15 = vsel %vm786_vm2, 1, %v2389_v6 }
  0x8c   : > { %1776 = vst [vmem:[%s2480_s23 + $0x300] sm:$0xff] %v1264_v10  ;;  %v277_v10 = vld [vmem:[%s2469_s18 + $0x428] sm:$0xff]  ;;  %vm788_vm4 = vcmp.gt.f32.partialorder %v276_v8, 0.0  ;;  %v1299_v17 = vsel %vm787_vm3, 1, %v2389_v6 }
  0x8d   : > { %1777 = vst [vmem:[%s2480_s23 + $0x308] sm:$0xff] %v1265_v12  ;;  %v278_v12 = vld [vmem:[%s2469_s18 + $0x430] sm:$0xff]  ;;  %vm789_vm5 = vcmp.gt.f32.partialorder %v277_v10, 0.0  ;;  %v1300_v19 = vsel %vm788_vm4, 1, %v2389_v6 }
  0x8e   : > { %1778 = vst [vmem:[%s2480_s23 + $0x310] sm:$0xff] %v1266_v14  ;;  %v279_v14 = vld [vmem:[%s2469_s18 + $0x438] sm:$0xff]  ;;  %vm790_vm6 = vcmp.gt.f32.partialorder %v278_v12, 0.0  ;;  %v1301_v21 = vsel %vm789_vm5, 1, %v2389_v6 }
  0x8f   : > { %1779 = vst [vmem:[%s2480_s23 + $0x318] sm:$0xff] %v1267_v16  ;;  %v280_v16 = vld [vmem:[%s2469_s18 + $0x440] sm:$0xff]  ;;  %vm791_vm7 = vcmp.gt.f32.partialorder %v279_v14, 0.0  ;;  %v1302_v23 = vsel %vm790_vm6, 1, %v2389_v6 }
  0x90   : > { %1780 = vst [vmem:[%s2480_s23 + $0x320] sm:$0xff] %v1268_v18  ;;  %v281_v18 = vld [vmem:[%s2469_s18 + $0x448] sm:$0xff]  ;;  %vm792_vm8 = vcmp.gt.f32.partialorder %v280_v16, 0.0  ;;  %v1303_v25 = vsel %vm791_vm7, 1, %v2389_v6 }
  0x91   : > { %1781 = vst [vmem:[%s2480_s23 + $0x328] sm:$0xff] %v1269_v20  ;;  %v282_v20 = vld [vmem:[%s2469_s18 + $0x450] sm:$0xff]  ;;  %vm793_vm9 = vcmp.gt.f32.partialorder %v281_v18, 0.0  ;;  %v1304_v27 = vsel %vm792_vm8, 1, %v2389_v6 }
  0x92   : > { %1782 = vst [vmem:[%s2480_s23 + $0x330] sm:$0xff] %v1270_v22  ;;  %v283_v22 = vld [vmem:[%s2469_s18 + $0x458] sm:$0xff]  ;;  %vm794_vm10 = vcmp.gt.f32.partialorder %v282_v20, 0.0  ;;  %v1305_v29 = vsel %vm793_vm9, 1, %v2389_v6 }
  0x93   : > { %1783 = vst [vmem:[%s2480_s23 + $0x338] sm:$0xff] %v1271_v24  ;;  %v284_v24 = vld [vmem:[%s2469_s18 + $0x460] sm:$0xff]  ;;  %vm795_vm11 = vcmp.gt.f32.partialorder %v283_v22, 0.0  ;;  %v1306_v31 = vsel %vm794_vm10, 1, %v2389_v6 }
  0x94   : > { %1784 = vst [vmem:[%s2480_s23 + $0x340] sm:$0xff] %v1272_v26  ;;  %v285_v26 = vld [vmem:[%s2469_s18 + $0x468] sm:$0xff]  ;;  %vm796_vm12 = vcmp.gt.f32.partialorder %v284_v24, 0.0  ;;  %v1307_v33 = vsel %vm795_vm11, 1, %v2389_v6 }
  0x95   : > { %1785 = vst [vmem:[%s2480_s23 + $0x348] sm:$0xff] %v1273_v28  ;;  %v286_v28 = vld [vmem:[%s2469_s18 + $0x470] sm:$0xff]  ;;  %vm797_vm13 = vcmp.gt.f32.partialorder %v285_v26, 0.0  ;;  %v1308_v35 = vsel %vm796_vm12, 1, %v2389_v6 }
  0x96   : > { %1786 = vst [vmem:[%s2480_s23 + $0x350] sm:$0xff] %v1274_v30  ;;  %v287_v30 = vld [vmem:[%s2469_s18 + $0x478] sm:$0xff]  ;;  %vm798_vm14 = vcmp.gt.f32.partialorder %v286_v28, 0.0  ;;  %v1309_v37 = vsel %vm797_vm13, 1, %v2389_v6 }
  0x97   : > { %1787 = vst [vmem:[%s2480_s23 + $0x358] sm:$0xff] %v1275_v32  ;;  %v288_v32 = vld [vmem:[%s2469_s18 + $0x480] sm:$0xff]  ;;  %vm799_vm15 = vcmp.gt.f32.partialorder %v287_v30, 0.0  ;;  %v1310_v39 = vsel %vm798_vm14, 1, %v2389_v6 }
  0x98   : > { %1788 = vst [vmem:[%s2480_s23 + $0x360] sm:$0xff] %v1276_v34  ;;  %v289_v34 = vld [vmem:[%s2469_s18 + $0x488] sm:$0xff]  ;;  %vm800_vm0 = vcmp.gt.f32.partialorder %v288_v32, 0.0  ;;  %v1311_v41 = vsel %vm799_vm15, 1, %v2389_v6 }
  0x99   : > { %1789 = vst [vmem:[%s2480_s23 + $0x368] sm:$0xff] %v1277_v36  ;;  %v290_v36 = vld [vmem:[%s2469_s18 + $0x490] sm:$0xff]  ;;  %vm801_vm1 = vcmp.gt.f32.partialorder %v289_v34, 0.0  ;;  %v1312_v43 = vsel %vm800_vm0, 1, %v2389_v6 }
  0x9a   : > { %1790 = vst [vmem:[%s2480_s23 + $0x370] sm:$0xff] %v1278_v38  ;;  %v291_v38 = vld [vmem:[%s2469_s18 + $0x498] sm:$0xff]  ;;  %vm802_vm2 = vcmp.gt.f32.partialorder %v290_v36, 0.0  ;;  %v1313_v45 = vsel %vm801_vm1, 1, %v2389_v6 }
  0x9b   : > { %1791 = vst [vmem:[%s2480_s23 + $0x378] sm:$0xff] %v1279_v40  ;;  %v292_v40 = vld [vmem:[%s2469_s18 + $0x4a0] sm:$0xff]  ;;  %vm803_vm3 = vcmp.gt.f32.partialorder %v291_v38, 0.0  ;;  %v1314_v47 = vsel %vm802_vm2, 1, %v2389_v6 }
  0x9c   : > { %1792 = vst [vmem:[%s2480_s23 + $0x380] sm:$0xff] %v1280_v42  ;;  %v293_v42 = vld [vmem:[%s2469_s18 + $0x4a8] sm:$0xff]  ;;  %vm804_vm4 = vcmp.gt.f32.partialorder %v292_v40, 0.0  ;;  %v1315_v49 = vsel %vm803_vm3, 1, %v2389_v6 }
  0x9d   : > { %1793 = vst [vmem:[%s2480_s23 + $0x388] sm:$0xff] %v1281_v44  ;;  %v294_v44 = vld [vmem:[%s2469_s18 + $0x4b0] sm:$0xff]  ;;  %vm805_vm5 = vcmp.gt.f32.partialorder %v293_v42, 0.0  ;;  %v1316_v51 = vsel %vm804_vm4, 1, %v2389_v6 }
  0x9e   : > { %1794 = vst [vmem:[%s2480_s23 + $0x390] sm:$0xff] %v1282_v46  ;;  %v295_v46 = vld [vmem:[%s2469_s18 + $0x4b8] sm:$0xff]  ;;  %vm806_vm6 = vcmp.gt.f32.partialorder %v294_v44, 0.0  ;;  %v1317_v53 = vsel %vm805_vm5, 1, %v2389_v6 }
  0x9f   : > { %1795 = vst [vmem:[%s2480_s23 + $0x398] sm:$0xff] %v1283_v48  ;;  %v296_v48 = vld [vmem:[%s2469_s18 + $0x4c0] sm:$0xff]  ;;  %vm807_vm7 = vcmp.gt.f32.partialorder %v295_v46, 0.0  ;;  %v1318_v55 = vsel %vm806_vm6, 1, %v2389_v6 }
  0xa0   : > { %1796 = vst [vmem:[%s2480_s23 + $0x3a0] sm:$0xff] %v1284_v50  ;;  %v297_v50 = vld [vmem:[%s2469_s18 + $0x4c8] sm:$0xff]  ;;  %vm808_vm8 = vcmp.gt.f32.partialorder %v296_v48, 0.0  ;;  %v1319_v57 = vsel %vm807_vm7, 1, %v2389_v6 }
  0xa1   : > { %1797 = vst [vmem:[%s2480_s23 + $0x3a8] sm:$0xff] %v1285_v52  ;;  %v298_v52 = vld [vmem:[%s2469_s18 + $0x4d0] sm:$0xff]  ;;  %vm809_vm9 = vcmp.gt.f32.partialorder %v297_v50, 0.0  ;;  %v1320_v59 = vsel %vm808_vm8, 1, %v2389_v6 }
  0xa2   : > { %1798 = vst [vmem:[%s2480_s23 + $0x3b0] sm:$0xff] %v1286_v54  ;;  %v299_v54 = vld [vmem:[%s2469_s18 + $0x4d8] sm:$0xff]  ;;  %vm810_vm10 = vcmp.gt.f32.partialorder %v298_v52, 0.0  ;;  %v1321_v61 = vsel %vm809_vm9, 1, %v2389_v6 }
  0xa3   : > { %1799 = vst [vmem:[%s2480_s23 + $0x3b8] sm:$0xff] %v1287_v56  ;;  %v300_v56 = vld [vmem:[%s2469_s18 + $0x4e0] sm:$0xff]  ;;  %vm811_vm11 = vcmp.gt.f32.partialorder %v299_v54, 0.0  ;;  %v1322_v63 = vsel %vm810_vm10, 1, %v2389_v6 }
  0xa4   : > { %1800 = vst [vmem:[%s2480_s23 + $0x3c0] sm:$0xff] %v1288_v58  ;;  %v301_v58 = vld [vmem:[%s2469_s18 + $0x4e8] sm:$0xff]  ;;  %vm812_vm12 = vcmp.gt.f32.partialorder %v300_v56, 0.0  ;;  %v1323_v1 = vsel %vm811_vm11, 1, %v2389_v6 }
  0xa5   : > { %1801 = vst [vmem:[%s2480_s23 + $0x3c8] sm:$0xff] %v1289_v60  ;;  %v302_v60 = vld [vmem:[%s2469_s18 + $0x4f0] sm:$0xff]  ;;  %vm813_vm13 = vcmp.gt.f32.partialorder %v301_v58, 0.0  ;;  %v1324_v3 = vsel %vm812_vm12, 1, %v2389_v6 }
  0xa6   : > { %1802 = vst [vmem:[%s2480_s23 + $0x3d0] sm:$0xff] %v1290_v62  ;;  %v303_v62 = vld [vmem:[%s2469_s18 + $0x4f8] sm:$0xff]  ;;  %vm814_vm14 = vcmp.gt.f32.partialorder %v302_v60, 0.0  ;;  %v1325_v5 = vsel %vm813_vm13, 1, %v2389_v6 }
  0xa7   : > { %1803 = vst [vmem:[%s2480_s23 + $0x3d8] sm:$0xff] %v1291_v0  ;;  %v304_v0 = vld [vmem:[%s2469_s18 + $0x500] sm:$0xff]  ;;  %vm815_vm15 = vcmp.gt.f32.partialorder %v303_v62, 0.0  ;;  %v1326_v8 = vsel %vm814_vm14, 1, %v2389_v6 }
  0xa8   : > { %1804 = vst [vmem:[%s2480_s23 + $0x3e0] sm:$0xff] %v1292_v2  ;;  %v305_v2 = vld [vmem:[%s2469_s18 + $0x508] sm:$0xff]  ;;  %vm816_vm0 = vcmp.gt.f32.partialorder %v304_v0, 0.0  ;;  %v1327_v10 = vsel %vm815_vm15, 1, %v2389_v6 }
  0xa9   : > { %1805 = vst [vmem:[%s2480_s23 + $0x3e8] sm:$0xff] %v1293_v4  ;;  %v306_v4 = vld [vmem:[%s2469_s18 + $0x510] sm:$0xff]  ;;  %vm817_vm1 = vcmp.gt.f32.partialorder %v305_v2, 0.0  ;;  %v1328_v12 = vsel %vm816_vm0, 1, %v2389_v6 }
  0xaa   : > { %1806 = vst [vmem:[%s2480_s23 + $0x3f0] sm:$0xff] %v1294_v7  ;;  %v307_v7 = vld [vmem:[%s2469_s18 + $0x518] sm:$0xff]  ;;  %vm818_vm2 = vcmp.gt.f32.partialorder %v306_v4, 0.0  ;;  %v1329_v14 = vsel %vm817_vm1, 1, %v2389_v6 }
  0xab   : > { %1807 = vst [vmem:[%s2480_s23 + $0x3f8] sm:$0xff] %v1295_v9  ;;  %v308_v9 = vld [vmem:[%s2469_s18 + $0x520] sm:$0xff]  ;;  %vm819_vm3 = vcmp.gt.f32.partialorder %v307_v7, 0.0  ;;  %v1330_v16 = vsel %vm818_vm2, 1, %v2389_v6 }
  0xac   : > { %1808 = vst [vmem:[%s2480_s23 + $0x400] sm:$0xff] %v1296_v11  ;;  %v309_v11 = vld [vmem:[%s2469_s18 + $0x528] sm:$0xff]  ;;  %vm820_vm4 = vcmp.gt.f32.partialorder %v308_v9, 0.0  ;;  %v1331_v18 = vsel %vm819_vm3, 1, %v2389_v6 }
  0xad   : > { %1809 = vst [vmem:[%s2480_s23 + $0x408] sm:$0xff] %v1297_v13  ;;  %v310_v13 = vld [vmem:[%s2469_s18 + $0x530] sm:$0xff]  ;;  %vm821_vm5 = vcmp.gt.f32.partialorder %v309_v11, 0.0  ;;  %v1332_v20 = vsel %vm820_vm4, 1, %v2389_v6 }
  0xae   : > { %1810 = vst [vmem:[%s2480_s23 + $0x410] sm:$0xff] %v1298_v15  ;;  %v311_v15 = vld [vmem:[%s2469_s18 + $0x538] sm:$0xff]  ;;  %vm822_vm6 = vcmp.gt.f32.partialorder %v310_v13, 0.0  ;;  %v1333_v22 = vsel %vm821_vm5, 1, %v2389_v6 }
  0xaf   : > { %1811 = vst [vmem:[%s2480_s23 + $0x418] sm:$0xff] %v1299_v17  ;;  %v312_v17 = vld [vmem:[%s2469_s18 + $0x540] sm:$0xff]  ;;  %vm823_vm7 = vcmp.gt.f32.partialorder %v311_v15, 0.0  ;;  %v1334_v24 = vsel %vm822_vm6, 1, %v2389_v6 }
  0xb0   : > { %1812 = vst [vmem:[%s2480_s23 + $0x420] sm:$0xff] %v1300_v19  ;;  %v313_v19 = vld [vmem:[%s2469_s18 + $0x548] sm:$0xff]  ;;  %vm824_vm8 = vcmp.gt.f32.partialorder %v312_v17, 0.0  ;;  %v1335_v26 = vsel %vm823_vm7, 1, %v2389_v6 }
  0xb1   : > { %1813 = vst [vmem:[%s2480_s23 + $0x428] sm:$0xff] %v1301_v21  ;;  %v314_v21 = vld [vmem:[%s2469_s18 + $0x550] sm:$0xff]  ;;  %vm825_vm9 = vcmp.gt.f32.partialorder %v313_v19, 0.0  ;;  %v1336_v28 = vsel %vm824_vm8, 1, %v2389_v6 }
  0xb2   : > { %1814 = vst [vmem:[%s2480_s23 + $0x430] sm:$0xff] %v1302_v23  ;;  %v315_v23 = vld [vmem:[%s2469_s18 + $0x558] sm:$0xff]  ;;  %vm826_vm10 = vcmp.gt.f32.partialorder %v314_v21, 0.0  ;;  %v1337_v30 = vsel %vm825_vm9, 1, %v2389_v6 }
  0xb3   : > { %1815 = vst [vmem:[%s2480_s23 + $0x438] sm:$0xff] %v1303_v25  ;;  %v316_v25 = vld [vmem:[%s2469_s18 + $0x560] sm:$0xff]  ;;  %vm827_vm11 = vcmp.gt.f32.partialorder %v315_v23, 0.0  ;;  %v1338_v32 = vsel %vm826_vm10, 1, %v2389_v6 }
  0xb4   : > { %1816 = vst [vmem:[%s2480_s23 + $0x440] sm:$0xff] %v1304_v27  ;;  %v317_v27 = vld [vmem:[%s2469_s18 + $0x568] sm:$0xff]  ;;  %vm828_vm12 = vcmp.gt.f32.partialorder %v316_v25, 0.0  ;;  %v1339_v34 = vsel %vm827_vm11, 1, %v2389_v6 }
  0xb5   : > { %1817 = vst [vmem:[%s2480_s23 + $0x448] sm:$0xff] %v1305_v29  ;;  %v318_v29 = vld [vmem:[%s2469_s18 + $0x570] sm:$0xff]  ;;  %vm829_vm13 = vcmp.gt.f32.partialorder %v317_v27, 0.0  ;;  %v1340_v36 = vsel %vm828_vm12, 1, %v2389_v6 }
  0xb6   : > { %1818 = vst [vmem:[%s2480_s23 + $0x450] sm:$0xff] %v1306_v31  ;;  %v319_v31 = vld [vmem:[%s2469_s18 + $0x578] sm:$0xff]  ;;  %vm830_vm14 = vcmp.gt.f32.partialorder %v318_v29, 0.0  ;;  %v1341_v38 = vsel %vm829_vm13, 1, %v2389_v6 }
  0xb7   : > { %1819 = vst [vmem:[%s2480_s23 + $0x458] sm:$0xff] %v1307_v33  ;;  %v320_v33 = vld [vmem:[%s2469_s18 + $0x580] sm:$0xff]  ;;  %vm831_vm15 = vcmp.gt.f32.partialorder %v319_v31, 0.0  ;;  %v1342_v40 = vsel %vm830_vm14, 1, %v2389_v6 }
  0xb8   : > { %1820 = vst [vmem:[%s2480_s23 + $0x460] sm:$0xff] %v1308_v35  ;;  %v321_v35 = vld [vmem:[%s2469_s18 + $0x588] sm:$0xff]  ;;  %vm832_vm0 = vcmp.gt.f32.partialorder %v320_v33, 0.0  ;;  %v1343_v42 = vsel %vm831_vm15, 1, %v2389_v6 }
  0xb9   : > { %1821 = vst [vmem:[%s2480_s23 + $0x468] sm:$0xff] %v1309_v37  ;;  %v322_v37 = vld [vmem:[%s2469_s18 + $0x590] sm:$0xff]  ;;  %vm833_vm1 = vcmp.gt.f32.partialorder %v321_v35, 0.0  ;;  %v1344_v44 = vsel %vm832_vm0, 1, %v2389_v6 }
  0xba   : > { %1822 = vst [vmem:[%s2480_s23 + $0x470] sm:$0xff] %v1310_v39  ;;  %v323_v39 = vld [vmem:[%s2469_s18 + $0x598] sm:$0xff]  ;;  %vm834_vm2 = vcmp.gt.f32.partialorder %v322_v37, 0.0  ;;  %v1345_v46 = vsel %vm833_vm1, 1, %v2389_v6 }
  0xbb   : > { %1823 = vst [vmem:[%s2480_s23 + $0x478] sm:$0xff] %v1311_v41  ;;  %v324_v41 = vld [vmem:[%s2469_s18 + $0x5a0] sm:$0xff]  ;;  %vm835_vm3 = vcmp.gt.f32.partialorder %v323_v39, 0.0  ;;  %v1346_v48 = vsel %vm834_vm2, 1, %v2389_v6 }
  0xbc   : > { %1824 = vst [vmem:[%s2480_s23 + $0x480] sm:$0xff] %v1312_v43  ;;  %v325_v43 = vld [vmem:[%s2469_s18 + $0x5a8] sm:$0xff]  ;;  %vm836_vm4 = vcmp.gt.f32.partialorder %v324_v41, 0.0  ;;  %v1347_v50 = vsel %vm835_vm3, 1, %v2389_v6 }
  0xbd   : > { %1825 = vst [vmem:[%s2480_s23 + $0x488] sm:$0xff] %v1313_v45  ;;  %v326_v45 = vld [vmem:[%s2469_s18 + $0x5b0] sm:$0xff]  ;;  %vm837_vm5 = vcmp.gt.f32.partialorder %v325_v43, 0.0  ;;  %v1348_v52 = vsel %vm836_vm4, 1, %v2389_v6 }
  0xbe   : > { %1826 = vst [vmem:[%s2480_s23 + $0x490] sm:$0xff] %v1314_v47  ;;  %v327_v47 = vld [vmem:[%s2469_s18 + $0x5b8] sm:$0xff]  ;;  %vm838_vm6 = vcmp.gt.f32.partialorder %v326_v45, 0.0  ;;  %v1349_v54 = vsel %vm837_vm5, 1, %v2389_v6 }
  0xbf   : > { %1827 = vst [vmem:[%s2480_s23 + $0x498] sm:$0xff] %v1315_v49  ;;  %v328_v49 = vld [vmem:[%s2469_s18 + $0x5c0] sm:$0xff]  ;;  %vm839_vm7 = vcmp.gt.f32.partialorder %v327_v47, 0.0  ;;  %v1350_v56 = vsel %vm838_vm6, 1, %v2389_v6 }
  0xc0   : > { %1828 = vst [vmem:[%s2480_s23 + $0x4a0] sm:$0xff] %v1316_v51  ;;  %v329_v51 = vld [vmem:[%s2469_s18 + $0x5c8] sm:$0xff]  ;;  %vm840_vm8 = vcmp.gt.f32.partialorder %v328_v49, 0.0  ;;  %v1351_v58 = vsel %vm839_vm7, 1, %v2389_v6 }
  0xc1   : > { %1829 = vst [vmem:[%s2480_s23 + $0x4a8] sm:$0xff] %v1317_v53  ;;  %v330_v53 = vld [vmem:[%s2469_s18 + $0x5d0] sm:$0xff]  ;;  %vm841_vm9 = vcmp.gt.f32.partialorder %v329_v51, 0.0  ;;  %v1352_v60 = vsel %vm840_vm8, 1, %v2389_v6 }
  0xc2   : > { %1830 = vst [vmem:[%s2480_s23 + $0x4b0] sm:$0xff] %v1318_v55  ;;  %v331_v55 = vld [vmem:[%s2469_s18 + $0x5d8] sm:$0xff]  ;;  %vm842_vm10 = vcmp.gt.f32.partialorder %v330_v53, 0.0  ;;  %v1353_v62 = vsel %vm841_vm9, 1, %v2389_v6 }
  0xc3   : > { %1831 = vst [vmem:[%s2480_s23 + $0x4b8] sm:$0xff] %v1319_v57  ;;  %v332_v57 = vld [vmem:[%s2469_s18 + $0x5e0] sm:$0xff]  ;;  %vm843_vm11 = vcmp.gt.f32.partialorder %v331_v55, 0.0  ;;  %v1354_v0 = vsel %vm842_vm10, 1, %v2389_v6 }
  0xc4   : > { %1832 = vst [vmem:[%s2480_s23 + $0x4c0] sm:$0xff] %v1320_v59  ;;  %v333_v59 = vld [vmem:[%s2469_s18 + $0x5e8] sm:$0xff]  ;;  %vm844_vm12 = vcmp.gt.f32.partialorder %v332_v57, 0.0  ;;  %v1355_v2 = vsel %vm843_vm11, 1, %v2389_v6 }
  0xc5   : > { %1833 = vst [vmem:[%s2480_s23 + $0x4c8] sm:$0xff] %v1321_v61  ;;  %v334_v61 = vld [vmem:[%s2469_s18 + $0x5f0] sm:$0xff]  ;;  %vm845_vm13 = vcmp.gt.f32.partialorder %v333_v59, 0.0  ;;  %v1356_v4 = vsel %vm844_vm12, 1, %v2389_v6 }
  0xc6   : > { %1834 = vst [vmem:[%s2480_s23 + $0x4d0] sm:$0xff] %v1322_v63  ;;  %v335_v63 = vld [vmem:[%s2469_s18 + $0x5f8] sm:$0xff]  ;;  %vm846_vm14 = vcmp.gt.f32.partialorder %v334_v61, 0.0  ;;  %v1357_v7 = vsel %vm845_vm13, 1, %v2389_v6 }
  0xc7   : > { %1835 = vst [vmem:[%s2480_s23 + $0x4d8] sm:$0xff] %v1323_v1  ;;  %v336_v1 = vld [vmem:[%s2469_s18 + $0x600] sm:$0xff]  ;;  %vm847_vm15 = vcmp.gt.f32.partialorder %v335_v63, 0.0  ;;  %v1358_v9 = vsel %vm846_vm14, 1, %v2389_v6 }
  0xc8   : > { %1836 = vst [vmem:[%s2480_s23 + $0x4e0] sm:$0xff] %v1324_v3  ;;  %v337_v3 = vld [vmem:[%s2469_s18 + $0x608] sm:$0xff]  ;;  %vm848_vm0 = vcmp.gt.f32.partialorder %v336_v1, 0.0  ;;  %v1359_v11 = vsel %vm847_vm15, 1, %v2389_v6 }
  0xc9   : > { %1837 = vst [vmem:[%s2480_s23 + $0x4e8] sm:$0xff] %v1325_v5  ;;  %v338_v5 = vld [vmem:[%s2469_s18 + $0x610] sm:$0xff]  ;;  %vm849_vm1 = vcmp.gt.f32.partialorder %v337_v3, 0.0  ;;  %v1360_v13 = vsel %vm848_vm0, 1, %v2389_v6 }
  0xca   : > { %1838 = vst [vmem:[%s2480_s23 + $0x4f0] sm:$0xff] %v1326_v8  ;;  %v339_v8 = vld [vmem:[%s2469_s18 + $0x618] sm:$0xff]  ;;  %vm850_vm2 = vcmp.gt.f32.partialorder %v338_v5, 0.0  ;;  %v1361_v15 = vsel %vm849_vm1, 1, %v2389_v6 }
  0xcb   : > { %1839 = vst [vmem:[%s2480_s23 + $0x4f8] sm:$0xff] %v1327_v10  ;;  %v340_v10 = vld [vmem:[%s2469_s18 + $0x620] sm:$0xff]  ;;  %vm851_vm3 = vcmp.gt.f32.partialorder %v339_v8, 0.0  ;;  %v1362_v17 = vsel %vm850_vm2, 1, %v2389_v6 }
  0xcc   : > { %1840 = vst [vmem:[%s2480_s23 + $0x500] sm:$0xff] %v1328_v12  ;;  %v341_v12 = vld [vmem:[%s2469_s18 + $0x628] sm:$0xff]  ;;  %vm852_vm4 = vcmp.gt.f32.partialorder %v340_v10, 0.0  ;;  %v1363_v19 = vsel %vm851_vm3, 1, %v2389_v6 }
  0xcd   : > { %1841 = vst [vmem:[%s2480_s23 + $0x508] sm:$0xff] %v1329_v14  ;;  %v342_v14 = vld [vmem:[%s2469_s18 + $0x630] sm:$0xff]  ;;  %vm853_vm5 = vcmp.gt.f32.partialorder %v341_v12, 0.0  ;;  %v1364_v21 = vsel %vm852_vm4, 1, %v2389_v6 }
  0xce   : > { %1842 = vst [vmem:[%s2480_s23 + $0x510] sm:$0xff] %v1330_v16  ;;  %v343_v16 = vld [vmem:[%s2469_s18 + $0x638] sm:$0xff]  ;;  %vm854_vm6 = vcmp.gt.f32.partialorder %v342_v14, 0.0  ;;  %v1365_v23 = vsel %vm853_vm5, 1, %v2389_v6 }
  0xcf   : > { %1843 = vst [vmem:[%s2480_s23 + $0x518] sm:$0xff] %v1331_v18  ;;  %v344_v18 = vld [vmem:[%s2469_s18 + $0x640] sm:$0xff]  ;;  %vm855_vm7 = vcmp.gt.f32.partialorder %v343_v16, 0.0  ;;  %v1366_v25 = vsel %vm854_vm6, 1, %v2389_v6 }
  0xd0   : > { %1844 = vst [vmem:[%s2480_s23 + $0x520] sm:$0xff] %v1332_v20  ;;  %v345_v20 = vld [vmem:[%s2469_s18 + $0x648] sm:$0xff]  ;;  %vm856_vm8 = vcmp.gt.f32.partialorder %v344_v18, 0.0  ;;  %v1367_v27 = vsel %vm855_vm7, 1, %v2389_v6 }
  0xd1   : > { %1845 = vst [vmem:[%s2480_s23 + $0x528] sm:$0xff] %v1333_v22  ;;  %v346_v22 = vld [vmem:[%s2469_s18 + $0x650] sm:$0xff]  ;;  %vm857_vm9 = vcmp.gt.f32.partialorder %v345_v20, 0.0  ;;  %v1368_v29 = vsel %vm856_vm8, 1, %v2389_v6 }
  0xd2   : > { %1846 = vst [vmem:[%s2480_s23 + $0x530] sm:$0xff] %v1334_v24  ;;  %v347_v24 = vld [vmem:[%s2469_s18 + $0x658] sm:$0xff]  ;;  %vm858_vm10 = vcmp.gt.f32.partialorder %v346_v22, 0.0  ;;  %v1369_v31 = vsel %vm857_vm9, 1, %v2389_v6 }
  0xd3   : > { %1847 = vst [vmem:[%s2480_s23 + $0x538] sm:$0xff] %v1335_v26  ;;  %v348_v26 = vld [vmem:[%s2469_s18 + $0x660] sm:$0xff]  ;;  %vm859_vm11 = vcmp.gt.f32.partialorder %v347_v24, 0.0  ;;  %v1370_v33 = vsel %vm858_vm10, 1, %v2389_v6 }
  0xd4   : > { %1848 = vst [vmem:[%s2480_s23 + $0x540] sm:$0xff] %v1336_v28  ;;  %v349_v28 = vld [vmem:[%s2469_s18 + $0x668] sm:$0xff]  ;;  %vm860_vm12 = vcmp.gt.f32.partialorder %v348_v26, 0.0  ;;  %v1371_v35 = vsel %vm859_vm11, 1, %v2389_v6 }
  0xd5   : > { %1849 = vst [vmem:[%s2480_s23 + $0x548] sm:$0xff] %v1337_v30  ;;  %v350_v30 = vld [vmem:[%s2469_s18 + $0x670] sm:$0xff]  ;;  %vm861_vm13 = vcmp.gt.f32.partialorder %v349_v28, 0.0  ;;  %v1372_v37 = vsel %vm860_vm12, 1, %v2389_v6 }
  0xd6   : > { %1850 = vst [vmem:[%s2480_s23 + $0x550] sm:$0xff] %v1338_v32  ;;  %v351_v32 = vld [vmem:[%s2469_s18 + $0x678] sm:$0xff]  ;;  %vm862_vm14 = vcmp.gt.f32.partialorder %v350_v30, 0.0  ;;  %v1373_v39 = vsel %vm861_vm13, 1, %v2389_v6 }
  0xd7   : > { %1851 = vst [vmem:[%s2480_s23 + $0x558] sm:$0xff] %v1339_v34  ;;  %v352_v34 = vld [vmem:[%s2469_s18 + $0x680] sm:$0xff]  ;;  %vm863_vm15 = vcmp.gt.f32.partialorder %v351_v32, 0.0  ;;  %v1374_v41 = vsel %vm862_vm14, 1, %v2389_v6 }
  0xd8   : > { %1852 = vst [vmem:[%s2480_s23 + $0x560] sm:$0xff] %v1340_v36  ;;  %v353_v36 = vld [vmem:[%s2469_s18 + $0x688] sm:$0xff]  ;;  %vm864_vm0 = vcmp.gt.f32.partialorder %v352_v34, 0.0  ;;  %v1375_v43 = vsel %vm863_vm15, 1, %v2389_v6 }
  0xd9   : > { %1853 = vst [vmem:[%s2480_s23 + $0x568] sm:$0xff] %v1341_v38  ;;  %v354_v38 = vld [vmem:[%s2469_s18 + $0x690] sm:$0xff]  ;;  %vm865_vm1 = vcmp.gt.f32.partialorder %v353_v36, 0.0  ;;  %v1376_v45 = vsel %vm864_vm0, 1, %v2389_v6 }
  0xda   : > { %1854 = vst [vmem:[%s2480_s23 + $0x570] sm:$0xff] %v1342_v40  ;;  %v355_v40 = vld [vmem:[%s2469_s18 + $0x698] sm:$0xff]  ;;  %vm866_vm2 = vcmp.gt.f32.partialorder %v354_v38, 0.0  ;;  %v1377_v47 = vsel %vm865_vm1, 1, %v2389_v6 }
  0xdb   : > { %1855 = vst [vmem:[%s2480_s23 + $0x578] sm:$0xff] %v1343_v42  ;;  %v356_v42 = vld [vmem:[%s2469_s18 + $0x6a0] sm:$0xff]  ;;  %vm867_vm3 = vcmp.gt.f32.partialorder %v355_v40, 0.0  ;;  %v1378_v49 = vsel %vm866_vm2, 1, %v2389_v6 }
  0xdc   : > { %1856 = vst [vmem:[%s2480_s23 + $0x580] sm:$0xff] %v1344_v44  ;;  %v357_v44 = vld [vmem:[%s2469_s18 + $0x6a8] sm:$0xff]  ;;  %vm868_vm4 = vcmp.gt.f32.partialorder %v356_v42, 0.0  ;;  %v1379_v51 = vsel %vm867_vm3, 1, %v2389_v6 }
  0xdd   : > { %1857 = vst [vmem:[%s2480_s23 + $0x588] sm:$0xff] %v1345_v46  ;;  %v358_v46 = vld [vmem:[%s2469_s18 + $0x6b0] sm:$0xff]  ;;  %vm869_vm5 = vcmp.gt.f32.partialorder %v357_v44, 0.0  ;;  %v1380_v53 = vsel %vm868_vm4, 1, %v2389_v6 }
  0xde   : > { %1858 = vst [vmem:[%s2480_s23 + $0x590] sm:$0xff] %v1346_v48  ;;  %v359_v48 = vld [vmem:[%s2469_s18 + $0x6b8] sm:$0xff]  ;;  %vm870_vm6 = vcmp.gt.f32.partialorder %v358_v46, 0.0  ;;  %v1381_v55 = vsel %vm869_vm5, 1, %v2389_v6 }
  0xdf   : > { %1859 = vst [vmem:[%s2480_s23 + $0x598] sm:$0xff] %v1347_v50  ;;  %v360_v50 = vld [vmem:[%s2469_s18 + $0x6c0] sm:$0xff]  ;;  %vm871_vm7 = vcmp.gt.f32.partialorder %v359_v48, 0.0  ;;  %v1382_v57 = vsel %vm870_vm6, 1, %v2389_v6 }
  0xe0   : > { %1860 = vst [vmem:[%s2480_s23 + $0x5a0] sm:$0xff] %v1348_v52  ;;  %v361_v52 = vld [vmem:[%s2469_s18 + $0x6c8] sm:$0xff]  ;;  %vm872_vm8 = vcmp.gt.f32.partialorder %v360_v50, 0.0  ;;  %v1383_v59 = vsel %vm871_vm7, 1, %v2389_v6 }
  0xe1   : > { %1861 = vst [vmem:[%s2480_s23 + $0x5a8] sm:$0xff] %v1349_v54  ;;  %v362_v54 = vld [vmem:[%s2469_s18 + $0x6d0] sm:$0xff]  ;;  %vm873_vm9 = vcmp.gt.f32.partialorder %v361_v52, 0.0  ;;  %v1384_v61 = vsel %vm872_vm8, 1, %v2389_v6 }
  0xe2   : > { %1862 = vst [vmem:[%s2480_s23 + $0x5b0] sm:$0xff] %v1350_v56  ;;  %v363_v56 = vld [vmem:[%s2469_s18 + $0x6d8] sm:$0xff]  ;;  %vm874_vm10 = vcmp.gt.f32.partialorder %v362_v54, 0.0  ;;  %v1385_v63 = vsel %vm873_vm9, 1, %v2389_v6 }
  0xe3   : > { %1863 = vst [vmem:[%s2480_s23 + $0x5b8] sm:$0xff] %v1351_v58  ;;  %v364_v58 = vld [vmem:[%s2469_s18 + $0x6e0] sm:$0xff]  ;;  %vm875_vm11 = vcmp.gt.f32.partialorder %v363_v56, 0.0  ;;  %v1386_v1 = vsel %vm874_vm10, 1, %v2389_v6 }
  0xe4   : > { %1864 = vst [vmem:[%s2480_s23 + $0x5c0] sm:$0xff] %v1352_v60  ;;  %v365_v60 = vld [vmem:[%s2469_s18 + $0x6e8] sm:$0xff]  ;;  %vm876_vm12 = vcmp.gt.f32.partialorder %v364_v58, 0.0  ;;  %v1387_v3 = vsel %vm875_vm11, 1, %v2389_v6 }
  0xe5   : > { %1865 = vst [vmem:[%s2480_s23 + $0x5c8] sm:$0xff] %v1353_v62  ;;  %v366_v62 = vld [vmem:[%s2469_s18 + $0x6f0] sm:$0xff]  ;;  %vm877_vm13 = vcmp.gt.f32.partialorder %v365_v60, 0.0  ;;  %v1388_v5 = vsel %vm876_vm12, 1, %v2389_v6 }
  0xe6   : > { %1866 = vst [vmem:[%s2480_s23 + $0x5d0] sm:$0xff] %v1354_v0  ;;  %v367_v0 = vld [vmem:[%s2469_s18 + $0x6f8] sm:$0xff]  ;;  %vm878_vm14 = vcmp.gt.f32.partialorder %v366_v62, 0.0  ;;  %v1389_v8 = vsel %vm877_vm13, 1, %v2389_v6 }
  0xe7   : > { %1867 = vst [vmem:[%s2480_s23 + $0x5d8] sm:$0xff] %v1355_v2  ;;  %v368_v2 = vld [vmem:[%s2469_s18 + $0x700] sm:$0xff]  ;;  %vm879_vm15 = vcmp.gt.f32.partialorder %v367_v0, 0.0  ;;  %v1390_v10 = vsel %vm878_vm14, 1, %v2389_v6 }
  0xe8   : > { %1868 = vst [vmem:[%s2480_s23 + $0x5e0] sm:$0xff] %v1356_v4  ;;  %v369_v4 = vld [vmem:[%s2469_s18 + $0x708] sm:$0xff]  ;;  %vm880_vm0 = vcmp.gt.f32.partialorder %v368_v2, 0.0  ;;  %v1391_v12 = vsel %vm879_vm15, 1, %v2389_v6 }
  0xe9   : > { %1869 = vst [vmem:[%s2480_s23 + $0x5e8] sm:$0xff] %v1357_v7  ;;  %v370_v7 = vld [vmem:[%s2469_s18 + $0x710] sm:$0xff]  ;;  %vm881_vm1 = vcmp.gt.f32.partialorder %v369_v4, 0.0  ;;  %v1392_v14 = vsel %vm880_vm0, 1, %v2389_v6 }
  0xea   : > { %1870 = vst [vmem:[%s2480_s23 + $0x5f0] sm:$0xff] %v1358_v9  ;;  %v371_v9 = vld [vmem:[%s2469_s18 + $0x718] sm:$0xff]  ;;  %vm882_vm2 = vcmp.gt.f32.partialorder %v370_v7, 0.0  ;;  %v1393_v16 = vsel %vm881_vm1, 1, %v2389_v6 }
  0xeb   : > { %1871 = vst [vmem:[%s2480_s23 + $0x5f8] sm:$0xff] %v1359_v11  ;;  %v372_v11 = vld [vmem:[%s2469_s18 + $0x720] sm:$0xff]  ;;  %vm883_vm3 = vcmp.gt.f32.partialorder %v371_v9, 0.0  ;;  %v1394_v18 = vsel %vm882_vm2, 1, %v2389_v6 }
  0xec   : > { %1872 = vst [vmem:[%s2480_s23 + $0x600] sm:$0xff] %v1360_v13  ;;  %v373_v13 = vld [vmem:[%s2469_s18 + $0x728] sm:$0xff]  ;;  %vm884_vm4 = vcmp.gt.f32.partialorder %v372_v11, 0.0  ;;  %v1395_v20 = vsel %vm883_vm3, 1, %v2389_v6 }
  0xed   : > { %1873 = vst [vmem:[%s2480_s23 + $0x608] sm:$0xff] %v1361_v15  ;;  %v374_v15 = vld [vmem:[%s2469_s18 + $0x730] sm:$0xff]  ;;  %vm885_vm5 = vcmp.gt.f32.partialorder %v373_v13, 0.0  ;;  %v1396_v22 = vsel %vm884_vm4, 1, %v2389_v6 }
  0xee   : > { %1874 = vst [vmem:[%s2480_s23 + $0x610] sm:$0xff] %v1362_v17  ;;  %v375_v17 = vld [vmem:[%s2469_s18 + $0x738] sm:$0xff]  ;;  %vm886_vm6 = vcmp.gt.f32.partialorder %v374_v15, 0.0  ;;  %v1397_v24 = vsel %vm885_vm5, 1, %v2389_v6 }
  0xef   : > { %1875 = vst [vmem:[%s2480_s23 + $0x618] sm:$0xff] %v1363_v19  ;;  %v376_v19 = vld [vmem:[%s2469_s18 + $0x740] sm:$0xff]  ;;  %vm887_vm7 = vcmp.gt.f32.partialorder %v375_v17, 0.0  ;;  %v1398_v26 = vsel %vm886_vm6, 1, %v2389_v6 }
  0xf0   : > { %1876 = vst [vmem:[%s2480_s23 + $0x620] sm:$0xff] %v1364_v21  ;;  %v377_v21 = vld [vmem:[%s2469_s18 + $0x748] sm:$0xff]  ;;  %vm888_vm8 = vcmp.gt.f32.partialorder %v376_v19, 0.0  ;;  %v1399_v28 = vsel %vm887_vm7, 1, %v2389_v6 }
  0xf1   : > { %1877 = vst [vmem:[%s2480_s23 + $0x628] sm:$0xff] %v1365_v23  ;;  %v378_v23 = vld [vmem:[%s2469_s18 + $0x750] sm:$0xff]  ;;  %vm889_vm9 = vcmp.gt.f32.partialorder %v377_v21, 0.0  ;;  %v1400_v30 = vsel %vm888_vm8, 1, %v2389_v6 }
  0xf2   : > { %1878 = vst [vmem:[%s2480_s23 + $0x630] sm:$0xff] %v1366_v25  ;;  %v379_v25 = vld [vmem:[%s2469_s18 + $0x758] sm:$0xff]  ;;  %vm890_vm10 = vcmp.gt.f32.partialorder %v378_v23, 0.0  ;;  %v1401_v32 = vsel %vm889_vm9, 1, %v2389_v6 }
  0xf3   : > { %1879 = vst [vmem:[%s2480_s23 + $0x638] sm:$0xff] %v1367_v27  ;;  %v380_v27 = vld [vmem:[%s2469_s18 + $0x760] sm:$0xff]  ;;  %vm891_vm11 = vcmp.gt.f32.partialorder %v379_v25, 0.0  ;;  %v1402_v34 = vsel %vm890_vm10, 1, %v2389_v6 }
  0xf4   : > { %1880 = vst [vmem:[%s2480_s23 + $0x640] sm:$0xff] %v1368_v29  ;;  %v381_v29 = vld [vmem:[%s2469_s18 + $0x768] sm:$0xff]  ;;  %vm892_vm12 = vcmp.gt.f32.partialorder %v380_v27, 0.0  ;;  %v1403_v36 = vsel %vm891_vm11, 1, %v2389_v6 }
  0xf5   : > { %1881 = vst [vmem:[%s2480_s23 + $0x648] sm:$0xff] %v1369_v31  ;;  %v382_v31 = vld [vmem:[%s2469_s18 + $0x770] sm:$0xff]  ;;  %vm893_vm13 = vcmp.gt.f32.partialorder %v381_v29, 0.0  ;;  %v1404_v38 = vsel %vm892_vm12, 1, %v2389_v6 }
  0xf6   : > { %1882 = vst [vmem:[%s2480_s23 + $0x650] sm:$0xff] %v1370_v33  ;;  %v383_v33 = vld [vmem:[%s2469_s18 + $0x778] sm:$0xff]  ;;  %vm894_vm14 = vcmp.gt.f32.partialorder %v382_v31, 0.0  ;;  %v1405_v40 = vsel %vm893_vm13, 1, %v2389_v6 }
  0xf7   : > { %1883 = vst [vmem:[%s2480_s23 + $0x658] sm:$0xff] %v1371_v35  ;;  %v384_v35 = vld [vmem:[%s2469_s18 + $0x780] sm:$0xff]  ;;  %vm895_vm15 = vcmp.gt.f32.partialorder %v383_v33, 0.0  ;;  %v1406_v42 = vsel %vm894_vm14, 1, %v2389_v6 }
  0xf8   : > { %1884 = vst [vmem:[%s2480_s23 + $0x660] sm:$0xff] %v1372_v37  ;;  %v385_v37 = vld [vmem:[%s2469_s18 + $0x788] sm:$0xff]  ;;  %vm896_vm0 = vcmp.gt.f32.partialorder %v384_v35, 0.0  ;;  %v1407_v44 = vsel %vm895_vm15, 1, %v2389_v6 }
  0xf9   : > { %1885 = vst [vmem:[%s2480_s23 + $0x668] sm:$0xff] %v1373_v39  ;;  %v386_v39 = vld [vmem:[%s2469_s18 + $0x790] sm:$0xff]  ;;  %vm897_vm1 = vcmp.gt.f32.partialorder %v385_v37, 0.0  ;;  %v1408_v46 = vsel %vm896_vm0, 1, %v2389_v6 }
  0xfa   : > { %1886 = vst [vmem:[%s2480_s23 + $0x670] sm:$0xff] %v1374_v41  ;;  %v387_v41 = vld [vmem:[%s2469_s18 + $0x798] sm:$0xff]  ;;  %vm898_vm2 = vcmp.gt.f32.partialorder %v386_v39, 0.0  ;;  %v1409_v48 = vsel %vm897_vm1, 1, %v2389_v6 }
  0xfb   : > { %1887 = vst [vmem:[%s2480_s23 + $0x678] sm:$0xff] %v1375_v43  ;;  %v388_v43 = vld [vmem:[%s2469_s18 + $0x7a0] sm:$0xff]  ;;  %vm899_vm3 = vcmp.gt.f32.partialorder %v387_v41, 0.0  ;;  %v1410_v50 = vsel %vm898_vm2, 1, %v2389_v6 }
  0xfc   : > { %1888 = vst [vmem:[%s2480_s23 + $0x680] sm:$0xff] %v1376_v45  ;;  %v389_v45 = vld [vmem:[%s2469_s18 + $0x7a8] sm:$0xff]  ;;  %vm900_vm4 = vcmp.gt.f32.partialorder %v388_v43, 0.0  ;;  %v1411_v52 = vsel %vm899_vm3, 1, %v2389_v6 }
  0xfd   : > { %1889 = vst [vmem:[%s2480_s23 + $0x688] sm:$0xff] %v1377_v47  ;;  %v390_v47 = vld [vmem:[%s2469_s18 + $0x7b0] sm:$0xff]  ;;  %vm901_vm5 = vcmp.gt.f32.partialorder %v389_v45, 0.0  ;;  %v1412_v54 = vsel %vm900_vm4, 1, %v2389_v6 }
  0xfe   : > { %1890 = vst [vmem:[%s2480_s23 + $0x690] sm:$0xff] %v1378_v49  ;;  %v391_v49 = vld [vmem:[%s2469_s18 + $0x7b8] sm:$0xff]  ;;  %vm902_vm6 = vcmp.gt.f32.partialorder %v390_v47, 0.0  ;;  %v1413_v56 = vsel %vm901_vm5, 1, %v2389_v6 }
  0xff   : > { %1891 = vst [vmem:[%s2480_s23 + $0x698] sm:$0xff] %v1379_v51  ;;  %v392_v51 = vld [vmem:[%s2469_s18 + $0x7c0] sm:$0xff]  ;;  %vm903_vm7 = vcmp.gt.f32.partialorder %v391_v49, 0.0  ;;  %v1414_v58 = vsel %vm902_vm6, 1, %v2389_v6 }
 0x100   : > { %1892 = vst [vmem:[%s2480_s23 + $0x6a0] sm:$0xff] %v1380_v53  ;;  %v393_v53 = vld [vmem:[%s2469_s18 + $0x7c8] sm:$0xff]  ;;  %vm904_vm8 = vcmp.gt.f32.partialorder %v392_v51, 0.0  ;;  %v1415_v60 = vsel %vm903_vm7, 1, %v2389_v6 }
 0x101   : > { %1893 = vst [vmem:[%s2480_s23 + $0x6a8] sm:$0xff] %v1381_v55  ;;  %v394_v55 = vld [vmem:[%s2469_s18 + $0x7d0] sm:$0xff]  ;;  %vm905_vm9 = vcmp.gt.f32.partialorder %v393_v53, 0.0  ;;  %v1416_v62 = vsel %vm904_vm8, 1, %v2389_v6 }
 0x102   : > { %1894 = vst [vmem:[%s2480_s23 + $0x6b0] sm:$0xff] %v1382_v57  ;;  %v395_v57 = vld [vmem:[%s2469_s18 + $0x7d8] sm:$0xff]  ;;  %vm906_vm10 = vcmp.gt.f32.partialorder %v394_v55, 0.0  ;;  %v1417_v0 = vsel %vm905_vm9, 1, %v2389_v6 }
 0x103   : > { %1895 = vst [vmem:[%s2480_s23 + $0x6b8] sm:$0xff] %v1383_v59  ;;  %v396_v59 = vld [vmem:[%s2469_s18 + $0x7e0] sm:$0xff]  ;;  %vm907_vm11 = vcmp.gt.f32.partialorder %v395_v57, 0.0  ;;  %v1418_v2 = vsel %vm906_vm10, 1, %v2389_v6 }
 0x104   : > { %1896 = vst [vmem:[%s2480_s23 + $0x6c0] sm:$0xff] %v1384_v61  ;;  %v397_v61 = vld [vmem:[%s2469_s18 + $0x7e8] sm:$0xff]  ;;  %vm908_vm12 = vcmp.gt.f32.partialorder %v396_v59, 0.0  ;;  %v1419_v4 = vsel %vm907_vm11, 1, %v2389_v6 }
 0x105   : > { %1897 = vst [vmem:[%s2480_s23 + $0x6c8] sm:$0xff] %v1385_v63  ;;  %v398_v63 = vld [vmem:[%s2469_s18 + $0x7f0] sm:$0xff]  ;;  %vm909_vm13 = vcmp.gt.f32.partialorder %v397_v61, 0.0  ;;  %v1420_v7 = vsel %vm908_vm12, 1, %v2389_v6 }
 0x106   : > { %1898 = vst [vmem:[%s2480_s23 + $0x6d0] sm:$0xff] %v1386_v1  ;;  %v399_v1 = vld [vmem:[%s2469_s18 + $0x7f8] sm:$0xff]  ;;  %vm910_vm14 = vcmp.gt.f32.partialorder %v398_v63, 0.0  ;;  %v1421_v9 = vsel %vm909_vm13, 1, %v2389_v6 }
 0x107   : > { %1899 = vst [vmem:[%s2480_s23 + $0x6d8] sm:$0xff] %v1387_v3  ;;  %v400_v3 = vld [vmem:[%s2469_s18 + $0x800] sm:$0xff]  ;;  %vm911_vm15 = vcmp.gt.f32.partialorder %v399_v1, 0.0  ;;  %v1422_v11 = vsel %vm910_vm14, 1, %v2389_v6 }
 0x108   : > { %1900 = vst [vmem:[%s2480_s23 + $0x6e0] sm:$0xff] %v1388_v5  ;;  %v401_v5 = vld [vmem:[%s2469_s18 + $0x808] sm:$0xff]  ;;  %vm912_vm0 = vcmp.gt.f32.partialorder %v400_v3, 0.0  ;;  %v1423_v13 = vsel %vm911_vm15, 1, %v2389_v6 }
 0x109   : > { %1901 = vst [vmem:[%s2480_s23 + $0x6e8] sm:$0xff] %v1389_v8  ;;  %v402_v8 = vld [vmem:[%s2469_s18 + $0x810] sm:$0xff]  ;;  %vm913_vm1 = vcmp.gt.f32.partialorder %v401_v5, 0.0  ;;  %v1424_v15 = vsel %vm912_vm0, 1, %v2389_v6 }
 0x10a   : > { %1902 = vst [vmem:[%s2480_s23 + $0x6f0] sm:$0xff] %v1390_v10  ;;  %v403_v10 = vld [vmem:[%s2469_s18 + $0x818] sm:$0xff]  ;;  %vm914_vm2 = vcmp.gt.f32.partialorder %v402_v8, 0.0  ;;  %v1425_v17 = vsel %vm913_vm1, 1, %v2389_v6 }
 0x10b   : > { %1903 = vst [vmem:[%s2480_s23 + $0x6f8] sm:$0xff] %v1391_v12  ;;  %v404_v12 = vld [vmem:[%s2469_s18 + $0x820] sm:$0xff]  ;;  %vm915_vm3 = vcmp.gt.f32.partialorder %v403_v10, 0.0  ;;  %v1426_v19 = vsel %vm914_vm2, 1, %v2389_v6 }
 0x10c   : > { %1904 = vst [vmem:[%s2480_s23 + $0x700] sm:$0xff] %v1392_v14  ;;  %v405_v14 = vld [vmem:[%s2469_s18 + $0x828] sm:$0xff]  ;;  %vm916_vm4 = vcmp.gt.f32.partialorder %v404_v12, 0.0  ;;  %v1427_v21 = vsel %vm915_vm3, 1, %v2389_v6 }
 0x10d   : > { %1905 = vst [vmem:[%s2480_s23 + $0x708] sm:$0xff] %v1393_v16  ;;  %v406_v16 = vld [vmem:[%s2469_s18 + $0x830] sm:$0xff]  ;;  %vm917_vm5 = vcmp.gt.f32.partialorder %v405_v14, 0.0  ;;  %v1428_v23 = vsel %vm916_vm4, 1, %v2389_v6 }
 0x10e   : > { %1906 = vst [vmem:[%s2480_s23 + $0x710] sm:$0xff] %v1394_v18  ;;  %v407_v18 = vld [vmem:[%s2469_s18 + $0x838] sm:$0xff]  ;;  %vm918_vm6 = vcmp.gt.f32.partialorder %v406_v16, 0.0  ;;  %v1429_v25 = vsel %vm917_vm5, 1, %v2389_v6 }
 0x10f   : > { %1907 = vst [vmem:[%s2480_s23 + $0x718] sm:$0xff] %v1395_v20  ;;  %v408_v20 = vld [vmem:[%s2469_s18 + $0x840] sm:$0xff]  ;;  %vm919_vm7 = vcmp.gt.f32.partialorder %v407_v18, 0.0  ;;  %v1430_v27 = vsel %vm918_vm6, 1, %v2389_v6 }
 0x110   : > { %1908 = vst [vmem:[%s2480_s23 + $0x720] sm:$0xff] %v1396_v22  ;;  %v409_v22 = vld [vmem:[%s2469_s18 + $0x848] sm:$0xff]  ;;  %vm920_vm8 = vcmp.gt.f32.partialorder %v408_v20, 0.0  ;;  %v1431_v29 = vsel %vm919_vm7, 1, %v2389_v6 }
 0x111   : > { %1909 = vst [vmem:[%s2480_s23 + $0x728] sm:$0xff] %v1397_v24  ;;  %v410_v24 = vld [vmem:[%s2469_s18 + $0x850] sm:$0xff]  ;;  %vm921_vm9 = vcmp.gt.f32.partialorder %v409_v22, 0.0  ;;  %v1432_v31 = vsel %vm920_vm8, 1, %v2389_v6 }
 0x112   : > { %1910 = vst [vmem:[%s2480_s23 + $0x730] sm:$0xff] %v1398_v26  ;;  %v411_v26 = vld [vmem:[%s2469_s18 + $0x858] sm:$0xff]  ;;  %vm922_vm10 = vcmp.gt.f32.partialorder %v410_v24, 0.0  ;;  %v1433_v33 = vsel %vm921_vm9, 1, %v2389_v6 }
 0x113   : > { %1911 = vst [vmem:[%s2480_s23 + $0x738] sm:$0xff] %v1399_v28  ;;  %v412_v28 = vld [vmem:[%s2469_s18 + $0x860] sm:$0xff]  ;;  %vm923_vm11 = vcmp.gt.f32.partialorder %v411_v26, 0.0  ;;  %v1434_v35 = vsel %vm922_vm10, 1, %v2389_v6 }
 0x114   : > { %1912 = vst [vmem:[%s2480_s23 + $0x740] sm:$0xff] %v1400_v30  ;;  %v413_v30 = vld [vmem:[%s2469_s18 + $0x868] sm:$0xff]  ;;  %vm924_vm12 = vcmp.gt.f32.partialorder %v412_v28, 0.0  ;;  %v1435_v37 = vsel %vm923_vm11, 1, %v2389_v6 }
 0x115   : > { %1913 = vst [vmem:[%s2480_s23 + $0x748] sm:$0xff] %v1401_v32  ;;  %v414_v32 = vld [vmem:[%s2469_s18 + $0x870] sm:$0xff]  ;;  %vm925_vm13 = vcmp.gt.f32.partialorder %v413_v30, 0.0  ;;  %v1436_v39 = vsel %vm924_vm12, 1, %v2389_v6 }
 0x116   : > { %1914 = vst [vmem:[%s2480_s23 + $0x750] sm:$0xff] %v1402_v34  ;;  %v415_v34 = vld [vmem:[%s2469_s18 + $0x878] sm:$0xff]  ;;  %vm926_vm14 = vcmp.gt.f32.partialorder %v414_v32, 0.0  ;;  %v1437_v41 = vsel %vm925_vm13, 1, %v2389_v6 }
 0x117   : > { %1915 = vst [vmem:[%s2480_s23 + $0x758] sm:$0xff] %v1403_v36  ;;  %v416_v36 = vld [vmem:[%s2469_s18 + $0x880] sm:$0xff]  ;;  %vm927_vm15 = vcmp.gt.f32.partialorder %v415_v34, 0.0  ;;  %v1438_v43 = vsel %vm926_vm14, 1, %v2389_v6 }
 0x118   : > { %1916 = vst [vmem:[%s2480_s23 + $0x760] sm:$0xff] %v1404_v38  ;;  %v417_v38 = vld [vmem:[%s2469_s18 + $0x888] sm:$0xff]  ;;  %vm928_vm0 = vcmp.gt.f32.partialorder %v416_v36, 0.0  ;;  %v1439_v45 = vsel %vm927_vm15, 1, %v2389_v6 }
 0x119   : > { %1917 = vst [vmem:[%s2480_s23 + $0x768] sm:$0xff] %v1405_v40  ;;  %v418_v40 = vld [vmem:[%s2469_s18 + $0x890] sm:$0xff]  ;;  %vm929_vm1 = vcmp.gt.f32.partialorder %v417_v38, 0.0  ;;  %v1440_v47 = vsel %vm928_vm0, 1, %v2389_v6 }
 0x11a   : > { %1918 = vst [vmem:[%s2480_s23 + $0x770] sm:$0xff] %v1406_v42  ;;  %v419_v42 = vld [vmem:[%s2469_s18 + $0x898] sm:$0xff]  ;;  %vm930_vm2 = vcmp.gt.f32.partialorder %v418_v40, 0.0  ;;  %v1441_v49 = vsel %vm929_vm1, 1, %v2389_v6 }
 0x11b   : > { %1919 = vst [vmem:[%s2480_s23 + $0x778] sm:$0xff] %v1407_v44  ;;  %v420_v44 = vld [vmem:[%s2469_s18 + $0x8a0] sm:$0xff]  ;;  %vm931_vm3 = vcmp.gt.f32.partialorder %v419_v42, 0.0  ;;  %v1442_v51 = vsel %vm930_vm2, 1, %v2389_v6 }
 0x11c   : > { %1920 = vst [vmem:[%s2480_s23 + $0x780] sm:$0xff] %v1408_v46  ;;  %v421_v46 = vld [vmem:[%s2469_s18 + $0x8a8] sm:$0xff]  ;;  %vm932_vm4 = vcmp.gt.f32.partialorder %v420_v44, 0.0  ;;  %v1443_v53 = vsel %vm931_vm3, 1, %v2389_v6 }
 0x11d   : > { %1921 = vst [vmem:[%s2480_s23 + $0x788] sm:$0xff] %v1409_v48  ;;  %v422_v48 = vld [vmem:[%s2469_s18 + $0x8b0] sm:$0xff]  ;;  %vm933_vm5 = vcmp.gt.f32.partialorder %v421_v46, 0.0  ;;  %v1444_v55 = vsel %vm932_vm4, 1, %v2389_v6 }
 0x11e   : > { %1922 = vst [vmem:[%s2480_s23 + $0x790] sm:$0xff] %v1410_v50  ;;  %v423_v50 = vld [vmem:[%s2469_s18 + $0x8b8] sm:$0xff]  ;;  %vm934_vm6 = vcmp.gt.f32.partialorder %v422_v48, 0.0  ;;  %v1445_v57 = vsel %vm933_vm5, 1, %v2389_v6 }
 0x11f   : > { %1923 = vst [vmem:[%s2480_s23 + $0x798] sm:$0xff] %v1411_v52  ;;  %v424_v52 = vld [vmem:[%s2469_s18 + $0x8c0] sm:$0xff]  ;;  %vm935_vm7 = vcmp.gt.f32.partialorder %v423_v50, 0.0  ;;  %v1446_v59 = vsel %vm934_vm6, 1, %v2389_v6 }
 0x120   : > { %1924 = vst [vmem:[%s2480_s23 + $0x7a0] sm:$0xff] %v1412_v54  ;;  %v425_v54 = vld [vmem:[%s2469_s18 + $0x8c8] sm:$0xff]  ;;  %vm936_vm8 = vcmp.gt.f32.partialorder %v424_v52, 0.0  ;;  %v1447_v61 = vsel %vm935_vm7, 1, %v2389_v6 }
 0x121   : > { %1925 = vst [vmem:[%s2480_s23 + $0x7a8] sm:$0xff] %v1413_v56  ;;  %v426_v56 = vld [vmem:[%s2469_s18 + $0x8d0] sm:$0xff]  ;;  %vm937_vm9 = vcmp.gt.f32.partialorder %v425_v54, 0.0  ;;  %v1448_v63 = vsel %vm936_vm8, 1, %v2389_v6 }
 0x122   : > { %1926 = vst [vmem:[%s2480_s23 + $0x7b0] sm:$0xff] %v1414_v58  ;;  %v427_v58 = vld [vmem:[%s2469_s18 + $0x8d8] sm:$0xff]  ;;  %vm938_vm10 = vcmp.gt.f32.partialorder %v426_v56, 0.0  ;;  %v1449_v1 = vsel %vm937_vm9, 1, %v2389_v6 }
 0x123   : > { %1927 = vst [vmem:[%s2480_s23 + $0x7b8] sm:$0xff] %v1415_v60  ;;  %v428_v60 = vld [vmem:[%s2469_s18 + $0x8e0] sm:$0xff]  ;;  %vm939_vm11 = vcmp.gt.f32.partialorder %v427_v58, 0.0  ;;  %v1450_v3 = vsel %vm938_vm10, 1, %v2389_v6 }
 0x124   : > { %1928 = vst [vmem:[%s2480_s23 + $0x7c0] sm:$0xff] %v1416_v62  ;;  %v429_v62 = vld [vmem:[%s2469_s18 + $0x8e8] sm:$0xff]  ;;  %vm940_vm12 = vcmp.gt.f32.partialorder %v428_v60, 0.0  ;;  %v1451_v5 = vsel %vm939_vm11, 1, %v2389_v6 }
 0x125   : > { %1929 = vst [vmem:[%s2480_s23 + $0x7c8] sm:$0xff] %v1417_v0  ;;  %v430_v0 = vld [vmem:[%s2469_s18 + $0x8f0] sm:$0xff]  ;;  %vm941_vm13 = vcmp.gt.f32.partialorder %v429_v62, 0.0  ;;  %v1452_v8 = vsel %vm940_vm12, 1, %v2389_v6 }
 0x126   : > { %1930 = vst [vmem:[%s2480_s23 + $0x7d0] sm:$0xff] %v1418_v2  ;;  %v431_v2 = vld [vmem:[%s2469_s18 + $0x8f8] sm:$0xff]  ;;  %vm942_vm14 = vcmp.gt.f32.partialorder %v430_v0, 0.0  ;;  %v1453_v10 = vsel %vm941_vm13, 1, %v2389_v6 }
 0x127   : > { %1931 = vst [vmem:[%s2480_s23 + $0x7d8] sm:$0xff] %v1419_v4  ;;  %v432_v4 = vld [vmem:[%s2469_s18 + $0x900] sm:$0xff]  ;;  %vm943_vm15 = vcmp.gt.f32.partialorder %v431_v2, 0.0  ;;  %v1454_v12 = vsel %vm942_vm14, 1, %v2389_v6 }
 0x128   : > { %1932 = vst [vmem:[%s2480_s23 + $0x7e0] sm:$0xff] %v1420_v7  ;;  %v433_v7 = vld [vmem:[%s2469_s18 + $0x908] sm:$0xff]  ;;  %vm944_vm0 = vcmp.gt.f32.partialorder %v432_v4, 0.0  ;;  %v1455_v14 = vsel %vm943_vm15, 1, %v2389_v6 }
 0x129   : > { %1933 = vst [vmem:[%s2480_s23 + $0x7e8] sm:$0xff] %v1421_v9  ;;  %v434_v9 = vld [vmem:[%s2469_s18 + $0x910] sm:$0xff]  ;;  %vm945_vm1 = vcmp.gt.f32.partialorder %v433_v7, 0.0  ;;  %v1456_v16 = vsel %vm944_vm0, 1, %v2389_v6 }
 0x12a   : > { %1934 = vst [vmem:[%s2480_s23 + $0x7f0] sm:$0xff] %v1422_v11  ;;  %v435_v11 = vld [vmem:[%s2469_s18 + $0x918] sm:$0xff]  ;;  %vm946_vm2 = vcmp.gt.f32.partialorder %v434_v9, 0.0  ;;  %v1457_v18 = vsel %vm945_vm1, 1, %v2389_v6 }
 0x12b   : > { %1935 = vst [vmem:[%s2480_s23 + $0x7f8] sm:$0xff] %v1423_v13  ;;  %v436_v13 = vld [vmem:[%s2469_s18 + $0x920] sm:$0xff]  ;;  %vm947_vm3 = vcmp.gt.f32.partialorder %v435_v11, 0.0  ;;  %v1458_v20 = vsel %vm946_vm2, 1, %v2389_v6 }
 0x12c   : > { %1936 = vst [vmem:[%s2480_s23 + $0x800] sm:$0xff] %v1424_v15  ;;  %v437_v15 = vld [vmem:[%s2469_s18 + $0x928] sm:$0xff]  ;;  %vm948_vm4 = vcmp.gt.f32.partialorder %v436_v13, 0.0  ;;  %v1459_v22 = vsel %vm947_vm3, 1, %v2389_v6 }
 0x12d   : > { %1937 = vst [vmem:[%s2480_s23 + $0x808] sm:$0xff] %v1425_v17  ;;  %v438_v17 = vld [vmem:[%s2469_s18 + $0x930] sm:$0xff]  ;;  %vm949_vm5 = vcmp.gt.f32.partialorder %v437_v15, 0.0  ;;  %v1460_v24 = vsel %vm948_vm4, 1, %v2389_v6 }
 0x12e   : > { %1938 = vst [vmem:[%s2480_s23 + $0x810] sm:$0xff] %v1426_v19  ;;  %v439_v19 = vld [vmem:[%s2469_s18 + $0x938] sm:$0xff]  ;;  %vm950_vm6 = vcmp.gt.f32.partialorder %v438_v17, 0.0  ;;  %v1461_v26 = vsel %vm949_vm5, 1, %v2389_v6 }
 0x12f   : > { %1939 = vst [vmem:[%s2480_s23 + $0x818] sm:$0xff] %v1427_v21  ;;  %v440_v21 = vld [vmem:[%s2469_s18 + $0x940] sm:$0xff]  ;;  %vm951_vm7 = vcmp.gt.f32.partialorder %v439_v19, 0.0  ;;  %v1462_v28 = vsel %vm950_vm6, 1, %v2389_v6 }
 0x130   : > { %1940 = vst [vmem:[%s2480_s23 + $0x820] sm:$0xff] %v1428_v23  ;;  %v441_v23 = vld [vmem:[%s2469_s18 + $0x948] sm:$0xff]  ;;  %vm952_vm8 = vcmp.gt.f32.partialorder %v440_v21, 0.0  ;;  %v1463_v30 = vsel %vm951_vm7, 1, %v2389_v6 }
 0x131   : > { %1941 = vst [vmem:[%s2480_s23 + $0x828] sm:$0xff] %v1429_v25  ;;  %v442_v25 = vld [vmem:[%s2469_s18 + $0x950] sm:$0xff]  ;;  %vm953_vm9 = vcmp.gt.f32.partialorder %v441_v23, 0.0  ;;  %v1464_v32 = vsel %vm952_vm8, 1, %v2389_v6 }
 0x132   : > { %1942 = vst [vmem:[%s2480_s23 + $0x830] sm:$0xff] %v1430_v27  ;;  %v443_v27 = vld [vmem:[%s2469_s18 + $0x958] sm:$0xff]  ;;  %vm954_vm10 = vcmp.gt.f32.partialorder %v442_v25, 0.0  ;;  %v1465_v34 = vsel %vm953_vm9, 1, %v2389_v6 }
 0x133   : > { %1943 = vst [vmem:[%s2480_s23 + $0x838] sm:$0xff] %v1431_v29  ;;  %v444_v29 = vld [vmem:[%s2469_s18 + $0x960] sm:$0xff]  ;;  %vm955_vm11 = vcmp.gt.f32.partialorder %v443_v27, 0.0  ;;  %v1466_v36 = vsel %vm954_vm10, 1, %v2389_v6 }
 0x134   : > { %1944 = vst [vmem:[%s2480_s23 + $0x840] sm:$0xff] %v1432_v31  ;;  %v445_v31 = vld [vmem:[%s2469_s18 + $0x968] sm:$0xff]  ;;  %vm956_vm12 = vcmp.gt.f32.partialorder %v444_v29, 0.0  ;;  %v1467_v38 = vsel %vm955_vm11, 1, %v2389_v6 }
 0x135   : > { %1945 = vst [vmem:[%s2480_s23 + $0x848] sm:$0xff] %v1433_v33  ;;  %v446_v33 = vld [vmem:[%s2469_s18 + $0x970] sm:$0xff]  ;;  %vm957_vm13 = vcmp.gt.f32.partialorder %v445_v31, 0.0  ;;  %v1468_v40 = vsel %vm956_vm12, 1, %v2389_v6 }
 0x136   : > { %1946 = vst [vmem:[%s2480_s23 + $0x850] sm:$0xff] %v1434_v35  ;;  %v447_v35 = vld [vmem:[%s2469_s18 + $0x978] sm:$0xff]  ;;  %vm958_vm14 = vcmp.gt.f32.partialorder %v446_v33, 0.0  ;;  %v1469_v42 = vsel %vm957_vm13, 1, %v2389_v6 }
 0x137   : > { %1947 = vst [vmem:[%s2480_s23 + $0x858] sm:$0xff] %v1435_v37  ;;  %v448_v37 = vld [vmem:[%s2469_s18 + $0x980] sm:$0xff]  ;;  %vm959_vm15 = vcmp.gt.f32.partialorder %v447_v35, 0.0  ;;  %v1470_v44 = vsel %vm958_vm14, 1, %v2389_v6 }
 0x138   : > { %1948 = vst [vmem:[%s2480_s23 + $0x860] sm:$0xff] %v1436_v39  ;;  %v449_v39 = vld [vmem:[%s2469_s18 + $0x988] sm:$0xff]  ;;  %vm960_vm0 = vcmp.gt.f32.partialorder %v448_v37, 0.0  ;;  %v1471_v46 = vsel %vm959_vm15, 1, %v2389_v6 }
 0x139   : > { %1949 = vst [vmem:[%s2480_s23 + $0x868] sm:$0xff] %v1437_v41  ;;  %v450_v41 = vld [vmem:[%s2469_s18 + $0x990] sm:$0xff]  ;;  %vm961_vm1 = vcmp.gt.f32.partialorder %v449_v39, 0.0  ;;  %v1472_v48 = vsel %vm960_vm0, 1, %v2389_v6 }
 0x13a   : > { %1950 = vst [vmem:[%s2480_s23 + $0x870] sm:$0xff] %v1438_v43  ;;  %v451_v43 = vld [vmem:[%s2469_s18 + $0x998] sm:$0xff]  ;;  %vm962_vm2 = vcmp.gt.f32.partialorder %v450_v41, 0.0  ;;  %v1473_v50 = vsel %vm961_vm1, 1, %v2389_v6 }
 0x13b   : > { %1951 = vst [vmem:[%s2480_s23 + $0x878] sm:$0xff] %v1439_v45  ;;  %v452_v45 = vld [vmem:[%s2469_s18 + $0x9a0] sm:$0xff]  ;;  %vm963_vm3 = vcmp.gt.f32.partialorder %v451_v43, 0.0  ;;  %v1474_v52 = vsel %vm962_vm2, 1, %v2389_v6 }
 0x13c   : > { %1952 = vst [vmem:[%s2480_s23 + $0x880] sm:$0xff] %v1440_v47  ;;  %v453_v47 = vld [vmem:[%s2469_s18 + $0x9a8] sm:$0xff]  ;;  %vm964_vm4 = vcmp.gt.f32.partialorder %v452_v45, 0.0  ;;  %v1475_v54 = vsel %vm963_vm3, 1, %v2389_v6 }
 0x13d   : > { %1953 = vst [vmem:[%s2480_s23 + $0x888] sm:$0xff] %v1441_v49  ;;  %v454_v49 = vld [vmem:[%s2469_s18 + $0x9b0] sm:$0xff]  ;;  %vm965_vm5 = vcmp.gt.f32.partialorder %v453_v47, 0.0  ;;  %v1476_v56 = vsel %vm964_vm4, 1, %v2389_v6 }
 0x13e   : > { %1954 = vst [vmem:[%s2480_s23 + $0x890] sm:$0xff] %v1442_v51  ;;  %v455_v51 = vld [vmem:[%s2469_s18 + $0x9b8] sm:$0xff]  ;;  %vm966_vm6 = vcmp.gt.f32.partialorder %v454_v49, 0.0  ;;  %v1477_v58 = vsel %vm965_vm5, 1, %v2389_v6 }
 0x13f   : > { %1955 = vst [vmem:[%s2480_s23 + $0x898] sm:$0xff] %v1443_v53  ;;  %v456_v53 = vld [vmem:[%s2469_s18 + $0x9c0] sm:$0xff]  ;;  %vm967_vm7 = vcmp.gt.f32.partialorder %v455_v51, 0.0  ;;  %v1478_v60 = vsel %vm966_vm6, 1, %v2389_v6 }
 0x140   : > { %1956 = vst [vmem:[%s2480_s23 + $0x8a0] sm:$0xff] %v1444_v55  ;;  %v457_v55 = vld [vmem:[%s2469_s18 + $0x9c8] sm:$0xff]  ;;  %vm968_vm8 = vcmp.gt.f32.partialorder %v456_v53, 0.0  ;;  %v1479_v62 = vsel %vm967_vm7, 1, %v2389_v6 }
 0x141   : > { %1957 = vst [vmem:[%s2480_s23 + $0x8a8] sm:$0xff] %v1445_v57  ;;  %v458_v57 = vld [vmem:[%s2469_s18 + $0x9d0] sm:$0xff]  ;;  %vm969_vm9 = vcmp.gt.f32.partialorder %v457_v55, 0.0  ;;  %v1480_v0 = vsel %vm968_vm8, 1, %v2389_v6 }
 0x142   : > { %1958 = vst [vmem:[%s2480_s23 + $0x8b0] sm:$0xff] %v1446_v59  ;;  %v459_v59 = vld [vmem:[%s2469_s18 + $0x9d8] sm:$0xff]  ;;  %vm970_vm10 = vcmp.gt.f32.partialorder %v458_v57, 0.0  ;;  %v1481_v2 = vsel %vm969_vm9, 1, %v2389_v6 }
 0x143   : > { %1959 = vst [vmem:[%s2480_s23 + $0x8b8] sm:$0xff] %v1447_v61  ;;  %v460_v61 = vld [vmem:[%s2469_s18 + $0x9e0] sm:$0xff]  ;;  %vm971_vm11 = vcmp.gt.f32.partialorder %v459_v59, 0.0  ;;  %v1482_v4 = vsel %vm970_vm10, 1, %v2389_v6 }
 0x144   : > { %1960 = vst [vmem:[%s2480_s23 + $0x8c0] sm:$0xff] %v1448_v63  ;;  %v461_v63 = vld [vmem:[%s2469_s18 + $0x9e8] sm:$0xff]  ;;  %vm972_vm12 = vcmp.gt.f32.partialorder %v460_v61, 0.0  ;;  %v1483_v7 = vsel %vm971_vm11, 1, %v2389_v6 }
 0x145   : > { %1961 = vst [vmem:[%s2480_s23 + $0x8c8] sm:$0xff] %v1449_v1  ;;  %v462_v1 = vld [vmem:[%s2469_s18 + $0x9f0] sm:$0xff]  ;;  %vm973_vm13 = vcmp.gt.f32.partialorder %v461_v63, 0.0  ;;  %v1484_v9 = vsel %vm972_vm12, 1, %v2389_v6 }
 0x146   : > { %1962 = vst [vmem:[%s2480_s23 + $0x8d0] sm:$0xff] %v1450_v3  ;;  %v463_v3 = vld [vmem:[%s2469_s18 + $0x9f8] sm:$0xff]  ;;  %vm974_vm14 = vcmp.gt.f32.partialorder %v462_v1, 0.0  ;;  %v1485_v11 = vsel %vm973_vm13, 1, %v2389_v6 }
 0x147   : > { %1963 = vst [vmem:[%s2480_s23 + $0x8d8] sm:$0xff] %v1451_v5  ;;  %v464_v5 = vld [vmem:[%s2469_s18 + $0xa00] sm:$0xff]  ;;  %vm975_vm15 = vcmp.gt.f32.partialorder %v463_v3, 0.0  ;;  %v1486_v13 = vsel %vm974_vm14, 1, %v2389_v6 }
 0x148   : > { %1964 = vst [vmem:[%s2480_s23 + $0x8e0] sm:$0xff] %v1452_v8  ;;  %v465_v8 = vld [vmem:[%s2469_s18 + $0xa08] sm:$0xff]  ;;  %vm976_vm0 = vcmp.gt.f32.partialorder %v464_v5, 0.0  ;;  %v1487_v15 = vsel %vm975_vm15, 1, %v2389_v6 }
 0x149   : > { %1965 = vst [vmem:[%s2480_s23 + $0x8e8] sm:$0xff] %v1453_v10  ;;  %v466_v10 = vld [vmem:[%s2469_s18 + $0xa10] sm:$0xff]  ;;  %vm977_vm1 = vcmp.gt.f32.partialorder %v465_v8, 0.0  ;;  %v1488_v17 = vsel %vm976_vm0, 1, %v2389_v6 }
 0x14a   : > { %1966 = vst [vmem:[%s2480_s23 + $0x8f0] sm:$0xff] %v1454_v12  ;;  %v467_v12 = vld [vmem:[%s2469_s18 + $0xa18] sm:$0xff]  ;;  %vm978_vm2 = vcmp.gt.f32.partialorder %v466_v10, 0.0  ;;  %v1489_v19 = vsel %vm977_vm1, 1, %v2389_v6 }
 0x14b   : > { %1967 = vst [vmem:[%s2480_s23 + $0x8f8] sm:$0xff] %v1455_v14  ;;  %v468_v14 = vld [vmem:[%s2469_s18 + $0xa20] sm:$0xff]  ;;  %vm979_vm3 = vcmp.gt.f32.partialorder %v467_v12, 0.0  ;;  %v1490_v21 = vsel %vm978_vm2, 1, %v2389_v6 }
 0x14c   : > { %1968 = vst [vmem:[%s2480_s23 + $0x900] sm:$0xff] %v1456_v16  ;;  %v469_v16 = vld [vmem:[%s2469_s18 + $0xa28] sm:$0xff]  ;;  %vm980_vm4 = vcmp.gt.f32.partialorder %v468_v14, 0.0  ;;  %v1491_v23 = vsel %vm979_vm3, 1, %v2389_v6 }
 0x14d   : > { %1969 = vst [vmem:[%s2480_s23 + $0x908] sm:$0xff] %v1457_v18  ;;  %v470_v18 = vld [vmem:[%s2469_s18 + $0xa30] sm:$0xff]  ;;  %vm981_vm5 = vcmp.gt.f32.partialorder %v469_v16, 0.0  ;;  %v1492_v25 = vsel %vm980_vm4, 1, %v2389_v6 }
 0x14e   : > { %1970 = vst [vmem:[%s2480_s23 + $0x910] sm:$0xff] %v1458_v20  ;;  %v471_v20 = vld [vmem:[%s2469_s18 + $0xa38] sm:$0xff]  ;;  %vm982_vm6 = vcmp.gt.f32.partialorder %v470_v18, 0.0  ;;  %v1493_v27 = vsel %vm981_vm5, 1, %v2389_v6 }
 0x14f   : > { %1971 = vst [vmem:[%s2480_s23 + $0x918] sm:$0xff] %v1459_v22  ;;  %v472_v22 = vld [vmem:[%s2469_s18 + $0xa40] sm:$0xff]  ;;  %vm983_vm7 = vcmp.gt.f32.partialorder %v471_v20, 0.0  ;;  %v1494_v29 = vsel %vm982_vm6, 1, %v2389_v6 }
 0x150   : > { %1972 = vst [vmem:[%s2480_s23 + $0x920] sm:$0xff] %v1460_v24  ;;  %v473_v24 = vld [vmem:[%s2469_s18 + $0xa48] sm:$0xff]  ;;  %vm984_vm8 = vcmp.gt.f32.partialorder %v472_v22, 0.0  ;;  %v1495_v31 = vsel %vm983_vm7, 1, %v2389_v6 }
 0x151   : > { %1973 = vst [vmem:[%s2480_s23 + $0x928] sm:$0xff] %v1461_v26  ;;  %v474_v26 = vld [vmem:[%s2469_s18 + $0xa50] sm:$0xff]  ;;  %vm985_vm9 = vcmp.gt.f32.partialorder %v473_v24, 0.0  ;;  %v1496_v33 = vsel %vm984_vm8, 1, %v2389_v6 }
 0x152   : > { %1974 = vst [vmem:[%s2480_s23 + $0x930] sm:$0xff] %v1462_v28  ;;  %v475_v28 = vld [vmem:[%s2469_s18 + $0xa58] sm:$0xff]  ;;  %vm986_vm10 = vcmp.gt.f32.partialorder %v474_v26, 0.0  ;;  %v1497_v35 = vsel %vm985_vm9, 1, %v2389_v6 }
 0x153   : > { %1975 = vst [vmem:[%s2480_s23 + $0x938] sm:$0xff] %v1463_v30  ;;  %v476_v30 = vld [vmem:[%s2469_s18 + $0xa60] sm:$0xff]  ;;  %vm987_vm11 = vcmp.gt.f32.partialorder %v475_v28, 0.0  ;;  %v1498_v37 = vsel %vm986_vm10, 1, %v2389_v6 }
 0x154   : > { %1976 = vst [vmem:[%s2480_s23 + $0x940] sm:$0xff] %v1464_v32  ;;  %v477_v32 = vld [vmem:[%s2469_s18 + $0xa68] sm:$0xff]  ;;  %vm988_vm12 = vcmp.gt.f32.partialorder %v476_v30, 0.0  ;;  %v1499_v39 = vsel %vm987_vm11, 1, %v2389_v6 }
 0x155   : > { %1977 = vst [vmem:[%s2480_s23 + $0x948] sm:$0xff] %v1465_v34  ;;  %v478_v34 = vld [vmem:[%s2469_s18 + $0xa70] sm:$0xff]  ;;  %vm989_vm13 = vcmp.gt.f32.partialorder %v477_v32, 0.0  ;;  %v1500_v41 = vsel %vm988_vm12, 1, %v2389_v6 }
 0x156   : > { %1978 = vst [vmem:[%s2480_s23 + $0x950] sm:$0xff] %v1466_v36  ;;  %v479_v36 = vld [vmem:[%s2469_s18 + $0xa78] sm:$0xff]  ;;  %vm990_vm14 = vcmp.gt.f32.partialorder %v478_v34, 0.0  ;;  %v1501_v43 = vsel %vm989_vm13, 1, %v2389_v6 }
 0x157   : > { %1979 = vst [vmem:[%s2480_s23 + $0x958] sm:$0xff] %v1467_v38  ;;  %v480_v38 = vld [vmem:[%s2469_s18 + $0xa80] sm:$0xff]  ;;  %vm991_vm15 = vcmp.gt.f32.partialorder %v479_v36, 0.0  ;;  %v1502_v45 = vsel %vm990_vm14, 1, %v2389_v6 }
 0x158   : > { %1980 = vst [vmem:[%s2480_s23 + $0x960] sm:$0xff] %v1468_v40  ;;  %v481_v40 = vld [vmem:[%s2469_s18 + $0xa88] sm:$0xff]  ;;  %vm992_vm0 = vcmp.gt.f32.partialorder %v480_v38, 0.0  ;;  %v1503_v47 = vsel %vm991_vm15, 1, %v2389_v6 }
 0x159   : > { %1981 = vst [vmem:[%s2480_s23 + $0x968] sm:$0xff] %v1469_v42  ;;  %v482_v42 = vld [vmem:[%s2469_s18 + $0xa90] sm:$0xff]  ;;  %vm993_vm1 = vcmp.gt.f32.partialorder %v481_v40, 0.0  ;;  %v1504_v49 = vsel %vm992_vm0, 1, %v2389_v6 }
 0x15a   : > { %1982 = vst [vmem:[%s2480_s23 + $0x970] sm:$0xff] %v1470_v44  ;;  %v483_v44 = vld [vmem:[%s2469_s18 + $0xa98] sm:$0xff]  ;;  %vm994_vm2 = vcmp.gt.f32.partialorder %v482_v42, 0.0  ;;  %v1505_v51 = vsel %vm993_vm1, 1, %v2389_v6 }
 0x15b   : > { %1983 = vst [vmem:[%s2480_s23 + $0x978] sm:$0xff] %v1471_v46  ;;  %v484_v46 = vld [vmem:[%s2469_s18 + $0xaa0] sm:$0xff]  ;;  %vm995_vm3 = vcmp.gt.f32.partialorder %v483_v44, 0.0  ;;  %v1506_v53 = vsel %vm994_vm2, 1, %v2389_v6 }
 0x15c   : > { %1984 = vst [vmem:[%s2480_s23 + $0x980] sm:$0xff] %v1472_v48  ;;  %v485_v48 = vld [vmem:[%s2469_s18 + $0xaa8] sm:$0xff]  ;;  %vm996_vm4 = vcmp.gt.f32.partialorder %v484_v46, 0.0  ;;  %v1507_v55 = vsel %vm995_vm3, 1, %v2389_v6 }
 0x15d   : > { %1985 = vst [vmem:[%s2480_s23 + $0x988] sm:$0xff] %v1473_v50  ;;  %v486_v50 = vld [vmem:[%s2469_s18 + $0xab0] sm:$0xff]  ;;  %vm997_vm5 = vcmp.gt.f32.partialorder %v485_v48, 0.0  ;;  %v1508_v57 = vsel %vm996_vm4, 1, %v2389_v6 }
 0x15e   : > { %1986 = vst [vmem:[%s2480_s23 + $0x990] sm:$0xff] %v1474_v52  ;;  %v487_v52 = vld [vmem:[%s2469_s18 + $0xab8] sm:$0xff]  ;;  %vm998_vm6 = vcmp.gt.f32.partialorder %v486_v50, 0.0  ;;  %v1509_v59 = vsel %vm997_vm5, 1, %v2389_v6 }
 0x15f   : > { %1987 = vst [vmem:[%s2480_s23 + $0x998] sm:$0xff] %v1475_v54  ;;  %v488_v54 = vld [vmem:[%s2469_s18 + $0xac0] sm:$0xff]  ;;  %vm999_vm7 = vcmp.gt.f32.partialorder %v487_v52, 0.0  ;;  %v1510_v61 = vsel %vm998_vm6, 1, %v2389_v6 }
 0x160   : > { %1988 = vst [vmem:[%s2480_s23 + $0x9a0] sm:$0xff] %v1476_v56  ;;  %v489_v56 = vld [vmem:[%s2469_s18 + $0xac8] sm:$0xff]  ;;  %vm1000_vm8 = vcmp.gt.f32.partialorder %v488_v54, 0.0  ;;  %v1511_v63 = vsel %vm999_vm7, 1, %v2389_v6 }
 0x161   : > { %1989 = vst [vmem:[%s2480_s23 + $0x9a8] sm:$0xff] %v1477_v58  ;;  %v490_v58 = vld [vmem:[%s2469_s18 + $0xad0] sm:$0xff]  ;;  %vm1001_vm9 = vcmp.gt.f32.partialorder %v489_v56, 0.0  ;;  %v1512_v1 = vsel %vm1000_vm8, 1, %v2389_v6 }
 0x162   : > { %1990 = vst [vmem:[%s2480_s23 + $0x9b0] sm:$0xff] %v1478_v60  ;;  %v491_v60 = vld [vmem:[%s2469_s18 + $0xad8] sm:$0xff]  ;;  %vm1002_vm10 = vcmp.gt.f32.partialorder %v490_v58, 0.0  ;;  %v1513_v3 = vsel %vm1001_vm9, 1, %v2389_v6 }
 0x163   : > { %1991 = vst [vmem:[%s2480_s23 + $0x9b8] sm:$0xff] %v1479_v62  ;;  %v492_v62 = vld [vmem:[%s2469_s18 + $0xae0] sm:$0xff]  ;;  %vm1003_vm11 = vcmp.gt.f32.partialorder %v491_v60, 0.0  ;;  %v1514_v5 = vsel %vm1002_vm10, 1, %v2389_v6 }
 0x164   : > { %1992 = vst [vmem:[%s2480_s23 + $0x9c0] sm:$0xff] %v1480_v0  ;;  %v493_v0 = vld [vmem:[%s2469_s18 + $0xae8] sm:$0xff]  ;;  %vm1004_vm12 = vcmp.gt.f32.partialorder %v492_v62, 0.0  ;;  %v1515_v8 = vsel %vm1003_vm11, 1, %v2389_v6 }
 0x165   : > { %1993 = vst [vmem:[%s2480_s23 + $0x9c8] sm:$0xff] %v1481_v2  ;;  %v494_v2 = vld [vmem:[%s2469_s18 + $0xaf0] sm:$0xff]  ;;  %vm1005_vm13 = vcmp.gt.f32.partialorder %v493_v0, 0.0  ;;  %v1516_v10 = vsel %vm1004_vm12, 1, %v2389_v6 }
 0x166   : > { %1994 = vst [vmem:[%s2480_s23 + $0x9d0] sm:$0xff] %v1482_v4  ;;  %v495_v4 = vld [vmem:[%s2469_s18 + $0xaf8] sm:$0xff]  ;;  %vm1006_vm14 = vcmp.gt.f32.partialorder %v494_v2, 0.0  ;;  %v1517_v12 = vsel %vm1005_vm13, 1, %v2389_v6 }
 0x167   : > { %1995 = vst [vmem:[%s2480_s23 + $0x9d8] sm:$0xff] %v1483_v7  ;;  %v496_v7 = vld [vmem:[%s2469_s18 + $0xb00] sm:$0xff]  ;;  %vm1007_vm15 = vcmp.gt.f32.partialorder %v495_v4, 0.0  ;;  %v1518_v14 = vsel %vm1006_vm14, 1, %v2389_v6 }
 0x168   : > { %1996 = vst [vmem:[%s2480_s23 + $0x9e0] sm:$0xff] %v1484_v9  ;;  %v497_v9 = vld [vmem:[%s2469_s18 + $0xb08] sm:$0xff]  ;;  %vm1008_vm0 = vcmp.gt.f32.partialorder %v496_v7, 0.0  ;;  %v1519_v16 = vsel %vm1007_vm15, 1, %v2389_v6 }
 0x169   : > { %1997 = vst [vmem:[%s2480_s23 + $0x9e8] sm:$0xff] %v1485_v11  ;;  %v498_v11 = vld [vmem:[%s2469_s18 + $0xb10] sm:$0xff]  ;;  %vm1009_vm1 = vcmp.gt.f32.partialorder %v497_v9, 0.0  ;;  %v1520_v18 = vsel %vm1008_vm0, 1, %v2389_v6 }
 0x16a   : > { %1998 = vst [vmem:[%s2480_s23 + $0x9f0] sm:$0xff] %v1486_v13  ;;  %v499_v13 = vld [vmem:[%s2469_s18 + $0xb18] sm:$0xff]  ;;  %vm1010_vm2 = vcmp.gt.f32.partialorder %v498_v11, 0.0  ;;  %v1521_v20 = vsel %vm1009_vm1, 1, %v2389_v6 }
 0x16b   : > { %1999 = vst [vmem:[%s2480_s23 + $0x9f8] sm:$0xff] %v1487_v15  ;;  %v500_v15 = vld [vmem:[%s2469_s18 + $0xb20] sm:$0xff]  ;;  %vm1011_vm3 = vcmp.gt.f32.partialorder %v499_v13, 0.0  ;;  %v1522_v22 = vsel %vm1010_vm2, 1, %v2389_v6 }
 0x16c   : > { %2000 = vst [vmem:[%s2480_s23 + $0xa00] sm:$0xff] %v1488_v17  ;;  %v501_v17 = vld [vmem:[%s2469_s18 + $0xb28] sm:$0xff]  ;;  %vm1012_vm4 = vcmp.gt.f32.partialorder %v500_v15, 0.0  ;;  %v1523_v24 = vsel %vm1011_vm3, 1, %v2389_v6 }
 0x16d   : > { %2001 = vst [vmem:[%s2480_s23 + $0xa08] sm:$0xff] %v1489_v19  ;;  %v502_v19 = vld [vmem:[%s2469_s18 + $0xb30] sm:$0xff]  ;;  %vm1013_vm5 = vcmp.gt.f32.partialorder %v501_v17, 0.0  ;;  %v1524_v26 = vsel %vm1012_vm4, 1, %v2389_v6 }
 0x16e   : > { %2002 = vst [vmem:[%s2480_s23 + $0xa10] sm:$0xff] %v1490_v21  ;;  %v503_v21 = vld [vmem:[%s2469_s18 + $0xb38] sm:$0xff]  ;;  %vm1014_vm6 = vcmp.gt.f32.partialorder %v502_v19, 0.0  ;;  %v1525_v28 = vsel %vm1013_vm5, 1, %v2389_v6 }
 0x16f   : > { %2003 = vst [vmem:[%s2480_s23 + $0xa18] sm:$0xff] %v1491_v23  ;;  %v504_v23 = vld [vmem:[%s2469_s18 + $0xb40] sm:$0xff]  ;;  %vm1015_vm7 = vcmp.gt.f32.partialorder %v503_v21, 0.0  ;;  %v1526_v30 = vsel %vm1014_vm6, 1, %v2389_v6 }
 0x170   : > { %2004 = vst [vmem:[%s2480_s23 + $0xa20] sm:$0xff] %v1492_v25  ;;  %v505_v25 = vld [vmem:[%s2469_s18 + $0xb48] sm:$0xff]  ;;  %vm1016_vm8 = vcmp.gt.f32.partialorder %v504_v23, 0.0  ;;  %v1527_v32 = vsel %vm1015_vm7, 1, %v2389_v6 }
 0x171   : > { %2005 = vst [vmem:[%s2480_s23 + $0xa28] sm:$0xff] %v1493_v27  ;;  %v506_v27 = vld [vmem:[%s2469_s18 + $0xb50] sm:$0xff]  ;;  %vm1017_vm9 = vcmp.gt.f32.partialorder %v505_v25, 0.0  ;;  %v1528_v34 = vsel %vm1016_vm8, 1, %v2389_v6 }
 0x172   : > { %2006 = vst [vmem:[%s2480_s23 + $0xa30] sm:$0xff] %v1494_v29  ;;  %v507_v29 = vld [vmem:[%s2469_s18 + $0xb58] sm:$0xff]  ;;  %vm1018_vm10 = vcmp.gt.f32.partialorder %v506_v27, 0.0  ;;  %v1529_v36 = vsel %vm1017_vm9, 1, %v2389_v6 }
 0x173   : > { %2007 = vst [vmem:[%s2480_s23 + $0xa38] sm:$0xff] %v1495_v31  ;;  %v508_v31 = vld [vmem:[%s2469_s18 + $0xb60] sm:$0xff]  ;;  %vm1019_vm11 = vcmp.gt.f32.partialorder %v507_v29, 0.0  ;;  %v1530_v38 = vsel %vm1018_vm10, 1, %v2389_v6 }
 0x174   : > { %2008 = vst [vmem:[%s2480_s23 + $0xa40] sm:$0xff] %v1496_v33  ;;  %v509_v33 = vld [vmem:[%s2469_s18 + $0xb68] sm:$0xff]  ;;  %vm1020_vm12 = vcmp.gt.f32.partialorder %v508_v31, 0.0  ;;  %v1531_v40 = vsel %vm1019_vm11, 1, %v2389_v6 }
 0x175   : > { %2009 = vst [vmem:[%s2480_s23 + $0xa48] sm:$0xff] %v1497_v35  ;;  %v510_v35 = vld [vmem:[%s2469_s18 + $0xb70] sm:$0xff]  ;;  %vm1021_vm13 = vcmp.gt.f32.partialorder %v509_v33, 0.0  ;;  %v1532_v42 = vsel %vm1020_vm12, 1, %v2389_v6 }
 0x176   : > { %2010 = vst [vmem:[%s2480_s23 + $0xa50] sm:$0xff] %v1498_v37  ;;  %v511_v37 = vld [vmem:[%s2469_s18 + $0xb78] sm:$0xff]  ;;  %vm1022_vm14 = vcmp.gt.f32.partialorder %v510_v35, 0.0  ;;  %v1533_v44 = vsel %vm1021_vm13, 1, %v2389_v6 }
 0x177   : > { %2011 = vst [vmem:[%s2480_s23 + $0xa58] sm:$0xff] %v1499_v39  ;;  %v512_v39 = vld [vmem:[%s2469_s18 + $0xb80] sm:$0xff]  ;;  %vm1023_vm15 = vcmp.gt.f32.partialorder %v511_v37, 0.0  ;;  %v1534_v46 = vsel %vm1022_vm14, 1, %v2389_v6 }
 0x178   : > { %2012 = vst [vmem:[%s2480_s23 + $0xa60] sm:$0xff] %v1500_v41  ;;  %v513_v41 = vld [vmem:[%s2469_s18 + $0xb88] sm:$0xff]  ;;  %vm1024_vm0 = vcmp.gt.f32.partialorder %v512_v39, 0.0  ;;  %v1535_v48 = vsel %vm1023_vm15, 1, %v2389_v6 }
 0x179   : > { %2013 = vst [vmem:[%s2480_s23 + $0xa68] sm:$0xff] %v1501_v43  ;;  %v514_v43 = vld [vmem:[%s2469_s18 + $0xb90] sm:$0xff]  ;;  %vm1025_vm1 = vcmp.gt.f32.partialorder %v513_v41, 0.0  ;;  %v1536_v50 = vsel %vm1024_vm0, 1, %v2389_v6 }
 0x17a   : > { %2014 = vst [vmem:[%s2480_s23 + $0xa70] sm:$0xff] %v1502_v45  ;;  %v515_v45 = vld [vmem:[%s2469_s18 + $0xb98] sm:$0xff]  ;;  %vm1026_vm2 = vcmp.gt.f32.partialorder %v514_v43, 0.0  ;;  %v1537_v52 = vsel %vm1025_vm1, 1, %v2389_v6 }
 0x17b   : > { %2015 = vst [vmem:[%s2480_s23 + $0xa78] sm:$0xff] %v1503_v47  ;;  %v516_v47 = vld [vmem:[%s2469_s18 + $0xba0] sm:$0xff]  ;;  %vm1027_vm3 = vcmp.gt.f32.partialorder %v515_v45, 0.0  ;;  %v1538_v54 = vsel %vm1026_vm2, 1, %v2389_v6 }
 0x17c   : > { %2016 = vst [vmem:[%s2480_s23 + $0xa80] sm:$0xff] %v1504_v49  ;;  %v517_v49 = vld [vmem:[%s2469_s18 + $0xba8] sm:$0xff]  ;;  %vm1028_vm4 = vcmp.gt.f32.partialorder %v516_v47, 0.0  ;;  %v1539_v56 = vsel %vm1027_vm3, 1, %v2389_v6 }
 0x17d   : > { %2017 = vst [vmem:[%s2480_s23 + $0xa88] sm:$0xff] %v1505_v51  ;;  %v518_v51 = vld [vmem:[%s2469_s18 + $0xbb0] sm:$0xff]  ;;  %vm1029_vm5 = vcmp.gt.f32.partialorder %v517_v49, 0.0  ;;  %v1540_v58 = vsel %vm1028_vm4, 1, %v2389_v6 }
 0x17e   : > { %2018 = vst [vmem:[%s2480_s23 + $0xa90] sm:$0xff] %v1506_v53  ;;  %v519_v53 = vld [vmem:[%s2469_s18 + $0xbb8] sm:$0xff]  ;;  %vm1030_vm6 = vcmp.gt.f32.partialorder %v518_v51, 0.0  ;;  %v1541_v60 = vsel %vm1029_vm5, 1, %v2389_v6 }
 0x17f   : > { %2019 = vst [vmem:[%s2480_s23 + $0xa98] sm:$0xff] %v1507_v55  ;;  %v520_v55 = vld [vmem:[%s2469_s18 + $0xbc0] sm:$0xff]  ;;  %vm1031_vm7 = vcmp.gt.f32.partialorder %v519_v53, 0.0  ;;  %v1542_v62 = vsel %vm1030_vm6, 1, %v2389_v6 }
 0x180   : > { %2020 = vst [vmem:[%s2480_s23 + $0xaa0] sm:$0xff] %v1508_v57  ;;  %v521_v57 = vld [vmem:[%s2469_s18 + $0xbc8] sm:$0xff]  ;;  %vm1032_vm8 = vcmp.gt.f32.partialorder %v520_v55, 0.0  ;;  %v1543_v0 = vsel %vm1031_vm7, 1, %v2389_v6 }
 0x181   : > { %2021 = vst [vmem:[%s2480_s23 + $0xaa8] sm:$0xff] %v1509_v59  ;;  %v522_v59 = vld [vmem:[%s2469_s18 + $0xbd0] sm:$0xff]  ;;  %vm1033_vm9 = vcmp.gt.f32.partialorder %v521_v57, 0.0  ;;  %v1544_v2 = vsel %vm1032_vm8, 1, %v2389_v6 }
 0x182   : > { %2022 = vst [vmem:[%s2480_s23 + $0xab0] sm:$0xff] %v1510_v61  ;;  %v523_v61 = vld [vmem:[%s2469_s18 + $0xbd8] sm:$0xff]  ;;  %vm1034_vm10 = vcmp.gt.f32.partialorder %v522_v59, 0.0  ;;  %v1545_v4 = vsel %vm1033_vm9, 1, %v2389_v6 }
 0x183   : > { %2023 = vst [vmem:[%s2480_s23 + $0xab8] sm:$0xff] %v1511_v63  ;;  %v524_v63 = vld [vmem:[%s2469_s18 + $0xbe0] sm:$0xff]  ;;  %vm1035_vm11 = vcmp.gt.f32.partialorder %v523_v61, 0.0  ;;  %v1546_v7 = vsel %vm1034_vm10, 1, %v2389_v6 }
 0x184   : > { %2024 = vst [vmem:[%s2480_s23 + $0xac0] sm:$0xff] %v1512_v1  ;;  %v525_v1 = vld [vmem:[%s2469_s18 + $0xbe8] sm:$0xff]  ;;  %vm1036_vm12 = vcmp.gt.f32.partialorder %v524_v63, 0.0  ;;  %v1547_v9 = vsel %vm1035_vm11, 1, %v2389_v6 }
 0x185   : > { %2025 = vst [vmem:[%s2480_s23 + $0xac8] sm:$0xff] %v1513_v3  ;;  %v526_v3 = vld [vmem:[%s2469_s18 + $0xbf0] sm:$0xff]  ;;  %vm1037_vm13 = vcmp.gt.f32.partialorder %v525_v1, 0.0  ;;  %v1548_v11 = vsel %vm1036_vm12, 1, %v2389_v6 }
 0x186   : > { %2026 = vst [vmem:[%s2480_s23 + $0xad0] sm:$0xff] %v1514_v5  ;;  %v527_v5 = vld [vmem:[%s2469_s18 + $0xbf8] sm:$0xff]  ;;  %vm1038_vm14 = vcmp.gt.f32.partialorder %v526_v3, 0.0  ;;  %v1549_v13 = vsel %vm1037_vm13, 1, %v2389_v6 }
 0x187   : > { %2027 = vst [vmem:[%s2480_s23 + $0xad8] sm:$0xff] %v1515_v8  ;;  %v528_v8 = vld [vmem:[%s2469_s18 + $0xc00] sm:$0xff]  ;;  %vm1039_vm15 = vcmp.gt.f32.partialorder %v527_v5, 0.0  ;;  %v1550_v15 = vsel %vm1038_vm14, 1, %v2389_v6 }
 0x188   : > { %2028 = vst [vmem:[%s2480_s23 + $0xae0] sm:$0xff] %v1516_v10  ;;  %v529_v10 = vld [vmem:[%s2469_s18 + $0xc08] sm:$0xff]  ;;  %vm1040_vm0 = vcmp.gt.f32.partialorder %v528_v8, 0.0  ;;  %v1551_v17 = vsel %vm1039_vm15, 1, %v2389_v6 }
 0x189   : > { %2029 = vst [vmem:[%s2480_s23 + $0xae8] sm:$0xff] %v1517_v12  ;;  %v530_v12 = vld [vmem:[%s2469_s18 + $0xc10] sm:$0xff]  ;;  %vm1041_vm1 = vcmp.gt.f32.partialorder %v529_v10, 0.0  ;;  %v1552_v19 = vsel %vm1040_vm0, 1, %v2389_v6 }
 0x18a   : > { %2030 = vst [vmem:[%s2480_s23 + $0xaf0] sm:$0xff] %v1518_v14  ;;  %v531_v14 = vld [vmem:[%s2469_s18 + $0xc18] sm:$0xff]  ;;  %vm1042_vm2 = vcmp.gt.f32.partialorder %v530_v12, 0.0  ;;  %v1553_v21 = vsel %vm1041_vm1, 1, %v2389_v6 }
 0x18b   : > { %2031 = vst [vmem:[%s2480_s23 + $0xaf8] sm:$0xff] %v1519_v16  ;;  %v532_v16 = vld [vmem:[%s2469_s18 + $0xc20] sm:$0xff]  ;;  %vm1043_vm3 = vcmp.gt.f32.partialorder %v531_v14, 0.0  ;;  %v1554_v23 = vsel %vm1042_vm2, 1, %v2389_v6 }
 0x18c   : > { %2032 = vst [vmem:[%s2480_s23 + $0xb00] sm:$0xff] %v1520_v18  ;;  %v533_v18 = vld [vmem:[%s2469_s18 + $0xc28] sm:$0xff]  ;;  %vm1044_vm4 = vcmp.gt.f32.partialorder %v532_v16, 0.0  ;;  %v1555_v25 = vsel %vm1043_vm3, 1, %v2389_v6 }
 0x18d   : > { %2033 = vst [vmem:[%s2480_s23 + $0xb08] sm:$0xff] %v1521_v20  ;;  %v534_v20 = vld [vmem:[%s2469_s18 + $0xc30] sm:$0xff]  ;;  %vm1045_vm5 = vcmp.gt.f32.partialorder %v533_v18, 0.0  ;;  %v1556_v27 = vsel %vm1044_vm4, 1, %v2389_v6 }
 0x18e   : > { %2034 = vst [vmem:[%s2480_s23 + $0xb10] sm:$0xff] %v1522_v22  ;;  %v535_v22 = vld [vmem:[%s2469_s18 + $0xc38] sm:$0xff]  ;;  %vm1046_vm6 = vcmp.gt.f32.partialorder %v534_v20, 0.0  ;;  %v1557_v29 = vsel %vm1045_vm5, 1, %v2389_v6 }
 0x18f   : > { %2035 = vst [vmem:[%s2480_s23 + $0xb18] sm:$0xff] %v1523_v24  ;;  %v536_v24 = vld [vmem:[%s2469_s18 + $0xc40] sm:$0xff]  ;;  %vm1047_vm7 = vcmp.gt.f32.partialorder %v535_v22, 0.0  ;;  %v1558_v31 = vsel %vm1046_vm6, 1, %v2389_v6 }
 0x190   : > { %2036 = vst [vmem:[%s2480_s23 + $0xb20] sm:$0xff] %v1524_v26  ;;  %v537_v26 = vld [vmem:[%s2469_s18 + $0xc48] sm:$0xff]  ;;  %vm1048_vm8 = vcmp.gt.f32.partialorder %v536_v24, 0.0  ;;  %v1559_v33 = vsel %vm1047_vm7, 1, %v2389_v6 }
 0x191   : > { %2037 = vst [vmem:[%s2480_s23 + $0xb28] sm:$0xff] %v1525_v28  ;;  %v538_v28 = vld [vmem:[%s2469_s18 + $0xc50] sm:$0xff]  ;;  %vm1049_vm9 = vcmp.gt.f32.partialorder %v537_v26, 0.0  ;;  %v1560_v35 = vsel %vm1048_vm8, 1, %v2389_v6 }
 0x192   : > { %2038 = vst [vmem:[%s2480_s23 + $0xb30] sm:$0xff] %v1526_v30  ;;  %v539_v30 = vld [vmem:[%s2469_s18 + $0xc58] sm:$0xff]  ;;  %vm1050_vm10 = vcmp.gt.f32.partialorder %v538_v28, 0.0  ;;  %v1561_v37 = vsel %vm1049_vm9, 1, %v2389_v6 }
 0x193   : > { %2039 = vst [vmem:[%s2480_s23 + $0xb38] sm:$0xff] %v1527_v32  ;;  %v540_v32 = vld [vmem:[%s2469_s18 + $0xc60] sm:$0xff]  ;;  %vm1051_vm11 = vcmp.gt.f32.partialorder %v539_v30, 0.0  ;;  %v1562_v39 = vsel %vm1050_vm10, 1, %v2389_v6 }
 0x194   : > { %2040 = vst [vmem:[%s2480_s23 + $0xb40] sm:$0xff] %v1528_v34  ;;  %v541_v34 = vld [vmem:[%s2469_s18 + $0xc68] sm:$0xff]  ;;  %vm1052_vm12 = vcmp.gt.f32.partialorder %v540_v32, 0.0  ;;  %v1563_v41 = vsel %vm1051_vm11, 1, %v2389_v6 }
 0x195   : > { %2041 = vst [vmem:[%s2480_s23 + $0xb48] sm:$0xff] %v1529_v36  ;;  %v542_v36 = vld [vmem:[%s2469_s18 + $0xc70] sm:$0xff]  ;;  %vm1053_vm13 = vcmp.gt.f32.partialorder %v541_v34, 0.0  ;;  %v1564_v43 = vsel %vm1052_vm12, 1, %v2389_v6 }
 0x196   : > { %2042 = vst [vmem:[%s2480_s23 + $0xb50] sm:$0xff] %v1530_v38  ;;  %v543_v38 = vld [vmem:[%s2469_s18 + $0xc78] sm:$0xff]  ;;  %vm1054_vm14 = vcmp.gt.f32.partialorder %v542_v36, 0.0  ;;  %v1565_v45 = vsel %vm1053_vm13, 1, %v2389_v6 }
 0x197   : > { %2043 = vst [vmem:[%s2480_s23 + $0xb58] sm:$0xff] %v1531_v40  ;;  %v544_v40 = vld [vmem:[%s2469_s18 + $0xc80] sm:$0xff]  ;;  %vm1055_vm15 = vcmp.gt.f32.partialorder %v543_v38, 0.0  ;;  %v1566_v47 = vsel %vm1054_vm14, 1, %v2389_v6 }
 0x198   : > { %2044 = vst [vmem:[%s2480_s23 + $0xb60] sm:$0xff] %v1532_v42  ;;  %v545_v42 = vld [vmem:[%s2469_s18 + $0xc88] sm:$0xff]  ;;  %vm1056_vm0 = vcmp.gt.f32.partialorder %v544_v40, 0.0  ;;  %v1567_v49 = vsel %vm1055_vm15, 1, %v2389_v6 }
 0x199   : > { %2045 = vst [vmem:[%s2480_s23 + $0xb68] sm:$0xff] %v1533_v44  ;;  %v546_v44 = vld [vmem:[%s2469_s18 + $0xc90] sm:$0xff]  ;;  %vm1057_vm1 = vcmp.gt.f32.partialorder %v545_v42, 0.0  ;;  %v1568_v51 = vsel %vm1056_vm0, 1, %v2389_v6 }
 0x19a   : > { %2046 = vst [vmem:[%s2480_s23 + $0xb70] sm:$0xff] %v1534_v46  ;;  %v547_v46 = vld [vmem:[%s2469_s18 + $0xc98] sm:$0xff]  ;;  %vm1058_vm2 = vcmp.gt.f32.partialorder %v546_v44, 0.0  ;;  %v1569_v53 = vsel %vm1057_vm1, 1, %v2389_v6 }
 0x19b   : > { %2047 = vst [vmem:[%s2480_s23 + $0xb78] sm:$0xff] %v1535_v48  ;;  %v548_v48 = vld [vmem:[%s2469_s18 + $0xca0] sm:$0xff]  ;;  %vm1059_vm3 = vcmp.gt.f32.partialorder %v547_v46, 0.0  ;;  %v1570_v55 = vsel %vm1058_vm2, 1, %v2389_v6 }
 0x19c   : > { %2048 = vst [vmem:[%s2480_s23 + $0xb80] sm:$0xff] %v1536_v50  ;;  %v549_v50 = vld [vmem:[%s2469_s18 + $0xca8] sm:$0xff]  ;;  %vm1060_vm4 = vcmp.gt.f32.partialorder %v548_v48, 0.0  ;;  %v1571_v57 = vsel %vm1059_vm3, 1, %v2389_v6 }
 0x19d   : > { %2049 = vst [vmem:[%s2480_s23 + $0xb88] sm:$0xff] %v1537_v52  ;;  %v550_v52 = vld [vmem:[%s2469_s18 + $0xcb0] sm:$0xff]  ;;  %vm1061_vm5 = vcmp.gt.f32.partialorder %v549_v50, 0.0  ;;  %v1572_v59 = vsel %vm1060_vm4, 1, %v2389_v6 }
 0x19e   : > { %2050 = vst [vmem:[%s2480_s23 + $0xb90] sm:$0xff] %v1538_v54  ;;  %v551_v54 = vld [vmem:[%s2469_s18 + $0xcb8] sm:$0xff]  ;;  %vm1062_vm6 = vcmp.gt.f32.partialorder %v550_v52, 0.0  ;;  %v1573_v61 = vsel %vm1061_vm5, 1, %v2389_v6 }
 0x19f   : > { %2051 = vst [vmem:[%s2480_s23 + $0xb98] sm:$0xff] %v1539_v56  ;;  %v552_v56 = vld [vmem:[%s2469_s18 + $0xcc0] sm:$0xff]  ;;  %vm1063_vm7 = vcmp.gt.f32.partialorder %v551_v54, 0.0  ;;  %v1574_v63 = vsel %vm1062_vm6, 1, %v2389_v6 }
 0x1a0   : > { %2052 = vst [vmem:[%s2480_s23 + $0xba0] sm:$0xff] %v1540_v58  ;;  %v553_v58 = vld [vmem:[%s2469_s18 + $0xcc8] sm:$0xff]  ;;  %vm1064_vm8 = vcmp.gt.f32.partialorder %v552_v56, 0.0  ;;  %v1575_v1 = vsel %vm1063_vm7, 1, %v2389_v6 }
 0x1a1   : > { %2053 = vst [vmem:[%s2480_s23 + $0xba8] sm:$0xff] %v1541_v60  ;;  %v554_v60 = vld [vmem:[%s2469_s18 + $0xcd0] sm:$0xff]  ;;  %vm1065_vm9 = vcmp.gt.f32.partialorder %v553_v58, 0.0  ;;  %v1576_v3 = vsel %vm1064_vm8, 1, %v2389_v6 }
 0x1a2   : > { %2054 = vst [vmem:[%s2480_s23 + $0xbb0] sm:$0xff] %v1542_v62  ;;  %v555_v62 = vld [vmem:[%s2469_s18 + $0xcd8] sm:$0xff]  ;;  %vm1066_vm10 = vcmp.gt.f32.partialorder %v554_v60, 0.0  ;;  %v1577_v5 = vsel %vm1065_vm9, 1, %v2389_v6 }
 0x1a3   : > { %2055 = vst [vmem:[%s2480_s23 + $0xbb8] sm:$0xff] %v1543_v0  ;;  %v556_v0 = vld [vmem:[%s2469_s18 + $0xce0] sm:$0xff]  ;;  %vm1067_vm11 = vcmp.gt.f32.partialorder %v555_v62, 0.0  ;;  %v1578_v8 = vsel %vm1066_vm10, 1, %v2389_v6 }
 0x1a4   : > { %2056 = vst [vmem:[%s2480_s23 + $0xbc0] sm:$0xff] %v1544_v2  ;;  %v557_v2 = vld [vmem:[%s2469_s18 + $0xce8] sm:$0xff]  ;;  %vm1068_vm12 = vcmp.gt.f32.partialorder %v556_v0, 0.0  ;;  %v1579_v10 = vsel %vm1067_vm11, 1, %v2389_v6 }
 0x1a5   : > { %2057 = vst [vmem:[%s2480_s23 + $0xbc8] sm:$0xff] %v1545_v4  ;;  %v558_v4 = vld [vmem:[%s2469_s18 + $0xcf0] sm:$0xff]  ;;  %vm1069_vm13 = vcmp.gt.f32.partialorder %v557_v2, 0.0  ;;  %v1580_v12 = vsel %vm1068_vm12, 1, %v2389_v6 }
 0x1a6   : > { %2058 = vst [vmem:[%s2480_s23 + $0xbd0] sm:$0xff] %v1546_v7  ;;  %v559_v7 = vld [vmem:[%s2469_s18 + $0xcf8] sm:$0xff]  ;;  %vm1070_vm14 = vcmp.gt.f32.partialorder %v558_v4, 0.0  ;;  %v1581_v14 = vsel %vm1069_vm13, 1, %v2389_v6 }
 0x1a7   : > { %2059 = vst [vmem:[%s2480_s23 + $0xbd8] sm:$0xff] %v1547_v9  ;;  %v560_v9 = vld [vmem:[%s2469_s18 + $0xd00] sm:$0xff]  ;;  %vm1071_vm15 = vcmp.gt.f32.partialorder %v559_v7, 0.0  ;;  %v1582_v16 = vsel %vm1070_vm14, 1, %v2389_v6 }
 0x1a8   : > { %2060 = vst [vmem:[%s2480_s23 + $0xbe0] sm:$0xff] %v1548_v11  ;;  %v561_v11 = vld [vmem:[%s2469_s18 + $0xd08] sm:$0xff]  ;;  %vm1072_vm0 = vcmp.gt.f32.partialorder %v560_v9, 0.0  ;;  %v1583_v18 = vsel %vm1071_vm15, 1, %v2389_v6 }
 0x1a9   : > { %2061 = vst [vmem:[%s2480_s23 + $0xbe8] sm:$0xff] %v1549_v13  ;;  %v562_v13 = vld [vmem:[%s2469_s18 + $0xd10] sm:$0xff]  ;;  %vm1073_vm1 = vcmp.gt.f32.partialorder %v561_v11, 0.0  ;;  %v1584_v20 = vsel %vm1072_vm0, 1, %v2389_v6 }
 0x1aa   : > { %2062 = vst [vmem:[%s2480_s23 + $0xbf0] sm:$0xff] %v1550_v15  ;;  %v563_v15 = vld [vmem:[%s2469_s18 + $0xd18] sm:$0xff]  ;;  %vm1074_vm2 = vcmp.gt.f32.partialorder %v562_v13, 0.0  ;;  %v1585_v22 = vsel %vm1073_vm1, 1, %v2389_v6 }
 0x1ab   : > { %2063 = vst [vmem:[%s2480_s23 + $0xbf8] sm:$0xff] %v1551_v17  ;;  %v564_v17 = vld [vmem:[%s2469_s18 + $0xd20] sm:$0xff]  ;;  %vm1075_vm3 = vcmp.gt.f32.partialorder %v563_v15, 0.0  ;;  %v1586_v24 = vsel %vm1074_vm2, 1, %v2389_v6 }
 0x1ac   : > { %2064 = vst [vmem:[%s2480_s23 + $0xc00] sm:$0xff] %v1552_v19  ;;  %v565_v19 = vld [vmem:[%s2469_s18 + $0xd28] sm:$0xff]  ;;  %vm1076_vm4 = vcmp.gt.f32.partialorder %v564_v17, 0.0  ;;  %v1587_v26 = vsel %vm1075_vm3, 1, %v2389_v6 }
 0x1ad   : > { %2065 = vst [vmem:[%s2480_s23 + $0xc08] sm:$0xff] %v1553_v21  ;;  %v566_v21 = vld [vmem:[%s2469_s18 + $0xd30] sm:$0xff]  ;;  %vm1077_vm5 = vcmp.gt.f32.partialorder %v565_v19, 0.0  ;;  %v1588_v28 = vsel %vm1076_vm4, 1, %v2389_v6 }
 0x1ae   : > { %2066 = vst [vmem:[%s2480_s23 + $0xc10] sm:$0xff] %v1554_v23  ;;  %v567_v23 = vld [vmem:[%s2469_s18 + $0xd38] sm:$0xff]  ;;  %vm1078_vm6 = vcmp.gt.f32.partialorder %v566_v21, 0.0  ;;  %v1589_v30 = vsel %vm1077_vm5, 1, %v2389_v6 }
 0x1af   : > { %2067 = vst [vmem:[%s2480_s23 + $0xc18] sm:$0xff] %v1555_v25  ;;  %v568_v25 = vld [vmem:[%s2469_s18 + $0xd40] sm:$0xff]  ;;  %vm1079_vm7 = vcmp.gt.f32.partialorder %v567_v23, 0.0  ;;  %v1590_v32 = vsel %vm1078_vm6, 1, %v2389_v6 }
 0x1b0   : > { %2068 = vst [vmem:[%s2480_s23 + $0xc20] sm:$0xff] %v1556_v27  ;;  %v569_v27 = vld [vmem:[%s2469_s18 + $0xd48] sm:$0xff]  ;;  %vm1080_vm8 = vcmp.gt.f32.partialorder %v568_v25, 0.0  ;;  %v1591_v34 = vsel %vm1079_vm7, 1, %v2389_v6 }
 0x1b1   : > { %2069 = vst [vmem:[%s2480_s23 + $0xc28] sm:$0xff] %v1557_v29  ;;  %v570_v29 = vld [vmem:[%s2469_s18 + $0xd50] sm:$0xff]  ;;  %vm1081_vm9 = vcmp.gt.f32.partialorder %v569_v27, 0.0  ;;  %v1592_v36 = vsel %vm1080_vm8, 1, %v2389_v6 }
 0x1b2   : > { %2070 = vst [vmem:[%s2480_s23 + $0xc30] sm:$0xff] %v1558_v31  ;;  %v571_v31 = vld [vmem:[%s2469_s18 + $0xd58] sm:$0xff]  ;;  %vm1082_vm10 = vcmp.gt.f32.partialorder %v570_v29, 0.0  ;;  %v1593_v38 = vsel %vm1081_vm9, 1, %v2389_v6 }
 0x1b3   : > { %2071 = vst [vmem:[%s2480_s23 + $0xc38] sm:$0xff] %v1559_v33  ;;  %v572_v33 = vld [vmem:[%s2469_s18 + $0xd60] sm:$0xff]  ;;  %vm1083_vm11 = vcmp.gt.f32.partialorder %v571_v31, 0.0  ;;  %v1594_v40 = vsel %vm1082_vm10, 1, %v2389_v6 }
 0x1b4   : > { %2072 = vst [vmem:[%s2480_s23 + $0xc40] sm:$0xff] %v1560_v35  ;;  %v573_v35 = vld [vmem:[%s2469_s18 + $0xd68] sm:$0xff]  ;;  %vm1084_vm12 = vcmp.gt.f32.partialorder %v572_v33, 0.0  ;;  %v1595_v42 = vsel %vm1083_vm11, 1, %v2389_v6 }
 0x1b5   : > { %2073 = vst [vmem:[%s2480_s23 + $0xc48] sm:$0xff] %v1561_v37  ;;  %v574_v37 = vld [vmem:[%s2469_s18 + $0xd70] sm:$0xff]  ;;  %vm1085_vm13 = vcmp.gt.f32.partialorder %v573_v35, 0.0  ;;  %v1596_v44 = vsel %vm1084_vm12, 1, %v2389_v6 }
 0x1b6   : > { %2074 = vst [vmem:[%s2480_s23 + $0xc50] sm:$0xff] %v1562_v39  ;;  %v575_v39 = vld [vmem:[%s2469_s18 + $0xd78] sm:$0xff]  ;;  %vm1086_vm14 = vcmp.gt.f32.partialorder %v574_v37, 0.0  ;;  %v1597_v46 = vsel %vm1085_vm13, 1, %v2389_v6 }
 0x1b7   : > { %2075 = vst [vmem:[%s2480_s23 + $0xc58] sm:$0xff] %v1563_v41  ;;  %v576_v41 = vld [vmem:[%s2469_s18 + $0xd80] sm:$0xff]  ;;  %vm1087_vm15 = vcmp.gt.f32.partialorder %v575_v39, 0.0  ;;  %v1598_v48 = vsel %vm1086_vm14, 1, %v2389_v6 }
 0x1b8   : > { %2076 = vst [vmem:[%s2480_s23 + $0xc60] sm:$0xff] %v1564_v43  ;;  %v577_v43 = vld [vmem:[%s2469_s18 + $0xd88] sm:$0xff]  ;;  %vm1088_vm0 = vcmp.gt.f32.partialorder %v576_v41, 0.0  ;;  %v1599_v50 = vsel %vm1087_vm15, 1, %v2389_v6 }
 0x1b9   : > { %2077 = vst [vmem:[%s2480_s23 + $0xc68] sm:$0xff] %v1565_v45  ;;  %v578_v45 = vld [vmem:[%s2469_s18 + $0xd90] sm:$0xff]  ;;  %vm1089_vm1 = vcmp.gt.f32.partialorder %v577_v43, 0.0  ;;  %v1600_v52 = vsel %vm1088_vm0, 1, %v2389_v6 }
 0x1ba   : > { %2078 = vst [vmem:[%s2480_s23 + $0xc70] sm:$0xff] %v1566_v47  ;;  %v579_v47 = vld [vmem:[%s2469_s18 + $0xd98] sm:$0xff]  ;;  %vm1090_vm2 = vcmp.gt.f32.partialorder %v578_v45, 0.0  ;;  %v1601_v54 = vsel %vm1089_vm1, 1, %v2389_v6 }
 0x1bb   : > { %2079 = vst [vmem:[%s2480_s23 + $0xc78] sm:$0xff] %v1567_v49  ;;  %v580_v49 = vld [vmem:[%s2469_s18 + $0xda0] sm:$0xff]  ;;  %vm1091_vm3 = vcmp.gt.f32.partialorder %v579_v47, 0.0  ;;  %v1602_v56 = vsel %vm1090_vm2, 1, %v2389_v6 }
 0x1bc   : > { %2080 = vst [vmem:[%s2480_s23 + $0xc80] sm:$0xff] %v1568_v51  ;;  %v581_v51 = vld [vmem:[%s2469_s18 + $0xda8] sm:$0xff]  ;;  %vm1092_vm4 = vcmp.gt.f32.partialorder %v580_v49, 0.0  ;;  %v1603_v58 = vsel %vm1091_vm3, 1, %v2389_v6 }
 0x1bd   : > { %2081 = vst [vmem:[%s2480_s23 + $0xc88] sm:$0xff] %v1569_v53  ;;  %v582_v53 = vld [vmem:[%s2469_s18 + $0xdb0] sm:$0xff]  ;;  %vm1093_vm5 = vcmp.gt.f32.partialorder %v581_v51, 0.0  ;;  %v1604_v60 = vsel %vm1092_vm4, 1, %v2389_v6 }
 0x1be   : > { %2082 = vst [vmem:[%s2480_s23 + $0xc90] sm:$0xff] %v1570_v55  ;;  %v583_v55 = vld [vmem:[%s2469_s18 + $0xdb8] sm:$0xff]  ;;  %vm1094_vm6 = vcmp.gt.f32.partialorder %v582_v53, 0.0  ;;  %v1605_v62 = vsel %vm1093_vm5, 1, %v2389_v6 }
 0x1bf   : > { %2083 = vst [vmem:[%s2480_s23 + $0xc98] sm:$0xff] %v1571_v57  ;;  %v584_v57 = vld [vmem:[%s2469_s18 + $0xdc0] sm:$0xff]  ;;  %vm1095_vm7 = vcmp.gt.f32.partialorder %v583_v55, 0.0  ;;  %v1606_v0 = vsel %vm1094_vm6, 1, %v2389_v6 }
 0x1c0   : > { %2084 = vst [vmem:[%s2480_s23 + $0xca0] sm:$0xff] %v1572_v59  ;;  %v585_v59 = vld [vmem:[%s2469_s18 + $0xdc8] sm:$0xff]  ;;  %vm1096_vm8 = vcmp.gt.f32.partialorder %v584_v57, 0.0  ;;  %v1607_v2 = vsel %vm1095_vm7, 1, %v2389_v6 }
 0x1c1   : > { %2085 = vst [vmem:[%s2480_s23 + $0xca8] sm:$0xff] %v1573_v61  ;;  %v586_v61 = vld [vmem:[%s2469_s18 + $0xdd0] sm:$0xff]  ;;  %vm1097_vm9 = vcmp.gt.f32.partialorder %v585_v59, 0.0  ;;  %v1608_v4 = vsel %vm1096_vm8, 1, %v2389_v6 }
 0x1c2   : > { %2086 = vst [vmem:[%s2480_s23 + $0xcb0] sm:$0xff] %v1574_v63  ;;  %v587_v63 = vld [vmem:[%s2469_s18 + $0xdd8] sm:$0xff]  ;;  %vm1098_vm10 = vcmp.gt.f32.partialorder %v586_v61, 0.0  ;;  %v1609_v7 = vsel %vm1097_vm9, 1, %v2389_v6 }
 0x1c3   : > { %2087 = vst [vmem:[%s2480_s23 + $0xcb8] sm:$0xff] %v1575_v1  ;;  %v588_v1 = vld [vmem:[%s2469_s18 + $0xde0] sm:$0xff]  ;;  %vm1099_vm11 = vcmp.gt.f32.partialorder %v587_v63, 0.0  ;;  %v1610_v9 = vsel %vm1098_vm10, 1, %v2389_v6 }
 0x1c4   : > { %2088 = vst [vmem:[%s2480_s23 + $0xcc0] sm:$0xff] %v1576_v3  ;;  %v589_v3 = vld [vmem:[%s2469_s18 + $0xde8] sm:$0xff]  ;;  %vm1100_vm12 = vcmp.gt.f32.partialorder %v588_v1, 0.0  ;;  %v1611_v11 = vsel %vm1099_vm11, 1, %v2389_v6 }
 0x1c5   : > { %2089 = vst [vmem:[%s2480_s23 + $0xcc8] sm:$0xff] %v1577_v5  ;;  %v590_v5 = vld [vmem:[%s2469_s18 + $0xdf0] sm:$0xff]  ;;  %vm1101_vm13 = vcmp.gt.f32.partialorder %v589_v3, 0.0  ;;  %v1612_v13 = vsel %vm1100_vm12, 1, %v2389_v6 }
 0x1c6   : > { %2090 = vst [vmem:[%s2480_s23 + $0xcd0] sm:$0xff] %v1578_v8  ;;  %v591_v8 = vld [vmem:[%s2469_s18 + $0xdf8] sm:$0xff]  ;;  %vm1102_vm14 = vcmp.gt.f32.partialorder %v590_v5, 0.0  ;;  %v1613_v15 = vsel %vm1101_vm13, 1, %v2389_v6 }
 0x1c7   : > { %2091 = vst [vmem:[%s2480_s23 + $0xcd8] sm:$0xff] %v1579_v10  ;;  %v592_v10 = vld [vmem:[%s2469_s18 + $0xe00] sm:$0xff]  ;;  %vm1103_vm15 = vcmp.gt.f32.partialorder %v591_v8, 0.0  ;;  %v1614_v17 = vsel %vm1102_vm14, 1, %v2389_v6 }
 0x1c8   : > { %2092 = vst [vmem:[%s2480_s23 + $0xce0] sm:$0xff] %v1580_v12  ;;  %v593_v12 = vld [vmem:[%s2469_s18 + $0xe08] sm:$0xff]  ;;  %vm1104_vm0 = vcmp.gt.f32.partialorder %v592_v10, 0.0  ;;  %v1615_v19 = vsel %vm1103_vm15, 1, %v2389_v6 }
 0x1c9   : > { %2093 = vst [vmem:[%s2480_s23 + $0xce8] sm:$0xff] %v1581_v14  ;;  %v594_v14 = vld [vmem:[%s2469_s18 + $0xe10] sm:$0xff]  ;;  %vm1105_vm1 = vcmp.gt.f32.partialorder %v593_v12, 0.0  ;;  %v1616_v21 = vsel %vm1104_vm0, 1, %v2389_v6 }
 0x1ca   : > { %2094 = vst [vmem:[%s2480_s23 + $0xcf0] sm:$0xff] %v1582_v16  ;;  %v595_v16 = vld [vmem:[%s2469_s18 + $0xe18] sm:$0xff]  ;;  %vm1106_vm2 = vcmp.gt.f32.partialorder %v594_v14, 0.0  ;;  %v1617_v23 = vsel %vm1105_vm1, 1, %v2389_v6 }
 0x1cb   : > { %2095 = vst [vmem:[%s2480_s23 + $0xcf8] sm:$0xff] %v1583_v18  ;;  %v596_v18 = vld [vmem:[%s2469_s18 + $0xe20] sm:$0xff]  ;;  %vm1107_vm3 = vcmp.gt.f32.partialorder %v595_v16, 0.0  ;;  %v1618_v25 = vsel %vm1106_vm2, 1, %v2389_v6 }
 0x1cc   : > { %2096 = vst [vmem:[%s2480_s23 + $0xd00] sm:$0xff] %v1584_v20  ;;  %v597_v20 = vld [vmem:[%s2469_s18 + $0xe28] sm:$0xff]  ;;  %vm1108_vm4 = vcmp.gt.f32.partialorder %v596_v18, 0.0  ;;  %v1619_v27 = vsel %vm1107_vm3, 1, %v2389_v6 }
 0x1cd   : > { %2097 = vst [vmem:[%s2480_s23 + $0xd08] sm:$0xff] %v1585_v22  ;;  %v598_v22 = vld [vmem:[%s2469_s18 + $0xe30] sm:$0xff]  ;;  %vm1109_vm5 = vcmp.gt.f32.partialorder %v597_v20, 0.0  ;;  %v1620_v29 = vsel %vm1108_vm4, 1, %v2389_v6 }
 0x1ce   : > { %2098 = vst [vmem:[%s2480_s23 + $0xd10] sm:$0xff] %v1586_v24  ;;  %v599_v24 = vld [vmem:[%s2469_s18 + $0xe38] sm:$0xff]  ;;  %vm1110_vm6 = vcmp.gt.f32.partialorder %v598_v22, 0.0  ;;  %v1621_v31 = vsel %vm1109_vm5, 1, %v2389_v6 }
 0x1cf   : > { %2099 = vst [vmem:[%s2480_s23 + $0xd18] sm:$0xff] %v1587_v26  ;;  %v600_v26 = vld [vmem:[%s2469_s18 + $0xe40] sm:$0xff]  ;;  %vm1111_vm7 = vcmp.gt.f32.partialorder %v599_v24, 0.0  ;;  %v1622_v33 = vsel %vm1110_vm6, 1, %v2389_v6 }
 0x1d0   : > { %2100 = vst [vmem:[%s2480_s23 + $0xd20] sm:$0xff] %v1588_v28  ;;  %v601_v28 = vld [vmem:[%s2469_s18 + $0xe48] sm:$0xff]  ;;  %vm1112_vm8 = vcmp.gt.f32.partialorder %v600_v26, 0.0  ;;  %v1623_v35 = vsel %vm1111_vm7, 1, %v2389_v6 }
 0x1d1   : > { %2101 = vst [vmem:[%s2480_s23 + $0xd28] sm:$0xff] %v1589_v30  ;;  %v602_v30 = vld [vmem:[%s2469_s18 + $0xe50] sm:$0xff]  ;;  %vm1113_vm9 = vcmp.gt.f32.partialorder %v601_v28, 0.0  ;;  %v1624_v37 = vsel %vm1112_vm8, 1, %v2389_v6 }
 0x1d2   : > { %2102 = vst [vmem:[%s2480_s23 + $0xd30] sm:$0xff] %v1590_v32  ;;  %v603_v32 = vld [vmem:[%s2469_s18 + $0xe58] sm:$0xff]  ;;  %vm1114_vm10 = vcmp.gt.f32.partialorder %v602_v30, 0.0  ;;  %v1625_v39 = vsel %vm1113_vm9, 1, %v2389_v6 }
 0x1d3   : > { %2103 = vst [vmem:[%s2480_s23 + $0xd38] sm:$0xff] %v1591_v34  ;;  %v604_v34 = vld [vmem:[%s2469_s18 + $0xe60] sm:$0xff]  ;;  %vm1115_vm11 = vcmp.gt.f32.partialorder %v603_v32, 0.0  ;;  %v1626_v41 = vsel %vm1114_vm10, 1, %v2389_v6 }
 0x1d4   : > { %2104 = vst [vmem:[%s2480_s23 + $0xd40] sm:$0xff] %v1592_v36  ;;  %v605_v36 = vld [vmem:[%s2469_s18 + $0xe68] sm:$0xff]  ;;  %vm1116_vm12 = vcmp.gt.f32.partialorder %v604_v34, 0.0  ;;  %v1627_v43 = vsel %vm1115_vm11, 1, %v2389_v6 }
 0x1d5   : > { %2105 = vst [vmem:[%s2480_s23 + $0xd48] sm:$0xff] %v1593_v38  ;;  %v606_v38 = vld [vmem:[%s2469_s18 + $0xe70] sm:$0xff]  ;;  %vm1117_vm13 = vcmp.gt.f32.partialorder %v605_v36, 0.0  ;;  %v1628_v45 = vsel %vm1116_vm12, 1, %v2389_v6 }
 0x1d6   : > { %2106 = vst [vmem:[%s2480_s23 + $0xd50] sm:$0xff] %v1594_v40  ;;  %v607_v40 = vld [vmem:[%s2469_s18 + $0xe78] sm:$0xff]  ;;  %vm1118_vm14 = vcmp.gt.f32.partialorder %v606_v38, 0.0  ;;  %v1629_v47 = vsel %vm1117_vm13, 1, %v2389_v6 }
 0x1d7   : > { %2107 = vst [vmem:[%s2480_s23 + $0xd58] sm:$0xff] %v1595_v42  ;;  %v608_v42 = vld [vmem:[%s2469_s18 + $0xe80] sm:$0xff]  ;;  %vm1119_vm15 = vcmp.gt.f32.partialorder %v607_v40, 0.0  ;;  %v1630_v49 = vsel %vm1118_vm14, 1, %v2389_v6 }
 0x1d8   : > { %2108 = vst [vmem:[%s2480_s23 + $0xd60] sm:$0xff] %v1596_v44  ;;  %v609_v44 = vld [vmem:[%s2469_s18 + $0xe88] sm:$0xff]  ;;  %vm1120_vm0 = vcmp.gt.f32.partialorder %v608_v42, 0.0  ;;  %v1631_v51 = vsel %vm1119_vm15, 1, %v2389_v6 }
 0x1d9   : > { %2109 = vst [vmem:[%s2480_s23 + $0xd68] sm:$0xff] %v1597_v46  ;;  %v610_v46 = vld [vmem:[%s2469_s18 + $0xe90] sm:$0xff]  ;;  %vm1121_vm1 = vcmp.gt.f32.partialorder %v609_v44, 0.0  ;;  %v1632_v53 = vsel %vm1120_vm0, 1, %v2389_v6 }
 0x1da   : > { %2110 = vst [vmem:[%s2480_s23 + $0xd70] sm:$0xff] %v1598_v48  ;;  %v611_v48 = vld [vmem:[%s2469_s18 + $0xe98] sm:$0xff]  ;;  %vm1122_vm2 = vcmp.gt.f32.partialorder %v610_v46, 0.0  ;;  %v1633_v55 = vsel %vm1121_vm1, 1, %v2389_v6 }
 0x1db   : > { %2111 = vst [vmem:[%s2480_s23 + $0xd78] sm:$0xff] %v1599_v50  ;;  %v612_v50 = vld [vmem:[%s2469_s18 + $0xea0] sm:$0xff]  ;;  %vm1123_vm3 = vcmp.gt.f32.partialorder %v611_v48, 0.0  ;;  %v1634_v57 = vsel %vm1122_vm2, 1, %v2389_v6 }
 0x1dc   : > { %2112 = vst [vmem:[%s2480_s23 + $0xd80] sm:$0xff] %v1600_v52  ;;  %v613_v52 = vld [vmem:[%s2469_s18 + $0xea8] sm:$0xff]  ;;  %vm1124_vm4 = vcmp.gt.f32.partialorder %v612_v50, 0.0  ;;  %v1635_v59 = vsel %vm1123_vm3, 1, %v2389_v6 }
 0x1dd   : > { %2113 = vst [vmem:[%s2480_s23 + $0xd88] sm:$0xff] %v1601_v54  ;;  %v614_v54 = vld [vmem:[%s2469_s18 + $0xeb0] sm:$0xff]  ;;  %vm1125_vm5 = vcmp.gt.f32.partialorder %v613_v52, 0.0  ;;  %v1636_v61 = vsel %vm1124_vm4, 1, %v2389_v6 }
 0x1de   : > { %2114 = vst [vmem:[%s2480_s23 + $0xd90] sm:$0xff] %v1602_v56  ;;  %v615_v56 = vld [vmem:[%s2469_s18 + $0xeb8] sm:$0xff]  ;;  %vm1126_vm6 = vcmp.gt.f32.partialorder %v614_v54, 0.0  ;;  %v1637_v63 = vsel %vm1125_vm5, 1, %v2389_v6 }
 0x1df   : > { %2115 = vst [vmem:[%s2480_s23 + $0xd98] sm:$0xff] %v1603_v58  ;;  %v616_v58 = vld [vmem:[%s2469_s18 + $0xec0] sm:$0xff]  ;;  %vm1127_vm7 = vcmp.gt.f32.partialorder %v615_v56, 0.0  ;;  %v1638_v1 = vsel %vm1126_vm6, 1, %v2389_v6 }
 0x1e0   : > { %2116 = vst [vmem:[%s2480_s23 + $0xda0] sm:$0xff] %v1604_v60  ;;  %v617_v60 = vld [vmem:[%s2469_s18 + $0xec8] sm:$0xff]  ;;  %vm1128_vm8 = vcmp.gt.f32.partialorder %v616_v58, 0.0  ;;  %v1639_v3 = vsel %vm1127_vm7, 1, %v2389_v6 }
 0x1e1   : > { %2117 = vst [vmem:[%s2480_s23 + $0xda8] sm:$0xff] %v1605_v62  ;;  %v618_v62 = vld [vmem:[%s2469_s18 + $0xed0] sm:$0xff]  ;;  %vm1129_vm9 = vcmp.gt.f32.partialorder %v617_v60, 0.0  ;;  %v1640_v5 = vsel %vm1128_vm8, 1, %v2389_v6 }
 0x1e2   : > { %2118 = vst [vmem:[%s2480_s23 + $0xdb0] sm:$0xff] %v1606_v0  ;;  %v619_v0 = vld [vmem:[%s2469_s18 + $0xed8] sm:$0xff]  ;;  %vm1130_vm10 = vcmp.gt.f32.partialorder %v618_v62, 0.0  ;;  %v1641_v8 = vsel %vm1129_vm9, 1, %v2389_v6 }
 0x1e3   : > { %2119 = vst [vmem:[%s2480_s23 + $0xdb8] sm:$0xff] %v1607_v2  ;;  %v620_v2 = vld [vmem:[%s2469_s18 + $0xee0] sm:$0xff]  ;;  %vm1131_vm11 = vcmp.gt.f32.partialorder %v619_v0, 0.0  ;;  %v1642_v10 = vsel %vm1130_vm10, 1, %v2389_v6 }
 0x1e4   : > { %2120 = vst [vmem:[%s2480_s23 + $0xdc0] sm:$0xff] %v1608_v4  ;;  %v621_v4 = vld [vmem:[%s2469_s18 + $0xee8] sm:$0xff]  ;;  %vm1132_vm12 = vcmp.gt.f32.partialorder %v620_v2, 0.0  ;;  %v1643_v12 = vsel %vm1131_vm11, 1, %v2389_v6 }
 0x1e5   : > { %2121 = vst [vmem:[%s2480_s23 + $0xdc8] sm:$0xff] %v1609_v7  ;;  %v622_v7 = vld [vmem:[%s2469_s18 + $0xef0] sm:$0xff]  ;;  %vm1133_vm13 = vcmp.gt.f32.partialorder %v621_v4, 0.0  ;;  %v1644_v14 = vsel %vm1132_vm12, 1, %v2389_v6 }
 0x1e6   : > { %2122 = vst [vmem:[%s2480_s23 + $0xdd0] sm:$0xff] %v1610_v9  ;;  %v623_v9 = vld [vmem:[%s2469_s18 + $0xef8] sm:$0xff]  ;;  %vm1134_vm14 = vcmp.gt.f32.partialorder %v622_v7, 0.0  ;;  %v1645_v16 = vsel %vm1133_vm13, 1, %v2389_v6 }
 0x1e7   : > { %2123 = vst [vmem:[%s2480_s23 + $0xdd8] sm:$0xff] %v1611_v11  ;;  %v624_v11 = vld [vmem:[%s2469_s18 + $0xf00] sm:$0xff]  ;;  %vm1135_vm15 = vcmp.gt.f32.partialorder %v623_v9, 0.0  ;;  %v1646_v18 = vsel %vm1134_vm14, 1, %v2389_v6 }
 0x1e8   : > { %2124 = vst [vmem:[%s2480_s23 + $0xde0] sm:$0xff] %v1612_v13  ;;  %v625_v13 = vld [vmem:[%s2469_s18 + $0xf08] sm:$0xff]  ;;  %vm1136_vm0 = vcmp.gt.f32.partialorder %v624_v11, 0.0  ;;  %v1647_v20 = vsel %vm1135_vm15, 1, %v2389_v6 }
 0x1e9   : > { %2125 = vst [vmem:[%s2480_s23 + $0xde8] sm:$0xff] %v1613_v15  ;;  %v626_v15 = vld [vmem:[%s2469_s18 + $0xf10] sm:$0xff]  ;;  %vm1137_vm1 = vcmp.gt.f32.partialorder %v625_v13, 0.0  ;;  %v1648_v22 = vsel %vm1136_vm0, 1, %v2389_v6 }
 0x1ea   : > { %2126 = vst [vmem:[%s2480_s23 + $0xdf0] sm:$0xff] %v1614_v17  ;;  %v627_v17 = vld [vmem:[%s2469_s18 + $0xf18] sm:$0xff]  ;;  %vm1138_vm2 = vcmp.gt.f32.partialorder %v626_v15, 0.0  ;;  %v1649_v24 = vsel %vm1137_vm1, 1, %v2389_v6 }
 0x1eb   : > { %2127 = vst [vmem:[%s2480_s23 + $0xdf8] sm:$0xff] %v1615_v19  ;;  %v628_v19 = vld [vmem:[%s2469_s18 + $0xf20] sm:$0xff]  ;;  %vm1139_vm3 = vcmp.gt.f32.partialorder %v627_v17, 0.0  ;;  %v1650_v26 = vsel %vm1138_vm2, 1, %v2389_v6 }
 0x1ec   : > { %2128 = vst [vmem:[%s2480_s23 + $0xe00] sm:$0xff] %v1616_v21  ;;  %v629_v21 = vld [vmem:[%s2469_s18 + $0xf28] sm:$0xff]  ;;  %vm1140_vm4 = vcmp.gt.f32.partialorder %v628_v19, 0.0  ;;  %v1651_v28 = vsel %vm1139_vm3, 1, %v2389_v6 }
 0x1ed   : > { %2129 = vst [vmem:[%s2480_s23 + $0xe08] sm:$0xff] %v1617_v23  ;;  %v630_v23 = vld [vmem:[%s2469_s18 + $0xf30] sm:$0xff]  ;;  %vm1141_vm5 = vcmp.gt.f32.partialorder %v629_v21, 0.0  ;;  %v1652_v30 = vsel %vm1140_vm4, 1, %v2389_v6 }
 0x1ee   : > { %2130 = vst [vmem:[%s2480_s23 + $0xe10] sm:$0xff] %v1618_v25  ;;  %v631_v25 = vld [vmem:[%s2469_s18 + $0xf38] sm:$0xff]  ;;  %vm1142_vm6 = vcmp.gt.f32.partialorder %v630_v23, 0.0  ;;  %v1653_v32 = vsel %vm1141_vm5, 1, %v2389_v6 }
 0x1ef   : > { %2131 = vst [vmem:[%s2480_s23 + $0xe18] sm:$0xff] %v1619_v27  ;;  %v632_v27 = vld [vmem:[%s2469_s18 + $0xf40] sm:$0xff]  ;;  %vm1143_vm7 = vcmp.gt.f32.partialorder %v631_v25, 0.0  ;;  %v1654_v34 = vsel %vm1142_vm6, 1, %v2389_v6 }
 0x1f0   : > { %2132 = vst [vmem:[%s2480_s23 + $0xe20] sm:$0xff] %v1620_v29  ;;  %v633_v29 = vld [vmem:[%s2469_s18 + $0xf48] sm:$0xff]  ;;  %vm1144_vm8 = vcmp.gt.f32.partialorder %v632_v27, 0.0  ;;  %v1655_v36 = vsel %vm1143_vm7, 1, %v2389_v6 }
 0x1f1   : > { %2133 = vst [vmem:[%s2480_s23 + $0xe28] sm:$0xff] %v1621_v31  ;;  %v634_v31 = vld [vmem:[%s2469_s18 + $0xf50] sm:$0xff]  ;;  %vm1145_vm9 = vcmp.gt.f32.partialorder %v633_v29, 0.0  ;;  %v1656_v38 = vsel %vm1144_vm8, 1, %v2389_v6 }
 0x1f2   : > { %2134 = vst [vmem:[%s2480_s23 + $0xe30] sm:$0xff] %v1622_v33  ;;  %v635_v33 = vld [vmem:[%s2469_s18 + $0xf58] sm:$0xff]  ;;  %vm1146_vm10 = vcmp.gt.f32.partialorder %v634_v31, 0.0  ;;  %v1657_v40 = vsel %vm1145_vm9, 1, %v2389_v6 }
 0x1f3   : > { %2135 = vst [vmem:[%s2480_s23 + $0xe38] sm:$0xff] %v1623_v35  ;;  %v636_v35 = vld [vmem:[%s2469_s18 + $0xf60] sm:$0xff]  ;;  %vm1147_vm11 = vcmp.gt.f32.partialorder %v635_v33, 0.0  ;;  %v1658_v42 = vsel %vm1146_vm10, 1, %v2389_v6 }
 0x1f4   : > { %2136 = vst [vmem:[%s2480_s23 + $0xe40] sm:$0xff] %v1624_v37  ;;  %v637_v37 = vld [vmem:[%s2469_s18 + $0xf68] sm:$0xff]  ;;  %vm1148_vm12 = vcmp.gt.f32.partialorder %v636_v35, 0.0  ;;  %v1659_v44 = vsel %vm1147_vm11, 1, %v2389_v6 }
 0x1f5   : > { %2137 = vst [vmem:[%s2480_s23 + $0xe48] sm:$0xff] %v1625_v39  ;;  %v638_v39 = vld [vmem:[%s2469_s18 + $0xf70] sm:$0xff]  ;;  %vm1149_vm13 = vcmp.gt.f32.partialorder %v637_v37, 0.0  ;;  %v1660_v46 = vsel %vm1148_vm12, 1, %v2389_v6 }
 0x1f6   : > { %2138 = vst [vmem:[%s2480_s23 + $0xe50] sm:$0xff] %v1626_v41  ;;  %v639_v41 = vld [vmem:[%s2469_s18 + $0xf78] sm:$0xff]  ;;  %vm1150_vm14 = vcmp.gt.f32.partialorder %v638_v39, 0.0  ;;  %v1661_v48 = vsel %vm1149_vm13, 1, %v2389_v6 }
 0x1f7   : > { %2139 = vst [vmem:[%s2480_s23 + $0xe58] sm:$0xff] %v1627_v43  ;;  %v640_v43 = vld [vmem:[%s2469_s18 + $0xf80] sm:$0xff]  ;;  %vm1151_vm15 = vcmp.gt.f32.partialorder %v639_v41, 0.0  ;;  %v1662_v50 = vsel %vm1150_vm14, 1, %v2389_v6 }
 0x1f8   : > { %2140 = vst [vmem:[%s2480_s23 + $0xe60] sm:$0xff] %v1628_v45  ;;  %v641_v45 = vld [vmem:[%s2469_s18 + $0xf88] sm:$0xff]  ;;  %vm1152_vm0 = vcmp.gt.f32.partialorder %v640_v43, 0.0  ;;  %v1663_v52 = vsel %vm1151_vm15, 1, %v2389_v6 }
 0x1f9   : > { %2141 = vst [vmem:[%s2480_s23 + $0xe68] sm:$0xff] %v1629_v47  ;;  %v642_v47 = vld [vmem:[%s2469_s18 + $0xf90] sm:$0xff]  ;;  %vm1153_vm1 = vcmp.gt.f32.partialorder %v641_v45, 0.0  ;;  %v1664_v54 = vsel %vm1152_vm0, 1, %v2389_v6 }
 0x1fa   : > { %2142 = vst [vmem:[%s2480_s23 + $0xe70] sm:$0xff] %v1630_v49  ;;  %v643_v49 = vld [vmem:[%s2469_s18 + $0xf98] sm:$0xff]  ;;  %vm1154_vm2 = vcmp.gt.f32.partialorder %v642_v47, 0.0  ;;  %v1665_v56 = vsel %vm1153_vm1, 1, %v2389_v6 }
 0x1fb   : > { %2143 = vst [vmem:[%s2480_s23 + $0xe78] sm:$0xff] %v1631_v51  ;;  %v644_v51 = vld [vmem:[%s2469_s18 + $0xfa0] sm:$0xff]  ;;  %vm1155_vm3 = vcmp.gt.f32.partialorder %v643_v49, 0.0  ;;  %v1666_v58 = vsel %vm1154_vm2, 1, %v2389_v6 }
 0x1fc   : > { %2144 = vst [vmem:[%s2480_s23 + $0xe80] sm:$0xff] %v1632_v53  ;;  %v645_v53 = vld [vmem:[%s2469_s18 + $0xfa8] sm:$0xff]  ;;  %vm1156_vm4 = vcmp.gt.f32.partialorder %v644_v51, 0.0  ;;  %v1667_v60 = vsel %vm1155_vm3, 1, %v2389_v6 }
 0x1fd   : > { %2145 = vst [vmem:[%s2480_s23 + $0xe88] sm:$0xff] %v1633_v55  ;;  %v646_v55 = vld [vmem:[%s2469_s18 + $0xfb0] sm:$0xff]  ;;  %vm1157_vm5 = vcmp.gt.f32.partialorder %v645_v53, 0.0  ;;  %v1668_v62 = vsel %vm1156_vm4, 1, %v2389_v6 }
 0x1fe   : > { %2146 = vst [vmem:[%s2480_s23 + $0xe90] sm:$0xff] %v1634_v57  ;;  %v647_v57 = vld [vmem:[%s2469_s18 + $0xfb8] sm:$0xff]  ;;  %vm1158_vm6 = vcmp.gt.f32.partialorder %v646_v55, 0.0  ;;  %v1669_v0 = vsel %vm1157_vm5, 1, %v2389_v6 }
 0x1ff   : > { %2147 = vst [vmem:[%s2480_s23 + $0xe98] sm:$0xff] %v1635_v59  ;;  %v648_v59 = vld [vmem:[%s2469_s18 + $0xfc0] sm:$0xff]  ;;  %vm1159_vm7 = vcmp.gt.f32.partialorder %v647_v57, 0.0  ;;  %v1670_v2 = vsel %vm1158_vm6, 1, %v2389_v6 }
 0x200   : > { %2148 = vst [vmem:[%s2480_s23 + $0xea0] sm:$0xff] %v1636_v61  ;;  %v649_v61 = vld [vmem:[%s2469_s18 + $0xfc8] sm:$0xff]  ;;  %vm1160_vm8 = vcmp.gt.f32.partialorder %v648_v59, 0.0  ;;  %v1671_v4 = vsel %vm1159_vm7, 1, %v2389_v6 }
 0x201   : > { %2149 = vst [vmem:[%s2480_s23 + $0xea8] sm:$0xff] %v1637_v63  ;;  %v650_v63 = vld [vmem:[%s2469_s18 + $0xfd0] sm:$0xff]  ;;  %vm1161_vm9 = vcmp.gt.f32.partialorder %v649_v61, 0.0  ;;  %v1672_v7 = vsel %vm1160_vm8, 1, %v2389_v6 }
 0x202   : > { %2150 = vst [vmem:[%s2480_s23 + $0xeb0] sm:$0xff] %v1638_v1  ;;  %v651_v1 = vld [vmem:[%s2469_s18 + $0xfd8] sm:$0xff]  ;;  %vm1162_vm10 = vcmp.gt.f32.partialorder %v650_v63, 0.0  ;;  %v1673_v9 = vsel %vm1161_vm9, 1, %v2389_v6 }
 0x203   : > { %2151 = vst [vmem:[%s2480_s23 + $0xeb8] sm:$0xff] %v1639_v3  ;;  %v652_v3 = vld [vmem:[%s2469_s18 + $0xfe0] sm:$0xff]  ;;  %vm1163_vm11 = vcmp.gt.f32.partialorder %v651_v1, 0.0  ;;  %v1674_v11 = vsel %vm1162_vm10, 1, %v2389_v6 }
 0x204   : > { %2152 = vst [vmem:[%s2480_s23 + $0xec0] sm:$0xff] %v1640_v5  ;;  %v653_v5 = vld [vmem:[%s2469_s18 + $0xfe8] sm:$0xff]  ;;  %vm1164_vm12 = vcmp.gt.f32.partialorder %v652_v3, 0.0 }
 0x205   : > { %2153 = vst [vmem:[%s2480_s23 + $0xec8] sm:$0xff] %v1641_v8  ;;  %v654_v8 = vld [vmem:[%s2469_s18 + $0xff0] sm:$0xff]  ;;  %vm1165_vm13 = vcmp.gt.f32.partialorder %v653_v5, 0.0  ;;  %v1676_v13 = vsel %vm1164_vm12, 1, %v2389_v6 }
 0x206   : > { %2154 = vst [vmem:[%s2480_s23 + $0xed0] sm:$0xff] %v1642_v10  ;;  %v655_v10 = vld [vmem:[%s2469_s18 + $0xff8] sm:$0xff]  ;;  %vm1166_vm14 = vcmp.gt.f32.partialorder %v654_v8, 0.0 }
 0x207   : > { %2155 = vst [vmem:[%s2480_s23 + $0xed8] sm:$0xff] %v1643_v12  ;;  %v1675_v12 = vsel %vm1163_vm11, 1, %v2389_v6  ;;  %vm1167_vm15 = vcmp.gt.f32.partialorder %v655_v10, 0.0  ;;  %v1678_v15 = vsel %vm1166_vm14, 1, %v2389_v6 }
 0x208   : > { %2156 = vst [vmem:[%s2480_s23 + $0xee0] sm:$0xff] %v1644_v14  ;;  %v1677_v14 = vsel %vm1165_vm13, 1, %v2389_v6 }
 0x209   : > { %2157 = vst [vmem:[%s2480_s23 + $0xee8] sm:$0xff] %v1645_v16  ;;  %v1679_v16 = vsel %vm1167_vm15, 1, %v2389_v6 }
 0x20a   : > { %2158 = vst [vmem:[%s2480_s23 + $0xef0] sm:$0xff] %v1646_v18 }
 0x20b   : > { %2159 = vst [vmem:[%s2480_s23 + $0xef8] sm:$0xff] %v1647_v20 }
 0x20c   : > { %2160 = vst [vmem:[%s2480_s23 + $0xf00] sm:$0xff] %v1648_v22 }
 0x20d   : > { %2161 = vst [vmem:[%s2480_s23 + $0xf08] sm:$0xff] %v1649_v24 }
 0x20e   : > { %2162 = vst [vmem:[%s2480_s23 + $0xf10] sm:$0xff] %v1650_v26 }
 0x20f   : > { %2163 = vst [vmem:[%s2480_s23 + $0xf18] sm:$0xff] %v1651_v28 }
 0x210   : > { %2164 = vst [vmem:[%s2480_s23 + $0xf20] sm:$0xff] %v1652_v30 }
 0x211   : > { %2165 = vst [vmem:[%s2480_s23 + $0xf28] sm:$0xff] %v1653_v32 }
 0x212   : > { %2166 = vst [vmem:[%s2480_s23 + $0xf30] sm:$0xff] %v1654_v34 }
 0x213   : > { %2167 = vst [vmem:[%s2480_s23 + $0xf38] sm:$0xff] %v1655_v36 }
 0x214   : > { %2168 = vst [vmem:[%s2480_s23 + $0xf40] sm:$0xff] %v1656_v38 }
 0x215   : > { %2169 = vst [vmem:[%s2480_s23 + $0xf48] sm:$0xff] %v1657_v40 }
 0x216   : > { %2170 = vst [vmem:[%s2480_s23 + $0xf50] sm:$0xff] %v1658_v42 }
 0x217   : > { %2171 = vst [vmem:[%s2480_s23 + $0xf58] sm:$0xff] %v1659_v44 }
 0x218   : > { %2172 = vst [vmem:[%s2480_s23 + $0xf60] sm:$0xff] %v1660_v46 }
 0x219   : > { %2173 = vst [vmem:[%s2480_s23 + $0xf68] sm:$0xff] %v1661_v48 }
 0x21a   : > { %2174 = vst [vmem:[%s2480_s23 + $0xf70] sm:$0xff] %v1662_v50 }
 0x21b   : > { %2175 = vst [vmem:[%s2480_s23 + $0xf78] sm:$0xff] %v1663_v52 }
 0x21c   : > { %2176 = vst [vmem:[%s2480_s23 + $0xf80] sm:$0xff] %v1664_v54 }
 0x21d   : > { %2177 = vst [vmem:[%s2480_s23 + $0xf88] sm:$0xff] %v1665_v56 }
 0x21e   : > { %2178 = vst [vmem:[%s2480_s23 + $0xf90] sm:$0xff] %v1666_v58 }
 0x21f   : > { %2179 = vst [vmem:[%s2480_s23 + $0xf98] sm:$0xff] %v1667_v60 }
 0x220   : > { %2180 = vst [vmem:[%s2480_s23 + $0xfa0] sm:$0xff] %v1668_v62 }
 0x221   : > { %2181 = vst [vmem:[%s2480_s23 + $0xfa8] sm:$0xff] %v1669_v0 }
 0x222   : > { %2182 = vst [vmem:[%s2480_s23 + $0xfb0] sm:$0xff] %v1670_v2 }
 0x223   : > { %2183 = vst [vmem:[%s2480_s23 + $0xfb8] sm:$0xff] %v1671_v4 }
 0x224   : > { %2184 = vst [vmem:[%s2480_s23 + $0xfc0] sm:$0xff] %v1672_v7 }
 0x225   : > { %2185 = vst [vmem:[%s2480_s23 + $0xfc8] sm:$0xff] %v1673_v9 }
 0x226   : > { %2186 = vst [vmem:[%s2480_s23 + $0xfd0] sm:$0xff] %v1674_v11 }
 0x227   : > { %2187 = vst [vmem:[%s2480_s23 + $0xfd8] sm:$0xff] %v1675_v12 }
 0x228   : > { %2188 = vst [vmem:[%s2480_s23 + $0xfe0] sm:$0xff] %v1676_v13 }
 0x229   : > { %2189 = vst [vmem:[%s2480_s23 + $0xfe8] sm:$0xff] %v1677_v14 }
 0x22a   : > { %2190 = vst [vmem:[%s2480_s23 + $0xff0] sm:$0xff] %v1678_v15 }
 0x22b   : > { %2191 = vst [vmem:[%s2480_s23 + $0xff8] sm:$0xff] %v1679_v16 }
 0x22c PF: > { %p11_p7 = scmp.ge.s32.totalorder %s2420_s11, 4   ;;  %s4036_s6 = smov %s2377_s7 }
 0x22d   : > { %s4037_s7 = smov %s2381_s8  ;;  %s4038_s8 = smov %s2430_s14 }
 0x22e   : > { %s4039_s9 = smov %s2420_s11  ;;  %13 = sbr.rel (!%p11_p7) target bundleno = 3 (0x3), region = 64 }
 0x233   :  { %2216 = vsyncpa [#allocation3], 1 }
 0x234   :  { %2218 = vsyncpa [#allocation3 + $0x1], 1 }

</bundles_post_ra>
